<compile_context>
chip_gen: v6e
topology: v6e:2x2x1
jax: 0.10.0
libtpu: 0.0.40
codegen_flags: <defaults>
</compile_context>

<pallas_src>
import numpy as np
import jax
import jax.numpy as jnp
from jax.experimental import pallas as pl
from jax.experimental.pallas import tpu as pltpu

# Logical model sizes (match the PyTorch module: E=50, H=100)
V = 30      # vocab size
E = 50      # embedding dim
H = 100     # LSTM hidden dim (per direction)
L = 5       # number of labels
B = 2       # batch
T = 8       # sequence length

# Padded sizes used inside the kernel
HP = 128    # hidden dim padded to one vreg lane width (gate slices lane-aligned)
LP = 128    # label dim padded so the output store is lane-dense
VP = 128    # vocab padded so the one-hot K dim is lane-aligned
BP = 8      # batch padded to a full sublane tile


def _make_kernel(t_sz, bp):
    def kernel(ids_ref, emb_wx_ref, wh_ref, w_head_ref, b_head_ref, out_ref):
        # ids_ref    : (T*2*BP, 1) int32; row s*2BP+j: j<BP -> fwd id at time s,
        #              j>=BP -> (bwd id at time T-1-s) + VP  (doubled-vocab offset)
        # emb_wx_ref : (2*VP, 4*HP) bf16, rows = emb@Wx + b per direction, gate pads zero
        # wh_ref     : (2*HP, 4*HP) bf16, [Wh_f ; Wh_b], pad rows / gate-pad cols zero
        # w_head_ref : (2*HP, LP) bf16, b_head_ref : (1, LP) f32
        # out_ref    : (T*BP, LP) f32, softmax over the time axis (== nn.Softmax(dim=1))
        hp = wh_ref.shape[0] // 2           # 128
        vp2 = emb_wx_ref.shape[0]           # 256
        lp = out_ref.shape[1]               # 128
        bp2 = 2 * bp                        # 16
        rows = t_sz * bp2                   # 128

        # --- fused embedding gather + input projection (+ bias) for BOTH directions:
        #     one aligned one-hot matmul, time-reversal already baked into the id layout ---
        ids = ids_ref[...]                                                   # (rows, 1)
        vocab_iota = jax.lax.broadcasted_iota(jnp.int32, (rows, vp2), 1)
        onehot = (ids == vocab_iota).astype(jnp.bfloat16)                    # (rows, 2*VP)
        xproj = jnp.dot(onehot, emb_wx_ref[...],
                        preferred_element_type=jnp.float32)                  # (rows, 4*hp)

        wh = wh_ref[...]                                                     # (2hp, 4hp) bf16

        # block-diagonal mask: rows 0:bp (forward) live in cols 0:hp,
        # rows bp:2bp (backward) live in cols hp:2hp
        r_io = jax.lax.broadcasted_iota(jnp.int32, (bp2, 2 * hp), 0)
        c_io = jax.lax.broadcasted_iota(jnp.int32, (bp2, 2 * hp), 1)
        bd_mask = ((r_io < bp) == (c_io < hp)).astype(jnp.float32)           # (2bp, 2hp)

        h_bd = jnp.zeros((bp2, 2 * hp), jnp.float32)    # [h_f | 0 ; 0 | h_b]
        c = jnp.zeros((bp2, hp), jnp.float32)           # [c_f ; c_b]
        hs = [None] * t_sz
        # static unroll; ONE matmul + ONE set of gate activations per step for both directions
        for s in range(t_sz):
            xp = xproj[s * bp2:(s + 1) * bp2, :]                             # (2bp, 4hp)
            gates = xp + jnp.dot(h_bd.astype(jnp.bfloat16), wh,
                                 preferred_element_type=jnp.float32)         # (2bp, 4hp)
            i_g = jax.nn.sigmoid(gates[:, 0 * hp:1 * hp])   # PyTorch gate order i, f, g, o
            f_g = jax.nn.sigmoid(gates[:, 1 * hp:2 * hp])
            g_g = jnp.tanh(gates[:, 2 * hp:3 * hp])
            o_g = jax.nn.sigmoid(gates[:, 3 * hp:4 * hp])
            c = f_g * c + i_g * g_g
            h_half = o_g * jnp.tanh(c)                                       # (2bp, hp)
            h_bd = jnp.concatenate([h_half, h_half], axis=1) * bd_mask       # re-block-diag
            hs[s] = h_bd

        # h_cat[t] = [h_f[t] | h_b[t]]: fwd block of step t  +  bwd block of step T-1-t
        # (each block has zeros in the other direction's half, so an add is a concat)
        h_cat = jnp.concatenate(
            [hs[t][0:bp, :] + hs[t_sz - 1 - t][bp:bp2, :] for t in range(t_sz)],
            axis=0)                                                          # (T*bp, 2hp)

        logits = (jnp.dot(h_cat.astype(jnp.bfloat16), w_head_ref[...],
                          preferred_element_type=jnp.float32)
                  + b_head_ref[...])                                         # (T*bp, lp)

        # softmax over the time axis for each (batch, label) — matches nn.Softmax(dim=1)
        lg = logits.reshape(t_sz, bp, lp)
        m = jnp.max(lg, axis=0, keepdims=True)
        e = jnp.exp(lg - m)
        denom = jnp.sum(e, axis=0, keepdims=True)
        probs = e / denom                                                    # exact divide
        out_ref[...] = probs.reshape(t_sz * bp, lp)       # 8 full (8,128) unmasked stores
    return kernel


@jax.jit
def bilstm_forward(x_ids, padded_params):
    emb_wx, wh_stack, w_head_p, b_head_p = padded_params
    b_sz, t_sz = x_ids.shape
    # pad batch to a full 8-sublane tile (pad rows use token 0, sliced off below);
    # build the fwd/bwd-interleaved, time-major id layout with the doubled-vocab offset
    ids_p = jnp.zeros((BP, t_sz), jnp.int32).at[:b_sz].set(x_ids.astype(jnp.int32))
    fwd = jnp.transpose(ids_p)                  # (T, BP): row s = ids at time s
    bwd = fwd[::-1] + VP                        # row s = ids at time T-1-s, backward vocab block
    ids_tm = jnp.concatenate([fwd, bwd], axis=1).reshape(t_sz * 2 * BP, 1)

    vmem = pl.BlockSpec(memory_space=pltpu.MemorySpace.VMEM)
    out = pl.pallas_call(
        _make_kernel(t_sz, BP),
        out_shape=jax.ShapeDtypeStruct((t_sz * BP, LP), jnp.float32),
        in_specs=[vmem] * 5,
        out_specs=vmem,
    )(ids_tm, emb_wx, wh_stack, w_head_p, b_head_p)

    # (T*BP, LP) -> (B, T, L): tiny transpose + slice off pad rows / lanes in plain XLA
    return jnp.transpose(out.reshape(t_sz, BP, LP), (1, 0, 2))[:b_sz, :, :L]


# ---------------- parameter construction / padding ----------------

def init_params(key):
    """Logical-shape params (pre-transposed for x @ W; b = b_ih + b_hh; gate order i,f,g,o)."""
    ks = jax.random.split(key, 10)
    scale = 1.0 / np.sqrt(H)
    emb = jax.random.normal(ks[0], (V, E), jnp.float32)
    wx_f = jax.random.uniform(ks[1], (E, 4 * H), jnp.float32, -scale, scale)
    wh_f = jax.random.uniform(ks[2], (H, 4 * H), jnp.float32, -scale, scale)
    b_f = (jax.random.uniform(ks[3], (1, 4 * H), jnp.float32, -scale, scale)
           + jax.random.uniform(ks[4], (1, 4 * H), jnp.float32, -scale, scale))
    wx_b = jax.random.uniform(ks[5], (E, 4 * H), jnp.float32, -scale, scale)
    wh_b = jax.random.uniform(ks[6], (H, 4 * H), jnp.float32, -scale, scale)
    b_b = (jax.random.uniform(ks[7], (1, 4 * H), jnp.float32, -scale, scale)
           + jax.random.uniform(ks[8], (1, 4 * H), jnp.float32, -scale, scale))
    head_scale = 1.0 / np.sqrt(2 * H)
    w_head = jax.random.uniform(ks[9], (2 * H, L), jnp.float32, -head_scale, head_scale)
    b_head = jnp.zeros((1, L), jnp.float32)
    return (emb, wx_f, wh_f, b_f, wx_b, wh_b, b_b, w_head, b_head)


def _pad_gate_cols(w, h, hp):
    """(..., 4h) -> (..., 4hp): zero-pad each of the 4 gate blocks to hp columns."""
    blocks = []
    for g in range(4):
        blk = w[..., g * h:(g + 1) * h]
        blocks.append(blk)
        blocks.append(jnp.zeros(blk.shape[:-1] + (hp - h,), blk.dtype))
    return jnp.concatenate(blocks, axis=-1)


def _assert_pad_invariant(emb_wx, wh_stack, w_head_p, b_head_p):
    """Kernel relies on h/c pad lanes (H..HP-1) staying EXACTLY zero through the recurrence."""
    ew, wh = np.asarray(emb_wx), np.asarray(wh_stack)
    whd, bhd = np.asarray(w_head_p), np.asarray(b_head_p)
    for g in range(4):
        assert np.all(ew[:, g * HP + H:(g + 1) * HP] == 0.0)   # gate pads of x-proj (+bias)
        assert np.all(wh[:, g * HP + H:(g + 1) * HP] == 0.0)   # gate pads of Wh
    assert np.all(wh[H:HP, :] == 0.0) and np.all(wh[HP + H:, :] == 0.0)   # pad-lane rows of Wh
    assert np.all(ew[V:VP, :] == 0.0) and np.all(ew[VP + V:, :] == 0.0)   # pad-vocab rows
    assert np.all(whd[H:HP, :] == 0.0) and np.all(whd[HP + H:, :] == 0.0)  # head pad-lane rows
    assert np.all(whd[:, L:] == 0.0) and np.all(bhd[:, L:] == 0.0)         # head pad label cols


def pad_params(params):
    """Kernel layout: embedding folded into Wx (+bias), doubled-vocab; stacked Wh; bf16 MXU operands."""
    emb, wx_f, wh_f, b_f, wx_b, wh_b, b_b, w_head, b_head = params

    wx_f_p = _pad_gate_cols(wx_f, H, HP)              # (E, 4HP)
    wx_b_p = _pad_gate_cols(wx_b, H, HP)
    b_f_p = _pad_gate_cols(b_f, H, HP)                # (1, 4HP)
    b_b_p = _pad_gate_cols(b_b, H, HP)

    # emb @ Wx + b precomputed per vocab row; rows 0:V = forward, rows VP:VP+V = backward
    emb_wx = jnp.zeros((2 * VP, 4 * HP), jnp.float32)
    emb_wx = emb_wx.at[0:V].set(emb @ wx_f_p + b_f_p)
    emb_wx = emb_wx.at[VP:VP + V].set(emb @ wx_b_p + b_b_p)

    def pad_wh(wh):
        w = _pad_gate_cols(wh, H, HP)                                          # (H, 4HP)
        return jnp.concatenate([w, jnp.zeros((HP - H, 4 * HP), w.dtype)], 0)   # (HP, 4HP)

    wh_stack = jnp.concatenate([pad_wh(wh_f), pad_wh(wh_b)], axis=0)           # (2HP, 4HP)

    w_head_p = jnp.zeros((2 * HP, LP), jnp.float32)
    w_head_p = w_head_p.at[0:H, 0:L].set(w_head[0:H])                          # forward half
    w_head_p = w_head_p.at[HP:HP + H, 0:L].set(w_head[H:2 * H])                # backward half
    b_head_p = jnp.zeros((1, LP), jnp.float32).at[:, 0:L].set(b_head)

    _assert_pad_invariant(emb_wx, wh_stack, w_head_p, b_head_p)

    # bf16 MXU operands; accumulation stays f32 via preferred_element_type in the kernel
    return (emb_wx.astype(jnp.bfloat16), wh_stack.astype(jnp.bfloat16),
            w_head_p.astype(jnp.bfloat16), b_head_p)


# ---------------- pure-JAX reference (same math, unpadded, f32) ----------------

def bilstm_reference(x_ids, params):
    emb, wx_f, wh_f, b_f, wx_b, wh_b, b_b, w_head, b_head = params
    x = jnp.take(emb, x_ids, axis=0)                                      # (B, T, E)

    def run(x_bte, wx, wh, b):
        def step(carry, xt):
            h, c = carry
            gates = xt @ wx + h @ wh + b
            i = jax.nn.sigmoid(gates[:, 0:H])
            f = jax.nn.sigmoid(gates[:, H:2 * H])
            g = jnp.tanh(gates[:, 2 * H:3 * H])
            o = jax.nn.sigmoid(gates[:, 3 * H:4 * H])
            c2 = f * c + i * g
            h2 = o * jnp.tanh(c2)
            return (h2, c2), h2
        b_sz = x_bte.shape[0]
        init = (jnp.zeros((b_sz, H), jnp.float32), jnp.zeros((b_sz, H), jnp.float32))
        _, hs = jax.lax.scan(step, init, jnp.transpose(x_bte, (1, 0, 2)))
        return jnp.transpose(hs, (1, 0, 2))                               # (B, T, H)

    h_fwd = run(x, wx_f, wh_f, b_f)
    h_bwd = run(x[:, ::-1, :], wx_b, wh_b, b_b)[:, ::-1, :]
    h_cat = jnp.concatenate([h_fwd, h_bwd], axis=-1)                      # (B, T, 2H)
    logits = h_cat @ w_head + b_head                                      # (B, T, L)
    return jax.nn.softmax(logits, axis=1)                                 # softmax over dim=1


if __name__ == "__main__":
    key = jax.random.PRNGKey(0)
    k_params, k_ids = jax.random.split(key)
    params = init_params(k_params)
    padded = pad_params(params)
    x_ids = jax.random.randint(k_ids, (B, T), 0, V, dtype=jnp.int32)

    probs = jax.block_until_ready(bilstm_forward(x_ids, padded))

    assert probs.shape == (B, T, L), probs.shape
    probs_np = np.asarray(probs)
    assert np.isfinite(probs_np).all()

    # softmax over dim=1 (sequence axis) => sums along T are 1 (exact in-kernel divide)
    col_sums = probs_np.sum(axis=1)
    assert np.allclose(col_sums, 1.0, atol=1e-4), col_sums

    # end-to-end check against a pure-JAX f32 reference of the unpadded model
    # (tolerance accommodates bf16 MXU operands inside the kernel)
    ref = np.asarray(bilstm_reference(x_ids, params))
    assert np.allclose(probs_np, ref, atol=2e-2, rtol=2e-2), \
        float(np.abs(probs_np - ref).max())

    print("KERNEL_OK")
</pallas_src>

<mosaic_0001>
module attributes {stable_mosaic.version = 11 : i64} {
  func.func @kernel(%arg0: memref<128x1xi32, #tpu.memory_space<vmem>>, %arg1: memref<256x512xbf16, #tpu.memory_space<vmem>>, %arg2: memref<256x512xbf16, #tpu.memory_space<vmem>>, %arg3: memref<256x128xbf16, #tpu.memory_space<vmem>>, %arg4: memref<1x128xf32, #tpu.memory_space<vmem>>, %arg5: memref<64x128xf32, #tpu.memory_space<vmem>>) attributes {dimension_semantics = [], scalar_prefetch = 0 : i64, scratch_operands = 0 : i64, tpu.core_type = #tpu.core_type<tc>} {
    %c0 = arith.constant 0 : index
    %c0_0 = arith.constant 0 : index
    %0 = vector.load %arg0[%c0, %c0_0] : memref<128x1xi32, #tpu.memory_space<vmem>>, vector<128x1xi32>
    %1 = tpu.iota {dimensions = array<i32: 1>} : vector<128x256xi32>
    %2 = vector.broadcast %0 : vector<128x1xi32> to vector<128x256xi32>
    %3 = arith.cmpi eq, %2, %1 : vector<128x256xi32>
    %4 = arith.extui %3 : vector<128x256xi1> to vector<128x256xi32>
    %5 = arith.sitofp %4 : vector<128x256xi32> to vector<128x256xf32>
    %6 = arith.truncf %5 : vector<128x256xf32> to vector<128x256xbf16>
    %c0_1 = arith.constant 0 : index
    %c0_2 = arith.constant 0 : index
    %7 = vector.load %arg1[%c0_1, %c0_2] : memref<256x512xbf16, #tpu.memory_space<vmem>>, vector<256x512xbf16>
    %cst = arith.constant dense<0.000000e+00> : vector<128x512xf32>
    %8 = tpu.matmul %6, %7, %cst {dimension_numbers = #tpu.dot_dimension_numbers<[1], [0], [0], [1], [0, 0, 1, 1], [], []>} : vector<128x256xbf16>, vector<256x512xbf16>, vector<128x512xf32> -> vector<128x512xf32>
    %c0_3 = arith.constant 0 : index
    %c0_4 = arith.constant 0 : index
    %9 = vector.load %arg2[%c0_3, %c0_4] : memref<256x512xbf16, #tpu.memory_space<vmem>>, vector<256x512xbf16>
    %10 = tpu.iota {dimensions = array<i32: 0>} : vector<16x256xi32>
    %11 = tpu.iota {dimensions = array<i32: 1>} : vector<16x256xi32>
    %c8_i32 = arith.constant 8 : i32
    %12 = vector.broadcast %c8_i32 : i32 to vector<16x256xi32>
    %13 = arith.cmpi slt, %10, %12 : vector<16x256xi32>
    %c128_i32 = arith.constant 128 : i32
    %14 = vector.broadcast %c128_i32 : i32 to vector<16x256xi32>
    %15 = arith.cmpi slt, %11, %14 : vector<16x256xi32>
    %16 = arith.xori %13, %15 : vector<16x256xi1>
    %cst_5 = arith.constant dense<true> : vector<16x256xi1>
    %17 = arith.xori %16, %cst_5 : vector<16x256xi1>
    %18 = arith.extui %17 : vector<16x256xi1> to vector<16x256xi32>
    %19 = arith.sitofp %18 : vector<16x256xi32> to vector<16x256xf32>
    %cst_6 = arith.constant 0.000000e+00 : f32
    %20 = vector.broadcast %cst_6 : f32 to vector<16x256xf32>
    %cst_7 = arith.constant 0.000000e+00 : f32
    %21 = vector.broadcast %cst_7 : f32 to vector<16x128xf32>
    %22 = vector.extract_strided_slice %8 {offsets = [0, 0], sizes = [16, 512], strides = [1, 1]} : vector<128x512xf32> to vector<16x512xf32>
    %23 = arith.truncf %20 : vector<16x256xf32> to vector<16x256xbf16>
    %cst_8 = arith.constant dense<0.000000e+00> : vector<16x512xf32>
    %24 = tpu.matmul %23, %9, %cst_8 {dimension_numbers = #tpu.dot_dimension_numbers<[1], [0], [0], [1], [0, 0, 1, 1], [], []>} : vector<16x256xbf16>, vector<256x512xbf16>, vector<16x512xf32> -> vector<16x512xf32>
    %25 = arith.addf %22, %24 : vector<16x512xf32>
    %26 = vector.extract_strided_slice %25 {offsets = [0, 0], sizes = [16, 128], strides = [1, 1]} : vector<16x512xf32> to vector<16x128xf32>
    %27 = arith.negf %26 : vector<16x128xf32>
    %28 = math.exp %27 : vector<16x128xf32>
    %cst_9 = arith.constant 1.000000e+00 : f32
    %29 = vector.broadcast %cst_9 : f32 to vector<16x128xf32>
    %30 = arith.addf %29, %28 : vector<16x128xf32>
    %31 = arith.divf %29, %30 : vector<16x128xf32>
    %32 = vector.extract_strided_slice %25 {offsets = [0, 128], sizes = [16, 128], strides = [1, 1]} : vector<16x512xf32> to vector<16x128xf32>
    %33 = arith.negf %32 : vector<16x128xf32>
    %34 = math.exp %33 : vector<16x128xf32>
    %cst_10 = arith.constant 1.000000e+00 : f32
    %35 = vector.broadcast %cst_10 : f32 to vector<16x128xf32>
    %36 = arith.addf %35, %34 : vector<16x128xf32>
    %37 = arith.divf %35, %36 : vector<16x128xf32>
    %38 = vector.extract_strided_slice %25 {offsets = [0, 256], sizes = [16, 128], strides = [1, 1]} : vector<16x512xf32> to vector<16x128xf32>
    %39 = math.tanh %38 : vector<16x128xf32>
    %40 = vector.extract_strided_slice %25 {offsets = [0, 384], sizes = [16, 128], strides = [1, 1]} : vector<16x512xf32> to vector<16x128xf32>
    %41 = arith.negf %40 : vector<16x128xf32>
    %42 = math.exp %41 : vector<16x128xf32>
    %cst_11 = arith.constant 1.000000e+00 : f32
    %43 = vector.broadcast %cst_11 : f32 to vector<16x128xf32>
    %44 = arith.addf %43, %42 : vector<16x128xf32>
    %45 = arith.divf %43, %44 : vector<16x128xf32>
    %46 = arith.mulf %37, %21 : vector<16x128xf32>
    %47 = arith.mulf %31, %39 : vector<16x128xf32>
    %48 = arith.addf %46, %47 : vector<16x128xf32>
    %49 = math.tanh %48 : vector<16x128xf32>
    %50 = arith.mulf %45, %49 : vector<16x128xf32>
    %51 = tpu.concatenate %50, %50 in 1 : vector<16x128xf32>, vector<16x128xf32> -> vector<16x256xf32>
    %52 = arith.mulf %51, %19 : vector<16x256xf32>
    %53 = vector.extract_strided_slice %8 {offsets = [16, 0], sizes = [16, 512], strides = [1, 1]} : vector<128x512xf32> to vector<16x512xf32>
    %54 = arith.truncf %52 : vector<16x256xf32> to vector<16x256xbf16>
    %cst_12 = arith.constant dense<0.000000e+00> : vector<16x512xf32>
    %55 = tpu.matmul %54, %9, %cst_12 {dimension_numbers = #tpu.dot_dimension_numbers<[1], [0], [0], [1], [0, 0, 1, 1], [], []>} : vector<16x256xbf16>, vector<256x512xbf16>, vector<16x512xf32> -> vector<16x512xf32>
    %56 = arith.addf %53, %55 : vector<16x512xf32>
    %57 = vector.extract_strided_slice %56 {offsets = [0, 0], sizes = [16, 128], strides = [1, 1]} : vector<16x512xf32> to vector<16x128xf32>
    %58 = arith.negf %57 : vector<16x128xf32>
    %59 = math.exp %58 : vector<16x128xf32>
    %cst_13 = arith.constant 1.000000e+00 : f32
    %60 = vector.broadcast %cst_13 : f32 to vector<16x128xf32>
    %61 = arith.addf %60, %59 : vector<16x128xf32>
    %62 = arith.divf %60, %61 : vector<16x128xf32>
    %63 = vector.extract_strided_slice %56 {offsets = [0, 128], sizes = [16, 128], strides = [1, 1]} : vector<16x512xf32> to vector<16x128xf32>
    %64 = arith.negf %63 : vector<16x128xf32>
    %65 = math.exp %64 : vector<16x128xf32>
    %cst_14 = arith.constant 1.000000e+00 : f32
    %66 = vector.broadcast %cst_14 : f32 to vector<16x128xf32>
    %67 = arith.addf %66, %65 : vector<16x128xf32>
    %68 = arith.divf %66, %67 : vector<16x128xf32>
    %69 = vector.extract_strided_slice %56 {offsets = [0, 256], sizes = [16, 128], strides = [1, 1]} : vector<16x512xf32> to vector<16x128xf32>
    %70 = math.tanh %69 : vector<16x128xf32>
    %71 = vector.extract_strided_slice %56 {offsets = [0, 384], sizes = [16, 128], strides = [1, 1]} : vector<16x512xf32> to vector<16x128xf32>
    %72 = arith.negf %71 : vector<16x128xf32>
    %73 = math.exp %72 : vector<16x128xf32>
    %cst_15 = arith.constant 1.000000e+00 : f32
    %74 = vector.broadcast %cst_15 : f32 to vector<16x128xf32>
    %75 = arith.addf %74, %73 : vector<16x128xf32>
    %76 = arith.divf %74, %75 : vector<16x128xf32>
    %77 = arith.mulf %68, %48 : vector<16x128xf32>
    %78 = arith.mulf %62, %70 : vector<16x128xf32>
    %79 = arith.addf %77, %78 : vector<16x128xf32>
    %80 = math.tanh %79 : vector<16x128xf32>
    %81 = arith.mulf %76, %80 : vector<16x128xf32>
    %82 = tpu.concatenate %81, %81 in 1 : vector<16x128xf32>, vector<16x128xf32> -> vector<16x256xf32>
    %83 = arith.mulf %82, %19 : vector<16x256xf32>
    %84 = vector.extract_strided_slice %8 {offsets = [32, 0], sizes = [16, 512], strides = [1, 1]} : vector<128x512xf32> to vector<16x512xf32>
    %85 = arith.truncf %83 : vector<16x256xf32> to vector<16x256xbf16>
    %cst_16 = arith.constant dense<0.000000e+00> : vector<16x512xf32>
    %86 = tpu.matmul %85, %9, %cst_16 {dimension_numbers = #tpu.dot_dimension_numbers<[1], [0], [0], [1], [0, 0, 1, 1], [], []>} : vector<16x256xbf16>, vector<256x512xbf16>, vector<16x512xf32> -> vector<16x512xf32>
    %87 = arith.addf %84, %86 : vector<16x512xf32>
    %88 = vector.extract_strided_slice %87 {offsets = [0, 0], sizes = [16, 128], strides = [1, 1]} : vector<16x512xf32> to vector<16x128xf32>
    %89 = arith.negf %88 : vector<16x128xf32>
    %90 = math.exp %89 : vector<16x128xf32>
    %cst_17 = arith.constant 1.000000e+00 : f32
    %91 = vector.broadcast %cst_17 : f32 to vector<16x128xf32>
    %92 = arith.addf %91, %90 : vector<16x128xf32>
    %93 = arith.divf %91, %92 : vector<16x128xf32>
    %94 = vector.extract_strided_slice %87 {offsets = [0, 128], sizes = [16, 128], strides = [1, 1]} : vector<16x512xf32> to vector<16x128xf32>
    %95 = arith.negf %94 : vector<16x128xf32>
    %96 = math.exp %95 : vector<16x128xf32>
    %cst_18 = arith.constant 1.000000e+00 : f32
    %97 = vector.broadcast %cst_18 : f32 to vector<16x128xf32>
    %98 = arith.addf %97, %96 : vector<16x128xf32>
    %99 = arith.divf %97, %98 : vector<16x128xf32>
    %100 = vector.extract_strided_slice %87 {offsets = [0, 256], sizes = [16, 128], strides = [1, 1]} : vector<16x512xf32> to vector<16x128xf32>
    %101 = math.tanh %100 : vector<16x128xf32>
    %102 = vector.extract_strided_slice %87 {offsets = [0, 384], sizes = [16, 128], strides = [1, 1]} : vector<16x512xf32> to vector<16x128xf32>
    %103 = arith.negf %102 : vector<16x128xf32>
    %104 = math.exp %103 : vector<16x128xf32>
    %cst_19 = arith.constant 1.000000e+00 : f32
    %105 = vector.broadcast %cst_19 : f32 to vector<16x128xf32>
    %106 = arith.addf %105, %104 : vector<16x128xf32>
    %107 = arith.divf %105, %106 : vector<16x128xf32>
    %108 = arith.mulf %99, %79 : vector<16x128xf32>
    %109 = arith.mulf %93, %101 : vector<16x128xf32>
    %110 = arith.addf %108, %109 : vector<16x128xf32>
    %111 = math.tanh %110 : vector<16x128xf32>
    %112 = arith.mulf %107, %111 : vector<16x128xf32>
    %113 = tpu.concatenate %112, %112 in 1 : vector<16x128xf32>, vector<16x128xf32> -> vector<16x256xf32>
    %114 = arith.mulf %113, %19 : vector<16x256xf32>
    %115 = vector.extract_strided_slice %8 {offsets = [48, 0], sizes = [16, 512], strides = [1, 1]} : vector<128x512xf32> to vector<16x512xf32>
    %116 = arith.truncf %114 : vector<16x256xf32> to vector<16x256xbf16>
    %cst_20 = arith.constant dense<0.000000e+00> : vector<16x512xf32>
    %117 = tpu.matmul %116, %9, %cst_20 {dimension_numbers = #tpu.dot_dimension_numbers<[1], [0], [0], [1], [0, 0, 1, 1], [], []>} : vector<16x256xbf16>, vector<256x512xbf16>, vector<16x512xf32> -> vector<16x512xf32>
    %118 = arith.addf %115, %117 : vector<16x512xf32>
    %119 = vector.extract_strided_slice %118 {offsets = [0, 0], sizes = [16, 128], strides = [1, 1]} : vector<16x512xf32> to vector<16x128xf32>
    %120 = arith.negf %119 : vector<16x128xf32>
    %121 = math.exp %120 : vector<16x128xf32>
    %cst_21 = arith.constant 1.000000e+00 : f32
    %122 = vector.broadcast %cst_21 : f32 to vector<16x128xf32>
    %123 = arith.addf %122, %121 : vector<16x128xf32>
    %124 = arith.divf %122, %123 : vector<16x128xf32>
    %125 = vector.extract_strided_slice %118 {offsets = [0, 128], sizes = [16, 128], strides = [1, 1]} : vector<16x512xf32> to vector<16x128xf32>
    %126 = arith.negf %125 : vector<16x128xf32>
    %127 = math.exp %126 : vector<16x128xf32>
    %cst_22 = arith.constant 1.000000e+00 : f32
    %128 = vector.broadcast %cst_22 : f32 to vector<16x128xf32>
    %129 = arith.addf %128, %127 : vector<16x128xf32>
    %130 = arith.divf %128, %129 : vector<16x128xf32>
    %131 = vector.extract_strided_slice %118 {offsets = [0, 256], sizes = [16, 128], strides = [1, 1]} : vector<16x512xf32> to vector<16x128xf32>
    %132 = math.tanh %131 : vector<16x128xf32>
    %133 = vector.extract_strided_slice %118 {offsets = [0, 384], sizes = [16, 128], strides = [1, 1]} : vector<16x512xf32> to vector<16x128xf32>
    %134 = arith.negf %133 : vector<16x128xf32>
    %135 = math.exp %134 : vector<16x128xf32>
    %cst_23 = arith.constant 1.000000e+00 : f32
    %136 = vector.broadcast %cst_23 : f32 to vector<16x128xf32>
    %137 = arith.addf %136, %135 : vector<16x128xf32>
    %138 = arith.divf %136, %137 : vector<16x128xf32>
    %139 = arith.mulf %130, %110 : vector<16x128xf32>
    %140 = arith.mulf %124, %132 : vector<16x128xf32>
    %141 = arith.addf %139, %140 : vector<16x128xf32>
    %142 = math.tanh %141 : vector<16x128xf32>
    %143 = arith.mulf %138, %142 : vector<16x128xf32>
    %144 = tpu.concatenate %143, %143 in 1 : vector<16x128xf32>, vector<16x128xf32> -> vector<16x256xf32>
    %145 = arith.mulf %144, %19 : vector<16x256xf32>
    %146 = vector.extract_strided_slice %8 {offsets = [64, 0], sizes = [16, 512], strides = [1, 1]} : vector<128x512xf32> to vector<16x512xf32>
    %147 = arith.truncf %145 : vector<16x256xf32> to vector<16x256xbf16>
    %cst_24 = arith.constant dense<0.000000e+00> : vector<16x512xf32>
    %148 = tpu.matmul %147, %9, %cst_24 {dimension_numbers = #tpu.dot_dimension_numbers<[1], [0], [0], [1], [0, 0, 1, 1], [], []>} : vector<16x256xbf16>, vector<256x512xbf16>, vector<16x512xf32> -> vector<16x512xf32>
    %149 = arith.addf %146, %148 : vector<16x512xf32>
    %150 = vector.extract_strided_slice %149 {offsets = [0, 0], sizes = [16, 128], strides = [1, 1]} : vector<16x512xf32> to vector<16x128xf32>
    %151 = arith.negf %150 : vector<16x128xf32>
    %152 = math.exp %151 : vector<16x128xf32>
    %cst_25 = arith.constant 1.000000e+00 : f32
    %153 = vector.broadcast %cst_25 : f32 to vector<16x128xf32>
    %154 = arith.addf %153, %152 : vector<16x128xf32>
    %155 = arith.divf %153, %154 : vector<16x128xf32>
    %156 = vector.extract_strided_slice %149 {offsets = [0, 128], sizes = [16, 128], strides = [1, 1]} : vector<16x512xf32> to vector<16x128xf32>
    %157 = arith.negf %156 : vector<16x128xf32>
    %158 = math.exp %157 : vector<16x128xf32>
    %cst_26 = arith.constant 1.000000e+00 : f32
    %159 = vector.broadcast %cst_26 : f32 to vector<16x128xf32>
    %160 = arith.addf %159, %158 : vector<16x128xf32>
    %161 = arith.divf %159, %160 : vector<16x128xf32>
    %162 = vector.extract_strided_slice %149 {offsets = [0, 256], sizes = [16, 128], strides = [1, 1]} : vector<16x512xf32> to vector<16x128xf32>
    %163 = math.tanh %162 : vector<16x128xf32>
    %164 = vector.extract_strided_slice %149 {offsets = [0, 384], sizes = [16, 128], strides = [1, 1]} : vector<16x512xf32> to vector<16x128xf32>
    %165 = arith.negf %164 : vector<16x128xf32>
    %166 = math.exp %165 : vector<16x128xf32>
    %cst_27 = arith.constant 1.000000e+00 : f32
    %167 = vector.broadcast %cst_27 : f32 to vector<16x128xf32>
    %168 = arith.addf %167, %166 : vector<16x128xf32>
    %169 = arith.divf %167, %168 : vector<16x128xf32>
    %170 = arith.mulf %161, %141 : vector<16x128xf32>
    %171 = arith.mulf %155, %163 : vector<16x128xf32>
    %172 = arith.addf %170, %171 : vector<16x128xf32>
    %173 = math.tanh %172 : vector<16x128xf32>
    %174 = arith.mulf %169, %173 : vector<16x128xf32>
    %175 = tpu.concatenate %174, %174 in 1 : vector<16x128xf32>, vector<16x128xf32> -> vector<16x256xf32>
    %176 = arith.mulf %175, %19 : vector<16x256xf32>
    %177 = vector.extract_strided_slice %8 {offsets = [80, 0], sizes = [16, 512], strides = [1, 1]} : vector<128x512xf32> to vector<16x512xf32>
    %178 = arith.truncf %176 : vector<16x256xf32> to vector<16x256xbf16>
    %cst_28 = arith.constant dense<0.000000e+00> : vector<16x512xf32>
    %179 = tpu.matmul %178, %9, %cst_28 {dimension_numbers = #tpu.dot_dimension_numbers<[1], [0], [0], [1], [0, 0, 1, 1], [], []>} : vector<16x256xbf16>, vector<256x512xbf16>, vector<16x512xf32> -> vector<16x512xf32>
    %180 = arith.addf %177, %179 : vector<16x512xf32>
    %181 = vector.extract_strided_slice %180 {offsets = [0, 0], sizes = [16, 128], strides = [1, 1]} : vector<16x512xf32> to vector<16x128xf32>
    %182 = arith.negf %181 : vector<16x128xf32>
    %183 = math.exp %182 : vector<16x128xf32>
    %cst_29 = arith.constant 1.000000e+00 : f32
    %184 = vector.broadcast %cst_29 : f32 to vector<16x128xf32>
    %185 = arith.addf %184, %183 : vector<16x128xf32>
    %186 = arith.divf %184, %185 : vector<16x128xf32>
    %187 = vector.extract_strided_slice %180 {offsets = [0, 128], sizes = [16, 128], strides = [1, 1]} : vector<16x512xf32> to vector<16x128xf32>
    %188 = arith.negf %187 : vector<16x128xf32>
    %189 = math.exp %188 : vector<16x128xf32>
    %cst_30 = arith.constant 1.000000e+00 : f32
    %190 = vector.broadcast %cst_30 : f32 to vector<16x128xf32>
    %191 = arith.addf %190, %189 : vector<16x128xf32>
    %192 = arith.divf %190, %191 : vector<16x128xf32>
    %193 = vector.extract_strided_slice %180 {offsets = [0, 256], sizes = [16, 128], strides = [1, 1]} : vector<16x512xf32> to vector<16x128xf32>
    %194 = math.tanh %193 : vector<16x128xf32>
    %195 = vector.extract_strided_slice %180 {offsets = [0, 384], sizes = [16, 128], strides = [1, 1]} : vector<16x512xf32> to vector<16x128xf32>
    %196 = arith.negf %195 : vector<16x128xf32>
    %197 = math.exp %196 : vector<16x128xf32>
    %cst_31 = arith.constant 1.000000e+00 : f32
    %198 = vector.broadcast %cst_31 : f32 to vector<16x128xf32>
    %199 = arith.addf %198, %197 : vector<16x128xf32>
    %200 = arith.divf %198, %199 : vector<16x128xf32>
    %201 = arith.mulf %192, %172 : vector<16x128xf32>
    %202 = arith.mulf %186, %194 : vector<16x128xf32>
    %203 = arith.addf %201, %202 : vector<16x128xf32>
    %204 = math.tanh %203 : vector<16x128xf32>
    %205 = arith.mulf %200, %204 : vector<16x128xf32>
    %206 = tpu.concatenate %205, %205 in 1 : vector<16x128xf32>, vector<16x128xf32> -> vector<16x256xf32>
    %207 = arith.mulf %206, %19 : vector<16x256xf32>
    %208 = vector.extract_strided_slice %8 {offsets = [96, 0], sizes = [16, 512], strides = [1, 1]} : vector<128x512xf32> to vector<16x512xf32>
    %209 = arith.truncf %207 : vector<16x256xf32> to vector<16x256xbf16>
    %cst_32 = arith.constant dense<0.000000e+00> : vector<16x512xf32>
    %210 = tpu.matmul %209, %9, %cst_32 {dimension_numbers = #tpu.dot_dimension_numbers<[1], [0], [0], [1], [0, 0, 1, 1], [], []>} : vector<16x256xbf16>, vector<256x512xbf16>, vector<16x512xf32> -> vector<16x512xf32>
    %211 = arith.addf %208, %210 : vector<16x512xf32>
    %212 = vector.extract_strided_slice %211 {offsets = [0, 0], sizes = [16, 128], strides = [1, 1]} : vector<16x512xf32> to vector<16x128xf32>
    %213 = arith.negf %212 : vector<16x128xf32>
    %214 = math.exp %213 : vector<16x128xf32>
    %cst_33 = arith.constant 1.000000e+00 : f32
    %215 = vector.broadcast %cst_33 : f32 to vector<16x128xf32>
    %216 = arith.addf %215, %214 : vector<16x128xf32>
    %217 = arith.divf %215, %216 : vector<16x128xf32>
    %218 = vector.extract_strided_slice %211 {offsets = [0, 128], sizes = [16, 128], strides = [1, 1]} : vector<16x512xf32> to vector<16x128xf32>
    %219 = arith.negf %218 : vector<16x128xf32>
    %220 = math.exp %219 : vector<16x128xf32>
    %cst_34 = arith.constant 1.000000e+00 : f32
    %221 = vector.broadcast %cst_34 : f32 to vector<16x128xf32>
    %222 = arith.addf %221, %220 : vector<16x128xf32>
    %223 = arith.divf %221, %222 : vector<16x128xf32>
    %224 = vector.extract_strided_slice %211 {offsets = [0, 256], sizes = [16, 128], strides = [1, 1]} : vector<16x512xf32> to vector<16x128xf32>
    %225 = math.tanh %224 : vector<16x128xf32>
    %226 = vector.extract_strided_slice %211 {offsets = [0, 384], sizes = [16, 128], strides = [1, 1]} : vector<16x512xf32> to vector<16x128xf32>
    %227 = arith.negf %226 : vector<16x128xf32>
    %228 = math.exp %227 : vector<16x128xf32>
    %cst_35 = arith.constant 1.000000e+00 : f32
    %229 = vector.broadcast %cst_35 : f32 to vector<16x128xf32>
    %230 = arith.addf %229, %228 : vector<16x128xf32>
    %231 = arith.divf %229, %230 : vector<16x128xf32>
    %232 = arith.mulf %223, %203 : vector<16x128xf32>
    %233 = arith.mulf %217, %225 : vector<16x128xf32>
    %234 = arith.addf %232, %233 : vector<16x128xf32>
    %235 = math.tanh %234 : vector<16x128xf32>
    %236 = arith.mulf %231, %235 : vector<16x128xf32>
    %237 = tpu.concatenate %236, %236 in 1 : vector<16x128xf32>, vector<16x128xf32> -> vector<16x256xf32>
    %238 = arith.mulf %237, %19 : vector<16x256xf32>
    %239 = vector.extract_strided_slice %8 {offsets = [112, 0], sizes = [16, 512], strides = [1, 1]} : vector<128x512xf32> to vector<16x512xf32>
    %240 = arith.truncf %238 : vector<16x256xf32> to vector<16x256xbf16>
    %cst_36 = arith.constant dense<0.000000e+00> : vector<16x512xf32>
    %241 = tpu.matmul %240, %9, %cst_36 {dimension_numbers = #tpu.dot_dimension_numbers<[1], [0], [0], [1], [0, 0, 1, 1], [], []>} : vector<16x256xbf16>, vector<256x512xbf16>, vector<16x512xf32> -> vector<16x512xf32>
    %242 = arith.addf %239, %241 : vector<16x512xf32>
    %243 = vector.extract_strided_slice %242 {offsets = [0, 0], sizes = [16, 128], strides = [1, 1]} : vector<16x512xf32> to vector<16x128xf32>
    %244 = arith.negf %243 : vector<16x128xf32>
    %245 = math.exp %244 : vector<16x128xf32>
    %cst_37 = arith.constant 1.000000e+00 : f32
    %246 = vector.broadcast %cst_37 : f32 to vector<16x128xf32>
    %247 = arith.addf %246, %245 : vector<16x128xf32>
    %248 = arith.divf %246, %247 : vector<16x128xf32>
    %249 = vector.extract_strided_slice %242 {offsets = [0, 128], sizes = [16, 128], strides = [1, 1]} : vector<16x512xf32> to vector<16x128xf32>
    %250 = arith.negf %249 : vector<16x128xf32>
    %251 = math.exp %250 : vector<16x128xf32>
    %cst_38 = arith.constant 1.000000e+00 : f32
    %252 = vector.broadcast %cst_38 : f32 to vector<16x128xf32>
    %253 = arith.addf %252, %251 : vector<16x128xf32>
    %254 = arith.divf %252, %253 : vector<16x128xf32>
    %255 = vector.extract_strided_slice %242 {offsets = [0, 256], sizes = [16, 128], strides = [1, 1]} : vector<16x512xf32> to vector<16x128xf32>
    %256 = math.tanh %255 : vector<16x128xf32>
    %257 = vector.extract_strided_slice %242 {offsets = [0, 384], sizes = [16, 128], strides = [1, 1]} : vector<16x512xf32> to vector<16x128xf32>
    %258 = arith.negf %257 : vector<16x128xf32>
    %259 = math.exp %258 : vector<16x128xf32>
    %cst_39 = arith.constant 1.000000e+00 : f32
    %260 = vector.broadcast %cst_39 : f32 to vector<16x128xf32>
    %261 = arith.addf %260, %259 : vector<16x128xf32>
    %262 = arith.divf %260, %261 : vector<16x128xf32>
    %263 = arith.mulf %254, %234 : vector<16x128xf32>
    %264 = arith.mulf %248, %256 : vector<16x128xf32>
    %265 = arith.addf %263, %264 : vector<16x128xf32>
    %266 = math.tanh %265 : vector<16x128xf32>
    %267 = arith.mulf %262, %266 : vector<16x128xf32>
    %268 = tpu.concatenate %267, %267 in 1 : vector<16x128xf32>, vector<16x128xf32> -> vector<16x256xf32>
    %269 = arith.mulf %268, %19 : vector<16x256xf32>
    %270 = vector.extract_strided_slice %52 {offsets = [0, 0], sizes = [8, 256], strides = [1, 1]} : vector<16x256xf32> to vector<8x256xf32>
    %271 = vector.extract_strided_slice %269 {offsets = [8, 0], sizes = [8, 256], strides = [1, 1]} : vector<16x256xf32> to vector<8x256xf32>
    %272 = arith.addf %270, %271 : vector<8x256xf32>
    %273 = vector.extract_strided_slice %83 {offsets = [0, 0], sizes = [8, 256], strides = [1, 1]} : vector<16x256xf32> to vector<8x256xf32>
    %274 = vector.extract_strided_slice %238 {offsets = [8, 0], sizes = [8, 256], strides = [1, 1]} : vector<16x256xf32> to vector<8x256xf32>
    %275 = arith.addf %273, %274 : vector<8x256xf32>
    %276 = vector.extract_strided_slice %114 {offsets = [0, 0], sizes = [8, 256], strides = [1, 1]} : vector<16x256xf32> to vector<8x256xf32>
    %277 = vector.extract_strided_slice %207 {offsets = [8, 0], sizes = [8, 256], strides = [1, 1]} : vector<16x256xf32> to vector<8x256xf32>
    %278 = arith.addf %276, %277 : vector<8x256xf32>
    %279 = vector.extract_strided_slice %145 {offsets = [0, 0], sizes = [8, 256], strides = [1, 1]} : vector<16x256xf32> to vector<8x256xf32>
    %280 = vector.extract_strided_slice %176 {offsets = [8, 0], sizes = [8, 256], strides = [1, 1]} : vector<16x256xf32> to vector<8x256xf32>
    %281 = arith.addf %279, %280 : vector<8x256xf32>
    %282 = vector.extract_strided_slice %176 {offsets = [0, 0], sizes = [8, 256], strides = [1, 1]} : vector<16x256xf32> to vector<8x256xf32>
    %283 = vector.extract_strided_slice %145 {offsets = [8, 0], sizes = [8, 256], strides = [1, 1]} : vector<16x256xf32> to vector<8x256xf32>
    %284 = arith.addf %282, %283 : vector<8x256xf32>
    %285 = vector.extract_strided_slice %207 {offsets = [0, 0], sizes = [8, 256], strides = [1, 1]} : vector<16x256xf32> to vector<8x256xf32>
    %286 = vector.extract_strided_slice %114 {offsets = [8, 0], sizes = [8, 256], strides = [1, 1]} : vector<16x256xf32> to vector<8x256xf32>
    %287 = arith.addf %285, %286 : vector<8x256xf32>
    %288 = vector.extract_strided_slice %238 {offsets = [0, 0], sizes = [8, 256], strides = [1, 1]} : vector<16x256xf32> to vector<8x256xf32>
    %289 = vector.extract_strided_slice %83 {offsets = [8, 0], sizes = [8, 256], strides = [1, 1]} : vector<16x256xf32> to vector<8x256xf32>
    %290 = arith.addf %288, %289 : vector<8x256xf32>
    %291 = vector.extract_strided_slice %269 {offsets = [0, 0], sizes = [8, 256], strides = [1, 1]} : vector<16x256xf32> to vector<8x256xf32>
    %292 = vector.extract_strided_slice %52 {offsets = [8, 0], sizes = [8, 256], strides = [1, 1]} : vector<16x256xf32> to vector<8x256xf32>
    %293 = arith.addf %291, %292 : vector<8x256xf32>
    %294 = tpu.concatenate %272, %275, %278, %281, %284, %287, %290, %293 in 0 : vector<8x256xf32>, vector<8x256xf32>, vector<8x256xf32>, vector<8x256xf32>, vector<8x256xf32>, vector<8x256xf32>, vector<8x256xf32>, vector<8x256xf32> -> vector<64x256xf32>
    %295 = arith.truncf %294 : vector<64x256xf32> to vector<64x256xbf16>
    %c0_40 = arith.constant 0 : index
    %c0_41 = arith.constant 0 : index
    %296 = vector.load %arg3[%c0_40, %c0_41] : memref<256x128xbf16, #tpu.memory_space<vmem>>, vector<256x128xbf16>
    %cst_42 = arith.constant dense<0.000000e+00> : vector<64x128xf32>
    %297 = tpu.matmul %295, %296, %cst_42 {dimension_numbers = #tpu.dot_dimension_numbers<[1], [0], [0], [1], [0, 0, 1, 1], [], []>} : vector<64x256xbf16>, vector<256x128xbf16>, vector<64x128xf32> -> vector<64x128xf32>
    %c0_43 = arith.constant 0 : index
    %c0_44 = arith.constant 0 : index
    %298 = vector.load %arg4[%c0_43, %c0_44] : memref<1x128xf32, #tpu.memory_space<vmem>>, vector<1x128xf32>
    %299 = vector.broadcast %298 : vector<1x128xf32> to vector<64x128xf32>
    %300 = arith.addf %297, %299 : vector<64x128xf32>
    %301 = vector.shape_cast %300 : vector<64x128xf32> to vector<8x8x128xf32>
    %cst_45 = arith.constant dense<0xFF800000> : vector<8x128xf32>
    %302 = vector.multi_reduction <maximumf>, %301, %cst_45 [0] : vector<8x8x128xf32> to vector<8x128xf32>
    %303 = vector.shape_cast %302 : vector<8x128xf32> to vector<1x8x128xf32>
    %304 = vector.broadcast %303 : vector<1x8x128xf32> to vector<8x8x128xf32>
    %305 = arith.subf %301, %304 : vector<8x8x128xf32>
    %306 = math.exp %305 : vector<8x8x128xf32>
    %cst_46 = arith.constant dense<0.000000e+00> : vector<8x128xf32>
    %307 = vector.multi_reduction <add>, %306, %cst_46 [0] : vector<8x8x128xf32> to vector<8x128xf32>
    %308 = vector.shape_cast %307 : vector<8x128xf32> to vector<1x8x128xf32>
    %309 = vector.broadcast %308 : vector<1x8x128xf32> to vector<8x8x128xf32>
    %310 = arith.divf %306, %309 : vector<8x8x128xf32>
    %311 = vector.shape_cast %310 : vector<8x8x128xf32> to vector<64x128xf32>
    %c0_47 = arith.constant 0 : index
    %c0_48 = arith.constant 0 : index
    %312 = vector.load %arg5[%c0_47, %c0_48] : memref<64x128xf32, #tpu.memory_space<vmem>>, vector<64x128xf32>
    tpu.vector_store %arg5[%c0_47, %c0_48], %311 {strides = array<i32>} : memref<64x128xf32, #tpu.memory_space<vmem>>, vector<64x128xf32>,
    return
  }
}

</mosaic_0001>

<bundles_post_ra>
// kernel: bilstm_forward.1
= control target key start
LH: loop header
LB: loop body
LE: loop exit
PB: predicated region body
PF: predicated region fallthrough
CT: control target
= control target key end

     0   :  { %10 = vsyncpa [#allocation3], 0  ;;  %s5055_s0 = inlined_call_operand.vmem [shape: s32[128,1], index: 0, kind: input, shape index: {}]   ;;  %s5056_s1 = inlined_call_operand.hbm [shape: bf16[256,512], index: 1, kind: input, shape index: {}]   ;;  %s5057_s2 = inlined_call_operand.hbm [shape: bf16[256,512], index: 2, kind: input, shape index: {}]   ;;  %s5058_s3 = inlined_call_operand.vmem [shape: bf16[256,128], index: 3, kind: input, shape index: {}]   ;;  %s5059_s4 = inlined_call_operand.vmem [shape: f32[1,128], index: 4, kind: input, shape index: {}]   ;;  %s5060_s5 = inlined_call_operand.vmem [shape: f32[64,128], index: 5, kind: output, shape index: {}]  }
   0x1   :  { %11 = vsyncpa [#allocation5], 0  ;;  %s3677_s18 = smov [#allocation2]  }
   0x2   :  { %s19_s19 = sshll.u32 %s3677_s18, 4  ;;  %s20_s19 = int_to_ptr.vmem [resolvable:$true] %s19_s19 }
   0x3   :  { %s3641_s20 = scalar_lea.vmem %s20_s19, 8192  ;;  %p3646_p1 = scmp.lt.s32.totalorder %s20_s19, %s20_s19 }
   0x4   :  { %p3642_p0 = scmp.ne.s32.totalorder %s20_s19, %s3641_s20  ;;  %p3647_p2 = scmp.lt.s32.totalorder %s3641_s20, %s3641_s20 }
   0x6   :  { %p3648_p3 = por %p3647_p2, %p3646_p1 }
   0x8   :  { %p3649_p4 = pnand %p3648_p3, %p3642_p0 }
   0xa   :  { %3652 = shalt.err (!%p3649_p4)
}
   0xb   :  { %s3678_s21 = smov 256   ;;  %s3679_s22 = smov 16  }
   0xc   :  { %25 = dma.hbm_to_vmem [thread:$0]  %s5056_s1, 8192, %s20_s19, [#allocation3], %s3678_s21, %s3678_s21, %s3679_s22  }
   0xd   :  { %s3680_s25 = smov [#allocation4]  }
   0xe   :  { %s31_s26 = sshll.u32 %s3680_s25, 4  ;;  %s32_s26 = int_to_ptr.vmem [resolvable:$true] %s31_s26 }
   0xf   :  { %s3661_s27 = scalar_lea.vmem %s32_s26, 8192  ;;  %p3666_p6 = scmp.lt.s32.totalorder %s32_s26, %s32_s26 }
  0x10   :  { %p3662_p5 = scmp.ne.s32.totalorder %s32_s26, %s3661_s27  ;;  %p3667_p7 = scmp.lt.s32.totalorder %s3661_s27, %s3661_s27 }
  0x12   :  { %p3668_p8 = por %p3667_p7, %p3666_p6 }
  0x14   :  { %p3669_p9 = pnand %p3668_p8, %p3662_p5 }
  0x16   :  { %3672 = shalt.err (!%p3669_p9)
}
  0x17   :  { %37 = dma.hbm_to_vmem [thread:$0]  %s5057_s2, 8192, %s32_s26, [#allocation5], %s3678_s21, %s3678_s21, %s3679_s22  }
  0x18   :  { %3673 = dma.done.wait [#allocation3], 8192  }
  0x19   :  { %3674 = vsyncadd [#allocation3], 4294959104 }
  0x1a   :  { %3675 = dma.done.wait [#allocation5], 8192  }
  0x1b   :  { %3676 = vsyncadd [#allocation5], 4294959104  ;;  %v5061_v0 = vmov 0   ;;  %v51_v1 = vld [vmem:[%s5055_s0 + $0x10] sm:$0xff]  ;;  %v49_v2 = vld [vmem:[%s5055_s0] sm:$0xff] }
  0x1c   :  { %3064 = vset.pattern.permute.xlu1 %v5061_v0  ;;  %3063 = vset.pattern.permute.xlu0 %v5061_v0  ;;  %v52_v3 = vld [vmem:[%s5055_s0 + $0x18] sm:$0xff]  ;;  %v50_v4 = vld [vmem:[%s5055_s0 + $0x8] sm:$0xff]  ;;  %v53_v6 = vld [vmem:[%s5055_s0 + $0x20] sm:$0xff] }
  0x1d   :  { %75 = vperm.xlu1 %3064, %v51_v1   ;;  %69 = vperm.xlu0 %3063, %v49_v2   ;;  %v54_v5 = vld [vmem:[%s5055_s0 + $0x28] sm:$0xff]  ;;  %v3065_v7 = vld [vmem:[#allocation2 + $0xe4] ss:$16 sps:$4 sm:$0xff]   ;;  %v3067_v8 = vld [vmem:[#allocation2 + $0xe0] ss:$16 sps:$4 sm:$0xff]  }
  0x1e   :  { %v3068_v9 = vld [vmem:[#allocation2 + $0xec] ss:$16 sps:$4 sm:$0xff]   ;;  %v3070_v10 = vld [vmem:[#allocation2 + $0xe8] ss:$16 sps:$4 sm:$0xff]   ;;  %612 = vmatprep.subr.bf16.mxu0 %v3065_v7  ;;  %v3071_v12 = vld [vmem:[#allocation2 + $0xc4] ss:$16 sps:$4 sm:$0xff]  }
  0x1f   :  { %v56_v11 = vld [vmem:[%s5055_s0 + $0x38] sm:$0xff]  ;;  %v55_v13 = vld [vmem:[%s5055_s0 + $0x30] sm:$0xff]  ;;  %613 = vmatpush1.bf16.msra.mxu0 %v3067_v8  ;;  %725 = vmatprep.subr.bf16.mxu1 %v3068_v9  ;;  %v58_v19 = vld [vmem:[%s5055_s0 + $0x48] sm:$0xff] }
  0x20   :  { %v3073_v14 = vld [vmem:[#allocation2 + $0xc0] ss:$16 sps:$4 sm:$0xff]   ;;  %v3074_v15 = vld [vmem:[#allocation2 + $0xcc] ss:$16 sps:$4 sm:$0xff]   ;;  %726 = vmatpush1.bf16.msra.mxu1 %v3070_v10  ;;  %614 = vmatprep.subr.bf16.mxu0 %v3071_v12  ;;  %v3076_v16 = vld [vmem:[#allocation2 + $0xc8] ss:$16 sps:$4 sm:$0xff]  }
  0x21   :  { %78 = vperm.xlu1 %3064, %v52_v3   ;;  %72 = vperm.xlu0 %3063, %v50_v4   ;;  %v3077_v17 = vld [vmem:[#allocation2 + $0xa4] ss:$16 sps:$4 sm:$0xff]   ;;  %v3080_v18 = vld [vmem:[#allocation2 + $0xac] ss:$16 sps:$4 sm:$0xff]   ;;  %v3079_v21 = vld [vmem:[#allocation2 + $0xa0] ss:$16 sps:$4 sm:$0xff]  }
  0x22   :  { %727 = vmatprep.subr.bf16.mxu1 %v3074_v15  ;;  %v57_v20 = vld [vmem:[%s5055_s0 + $0x40] sm:$0xff]  ;;  %v3082_v22 = vld [vmem:[#allocation2 + $0xa8] ss:$16 sps:$4 sm:$0xff]   ;;  %v3086_v24 = vld [vmem:[#allocation2 + $0x8c] ss:$16 sps:$4 sm:$0xff]  }
  0x23   :  { %615 = vmatpush1.bf16.msra.mxu0 %v3073_v14  ;;  %v3083_v23 = vld [vmem:[#allocation2 + $0x84] ss:$16 sps:$4 sm:$0xff]   ;;  %v60_v25 = vld [vmem:[%s5055_s0 + $0x58] sm:$0xff]  ;;  %v3085_v27 = vld [vmem:[#allocation2 + $0x80] ss:$16 sps:$4 sm:$0xff]  }
  0x24   :  { %728 = vmatpush1.bf16.msra.mxu1 %v3076_v16  ;;  %616 = vmatprep.subr.bf16.mxu0 %v3077_v17  ;;  %v59_v26 = vld [vmem:[%s5055_s0 + $0x50] sm:$0xff]  ;;  %v3088_v28 = vld [vmem:[#allocation2 + $0x88] ss:$16 sps:$4 sm:$0xff]   ;;  %v3092_v30 = vld [vmem:[#allocation2 + $0x6c] ss:$16 sps:$4 sm:$0xff]  }
  0x25   :  { %84 = vperm.xlu1 %3064, %v54_v5   ;;  %81 = vperm.xlu0 %3063, %v53_v6   ;;  %v3089_v29 = vld [vmem:[#allocation2 + $0x64] ss:$16 sps:$4 sm:$0xff]   ;;  %v62_v31 = vld [vmem:[%s5055_s0 + $0x68] sm:$0xff]  ;;  %v3091_v33 = vld [vmem:[#allocation2 + $0x60] ss:$16 sps:$4 sm:$0xff]  }
  0x26   :  { %729 = vmatprep.subr.bf16.mxu1 %v3080_v18  ;;  %v61_v32 = vld [vmem:[%s5055_s0 + $0x60] sm:$0xff]  ;;  %v3094_v34 = vld [vmem:[#allocation2 + $0x68] ss:$16 sps:$4 sm:$0xff]   ;;  %v3098_v36 = vld [vmem:[#allocation2 + $0x4c] ss:$16 sps:$4 sm:$0xff]  }
  0x27   :  { %617 = vmatpush1.bf16.msra.mxu0 %v3079_v21  ;;  %v3095_v35 = vld [vmem:[#allocation2 + $0x44] ss:$16 sps:$4 sm:$0xff]   ;;  %v64_v37 = vld [vmem:[%s5055_s0 + $0x78] sm:$0xff]  ;;  %v3097_v39 = vld [vmem:[#allocation2 + $0x40] ss:$16 sps:$4 sm:$0xff]  }
  0x28   :  { %730 = vmatpush1.bf16.msra.mxu1 %v3082_v22  ;;  %618 = vmatprep.subr.bf16.mxu0 %v3083_v23  ;;  %v63_v38 = vld [vmem:[%s5055_s0 + $0x70] sm:$0xff]  ;;  %v3100_v40 = vld [vmem:[#allocation2 + $0x48] ss:$16 sps:$4 sm:$0xff]   ;;  %v3104_v42 = vld [vmem:[#allocation2 + $0x2c] ss:$16 sps:$4 sm:$0xff]  }
  0x29   :  { %90 = vperm.xlu1 %3064, %v56_v11   ;;  %87 = vperm.xlu0 %3063, %v55_v13   ;;  %v3101_v41 = vld [vmem:[#allocation2 + $0x24] ss:$16 sps:$4 sm:$0xff]   ;;  %v3103_v43 = vld [vmem:[#allocation2 + $0x20] ss:$16 sps:$4 sm:$0xff]   ;;  %v3106_v44 = vld [vmem:[#allocation2 + $0x28] ss:$16 sps:$4 sm:$0xff]  }
  0x2a   :  { %731 = vmatprep.subr.bf16.mxu1 %v3086_v24  ;;  %v3107_v45 = vld [vmem:[#allocation2 + $0x4] ss:$16 sps:$4 sm:$0xff]   ;;  %v3110_v46 = vld [vmem:[#allocation2 + $0xc] ss:$16 sps:$4 sm:$0xff]   ;;  %v3109_v47 = vld [vmem:[#allocation2] ss:$16 sps:$4 sm:$0xff]  }
  0x2b   :  { %619 = vmatpush1.bf16.msra.mxu0 %v3085_v27  ;;  %v3112_v48 = vld [vmem:[#allocation2 + $0x8] ss:$16 sps:$4 sm:$0xff]   ;;  %v3113_v49 = vld [vmem:[#allocation2 + $0x1e4] ss:$16 sps:$4 sm:$0xff]   ;;  %v3116_v50 = vld [vmem:[#allocation2 + $0x1ec] ss:$16 sps:$4 sm:$0xff]  }
  0x2c   :  { %732 = vmatpush1.bf16.msra.mxu1 %v3088_v28  ;;  %620 = vmatprep.subr.bf16.mxu0 %v3089_v29  ;;  %v3115_v51 = vld [vmem:[#allocation2 + $0x1e0] ss:$16 sps:$4 sm:$0xff]   ;;  %v3118_v52 = vld [vmem:[#allocation2 + $0x1e8] ss:$16 sps:$4 sm:$0xff]   ;;  %v3119_v53 = vld [vmem:[#allocation2 + $0x1c4] ss:$16 sps:$4 sm:$0xff]  }
  0x2d   :  { %96 = vperm.xlu1 %3064, %v58_v19   ;;  %93 = vperm.xlu0 %3063, %v57_v20   ;;  %v3122_v54 = vld [vmem:[#allocation2 + $0x1cc] ss:$16 sps:$4 sm:$0xff]   ;;  %v3121_v55 = vld [vmem:[#allocation2 + $0x1c0] ss:$16 sps:$4 sm:$0xff]   ;;  %v3124_v56 = vld [vmem:[#allocation2 + $0x1c8] ss:$16 sps:$4 sm:$0xff]   ;;  %v65_v20 = vlaneseq }
  0x2e   :  { %733 = vmatprep.subr.bf16.mxu1 %v3092_v30  ;;  %v3125_v57 = vld [vmem:[#allocation2 + $0x1a4] ss:$16 sps:$4 sm:$0xff]   ;;  %v3128_v58 = vld [vmem:[#allocation2 + $0x1ac] ss:$16 sps:$4 sm:$0xff]   ;;  %v3127_v59 = vld [vmem:[#allocation2 + $0x1a0] ss:$16 sps:$4 sm:$0xff]  }
  0x2f   :  { %621 = vmatpush1.bf16.msra.mxu0 %v3091_v33  ;;  %v3130_v60 = vld [vmem:[#allocation2 + $0x1a8] ss:$16 sps:$4 sm:$0xff]   ;;  %v3131_v61 = vld [vmem:[#allocation2 + $0x184] ss:$16 sps:$4 sm:$0xff]   ;;  %v3134_v62 = vld [vmem:[#allocation2 + $0x18c] ss:$16 sps:$4 sm:$0xff]  }
  0x30   :  { %734 = vmatpush1.bf16.msra.mxu1 %v3094_v34  ;;  %622 = vmatprep.subr.bf16.mxu0 %v3095_v35  ;;  %v3133_v63 = vld [vmem:[#allocation2 + $0x180] ss:$16 sps:$4 sm:$0xff]   ;;  %v3136_v1 = vld [vmem:[#allocation2 + $0x188] ss:$16 sps:$4 sm:$0xff]   ;;  %v3137_v2 = vld [vmem:[#allocation2 + $0x164] ss:$16 sps:$4 sm:$0xff]  }
  0x31   :  { %102 = vperm.xlu1 %3064, %v60_v25   ;;  %99 = vperm.xlu0 %3063, %v59_v26   ;;  %v3140_v3 = vld [vmem:[#allocation2 + $0x16c] ss:$16 sps:$4 sm:$0xff]   ;;  %v3139_v4 = vld [vmem:[#allocation2 + $0x160] ss:$16 sps:$4 sm:$0xff]   ;;  %v3142_v5 = vld [vmem:[#allocation2 + $0x168] ss:$16 sps:$4 sm:$0xff]  }
  0x32   :  { %735 = vmatprep.subr.bf16.mxu1 %v3098_v36  ;;  %v3143_v6 = vld [vmem:[#allocation2 + $0x144] ss:$16 sps:$4 sm:$0xff]   ;;  %v3146_v7 = vld [vmem:[#allocation2 + $0x14c] ss:$16 sps:$4 sm:$0xff]   ;;  %v3145_v8 = vld [vmem:[#allocation2 + $0x140] ss:$16 sps:$4 sm:$0xff]  }
  0x33   :  { %623 = vmatpush1.bf16.msra.mxu0 %v3097_v39  ;;  %v3148_v9 = vld [vmem:[#allocation2 + $0x148] ss:$16 sps:$4 sm:$0xff]   ;;  %v3149_v10 = vld [vmem:[#allocation2 + $0x124] ss:$16 sps:$4 sm:$0xff]   ;;  %v3152_v11 = vld [vmem:[#allocation2 + $0x12c] ss:$16 sps:$4 sm:$0xff]  }
  0x34   :  { %736 = vmatpush1.bf16.msra.mxu1 %v3100_v40  ;;  %624 = vmatprep.subr.bf16.mxu0 %v3101_v41  ;;  %v3151_v12 = vld [vmem:[#allocation2 + $0x120] ss:$16 sps:$4 sm:$0xff]   ;;  %v3154_v13 = vld [vmem:[#allocation2 + $0x128] ss:$16 sps:$4 sm:$0xff]   ;;  %v3155_v14 = vld [vmem:[#allocation2 + $0x104] ss:$16 sps:$4 sm:$0xff]  }
  0x35   :  { %108 = vperm.xlu1 %3064, %v62_v31   ;;  %105 = vperm.xlu0 %3063, %v61_v32   ;;  %v3158_v15 = vld [vmem:[#allocation2 + $0x10c] ss:$16 sps:$4 sm:$0xff]   ;;  %v3157_v16 = vld [vmem:[#allocation2 + $0x100] ss:$16 sps:$4 sm:$0xff]   ;;  %v3160_v17 = vld [vmem:[#allocation2 + $0x108] ss:$16 sps:$4 sm:$0xff]  }
  0x36   :  { %737 = vmatprep.subr.bf16.mxu1 %v3104_v42  ;;  %v3769_v18 = vld [vmem:[#allocation4 + $0xe4] ss:$16 sps:$4 sm:$0xff]   ;;  %v3771_v19 = vld [vmem:[#allocation4 + $0xec] ss:$16 sps:$4 sm:$0xff]   ;;  %v3775_v21 = vand.u32 127, %v65_v20 }
  0x37   :  { %625 = vmatpush1.bf16.msra.mxu0 %v3103_v43  ;;  %v3786_v27 = vld [vmem:[#allocation4 + $0xe0] ss:$16 sps:$4 sm:$0xff]   ;;  %v3788_v28 = vld [vmem:[#allocation4 + $0xe8] ss:$16 sps:$4 sm:$0xff]   ;;  %v5063_v29 = vmov 1.0|1.0  }
  0x38   :  { %738 = vmatpush1.bf16.msra.mxu1 %v3106_v44  ;;  %626 = vmatprep.subr.bf16.mxu0 %v3107_v45  ;;  %v3778_v24 = vadd.s32 128, %v3775_v21  ;;  %v3792_v30 = vld [vmem:[#allocation4 + $0xc4] ss:$16 sps:$4 sm:$0xff]   ;;  %v3794_v31 = vld [vmem:[#allocation4 + $0xcc] ss:$16 sps:$4 sm:$0xff]  }
  0x39   :  { %114 = vperm.xlu1 %3064, %v64_v37   ;;  %111 = vperm.xlu0 %3063, %v63_v38   ;;  %v3800_v32 = vld [vmem:[#allocation4 + $0xc0] ss:$16 sps:$4 sm:$0xff]   ;;  %v3802_v33 = vld [vmem:[#allocation4 + $0xc8] ss:$16 sps:$4 sm:$0xff]   ;;  %v3806_v36 = vld [vmem:[#allocation4 + $0xa4] ss:$16 sps:$4 sm:$0xff]  }
  0x3a   :  { %739 = vmatprep.subr.bf16.mxu1 %v3110_v46  ;;  %v3808_v37 = vld [vmem:[#allocation4 + $0xac] ss:$16 sps:$4 sm:$0xff]   ;;  %v3818_v38 = vld [vmem:[#allocation4 + $0xa0] ss:$16 sps:$4 sm:$0xff]   ;;  %v3822_v39 = vld [vmem:[#allocation4 + $0xa8] ss:$16 sps:$4 sm:$0xff]  }
  0x3b   :  { %627 = vmatpush1.bf16.msra.mxu0 %v3109_v47  ;;  %v3824_v40 = vld [vmem:[#allocation4 + $0x84] ss:$16 sps:$4 sm:$0xff]   ;;  %v3826_v41 = vld [vmem:[#allocation4 + $0x8c] ss:$16 sps:$4 sm:$0xff]   ;;  %v3832_v42 = vld [vmem:[#allocation4 + $0x80] ss:$16 sps:$4 sm:$0xff]  }
  0x3c   :  { %740 = vmatpush1.bf16.msra.mxu1 %v3112_v48  ;;  %628 = vmatprep.subr.bf16.mxu0 %v3113_v49  ;;  %v3836_v45 = vld [vmem:[#allocation4 + $0x88] ss:$16 sps:$4 sm:$0xff]   ;;  %v3838_v46 = vld [vmem:[#allocation4 + $0x64] ss:$16 sps:$4 sm:$0xff]   ;;  %v3842_v47 = vld [vmem:[#allocation4 + $0x6c] ss:$16 sps:$4 sm:$0xff]  }
  0x3d   :  { %741 = vmatprep.subr.bf16.mxu1 %v3116_v50  ;;  %v3849_v48 = vld [vmem:[#allocation4 + $0x60] ss:$16 sps:$4 sm:$0xff]   ;;  %v3853_v49 = vld [vmem:[#allocation4 + $0x68] ss:$16 sps:$4 sm:$0xff]   ;;  %v3856_v50 = vld [vmem:[#allocation4 + $0x44] ss:$16 sps:$4 sm:$0xff]  }
  0x3e   :  { %v3954_v20 = vld [vmem:[#allocation4 + $0x18c] ss:$16 sps:$4 sm:$0xff]   ;;  %v4011_v0 = vld [vmem:[#allocation4 + $0x128] ss:$16 sps:$4 sm:$0xff]  }
  0x3f   :  { %629 = vmatpush2.bf16.msra.mxu0 %v3115_v51  ;;  %v3858_v51 = vld [vmem:[#allocation4 + $0x4c] ss:$16 sps:$4 sm:$0xff]   ;;  %5175 = vst [vmem:[#allocation10_spill] sm:$0xff] %v3954_v20  ;;  %5189 = vst [vmem:[#allocation24_spill] sm:$0xff] %v4011_v0 }
  0x40   :  { %742 = vmatpush2.bf16.msra.mxu1 %v3118_v52  ;;  %630 = vmatprep.subr.bf16.mxu0 %v3119_v53  ;;  %v3864_v52 = vld [vmem:[#allocation4 + $0x40] ss:$16 sps:$4 sm:$0xff]  }
  0x41   :  { %743 = vmatprep.subr.bf16.mxu1 %v3122_v54 }
  0x43   :  { %631 = vmatpush2.bf16.msra.mxu0 %v3121_v55  ;;  %v3868_v55 = vld [vmem:[#allocation4 + $0x48] ss:$16 sps:$4 sm:$0xff]  }
  0x44   :  { %744 = vmatpush2.bf16.msra.mxu1 %v3124_v56  ;;  %632 = vmatprep.subr.bf16.mxu0 %v3125_v57  ;;  %v3870_v56 = vld [vmem:[#allocation4 + $0x24] ss:$16 sps:$4 sm:$0xff]   ;;  %v3874_v57 = vld [vmem:[#allocation4 + $0x2c] ss:$16 sps:$4 sm:$0xff]  }
  0x45   :  { %745 = vmatprep.subr.bf16.mxu1 %v3128_v58  ;;  %v3881_v58 = vld [vmem:[#allocation4 + $0x20] ss:$16 sps:$4 sm:$0xff]  }
  0x47   :  { %633 = vmatpush2.bf16.msra.mxu0 %v3127_v59  ;;  %v3885_v59 = vld [vmem:[#allocation4 + $0x28] ss:$16 sps:$4 sm:$0xff]  }
  0x48   :  { %746 = vmatpush2.bf16.msra.mxu1 %v3130_v60  ;;  %634 = vmatprep.subr.bf16.mxu0 %v3131_v61  ;;  %v3888_v60 = vld [vmem:[#allocation4 + $0x4] ss:$16 sps:$4 sm:$0xff]   ;;  %v3890_v61 = vld [vmem:[#allocation4 + $0xc] ss:$16 sps:$4 sm:$0xff]  }
  0x49   :  { %747 = vmatprep.subr.bf16.mxu1 %v3134_v62  ;;  %v3896_v62 = vld [vmem:[#allocation4] ss:$16 sps:$4 sm:$0xff]  }
  0x4b   :  { %635 = vmatpush2.bf16.msra.mxu0 %v3133_v63 }
  0x4c   :  { %748 = vmatpush2.bf16.msra.mxu1 %v3136_v1  ;;  %636 = vmatprep.subr.bf16.mxu0 %v3137_v2  ;;  %v3900_v2 = vld [vmem:[#allocation4 + $0x8] ss:$16 sps:$4 sm:$0xff]  }
  0x4d   :  { %749 = vmatprep.subr.bf16.mxu1 %v3140_v3  ;;  %v3902_v3 = vld [vmem:[#allocation4 + $0x1e4] ss:$16 sps:$4 sm:$0xff]  }
  0x4f   :  { %637 = vmatpush2.bf16.msra.mxu0 %v3139_v4  ;;  %v3906_v4 = vld [vmem:[#allocation4 + $0x1ec] ss:$16 sps:$4 sm:$0xff]  }
  0x50   :  { %750 = vmatpush2.bf16.msra.mxu1 %v3142_v5  ;;  %638 = vmatprep.subr.bf16.mxu0 %v3143_v6  ;;  %v3913_v5 = vld [vmem:[#allocation4 + $0x1e0] ss:$16 sps:$4 sm:$0xff]   ;;  %v3917_v6 = vld [vmem:[#allocation4 + $0x1e8] ss:$16 sps:$4 sm:$0xff]  }
  0x51   :  { %751 = vmatprep.subr.bf16.mxu1 %v3146_v7  ;;  %v3920_v7 = vld [vmem:[#allocation4 + $0x1c4] ss:$16 sps:$4 sm:$0xff]  }
  0x53   :  { %639 = vmatpush2.bf16.msra.mxu0 %v3145_v8  ;;  %v3922_v8 = vld [vmem:[#allocation4 + $0x1cc] ss:$16 sps:$4 sm:$0xff]  }
  0x54   :  { %752 = vmatpush2.bf16.msra.mxu1 %v3148_v9  ;;  %640 = vmatprep.subr.bf16.mxu0 %v3149_v10  ;;  %v3928_v9 = vld [vmem:[#allocation4 + $0x1c0] ss:$16 sps:$4 sm:$0xff]  }
  0x55   :  { %753 = vmatprep.subr.bf16.mxu1 %v3152_v11 }
  0x57   :  { %641 = vmatpush2.bf16.msra.mxu0 %v3151_v12  ;;  %v3932_v12 = vld [vmem:[#allocation4 + $0x1c8] ss:$16 sps:$4 sm:$0xff]  }
  0x58   :  { %754 = vmatpush2.bf16.msra.mxu1 %v3154_v13  ;;  %642 = vmatprep.subr.bf16.mxu0 %v3155_v14  ;;  %v3934_v13 = vld [vmem:[#allocation4 + $0x1a4] ss:$16 sps:$4 sm:$0xff]   ;;  %v3938_v14 = vld [vmem:[#allocation4 + $0x1ac] ss:$16 sps:$4 sm:$0xff]  }
  0x59   :  { %755 = vmatprep.subr.bf16.mxu1 %v3158_v15  ;;  %v3945_v15 = vld [vmem:[#allocation4 + $0x1a0] ss:$16 sps:$4 sm:$0xff]  }
  0x5b   :  { %643 = vmatpush2.bf16.msra.mxu0 %v3157_v16  ;;  %v3949_v16 = vld [vmem:[#allocation4 + $0x1a8] ss:$16 sps:$4 sm:$0xff]  }
  0x5c   :  { %756 = vmatpush2.bf16.msra.mxu1 %v3160_v17  ;;  %1245 = vmatprep.subr.bf16.mxu0 %v3769_v18  ;;  %5173 = vst [vmem:[#allocation8_spill] sm:$0xff] %v3949_v16  ;;  %v3952_v17 = vld [vmem:[#allocation4 + $0x184] ss:$16 sps:$4 sm:$0xff]  }
  0x5d   :  { %1288 = vmatprep.subr.bf16.mxu1 %v3771_v19  ;;  %5174 = vst [vmem:[#allocation9_spill] sm:$0xff] %v3952_v17 }
  0x98   :  { %v76_v22 = vpop.permute.xlu1 %75  ;;  %v70_v23 = vpop.permute.xlu0 %69 }
  0x99   :  { %vm121_vm2 = vcmp.eq.s32.totalorder %v76_v22, %v3778_v24  ;;  %vm116_vm3 = vcmp.eq.s32.totalorder %v70_v23, %v3775_v21  ;;  %vm117_vm6 = vcmp.eq.s32.totalorder %v70_v23, %v3778_v24  ;;  %vm120_vm9 = vcmp.eq.s32.totalorder %v76_v22, %v3775_v21  ;;  %v3960_v22 = vld [vmem:[#allocation4 + $0x180] ss:$16 sps:$4 sm:$0xff]  }
  0x9a   :  { %5176 = vst [vmem:[#allocation11_spill] sm:$0xff] %v3960_v22 }
  0x9c   :  { %v73_v25 = vpop.permute.xlu0 %72  ;;  %v79_v26 = vpop.permute.xlu1 %78 }
  0x9d   :  { %vm118_vm0 = vcmp.eq.s32.totalorder %v73_v25, %v3775_v21  ;;  %vm119_vm1 = vcmp.eq.s32.totalorder %v73_v25, %v3778_v24  ;;  %vm123_vm4 = vcmp.eq.s32.totalorder %v79_v26, %v3778_v24  ;;  %vm122_vm10 = vcmp.eq.s32.totalorder %v79_v26, %v3775_v21  ;;  %v3964_v26 = vld [vmem:[#allocation4 + $0x188] ss:$16 sps:$4 sm:$0xff]  }
  0x9e   :  { %vm2810_vm5 = vmpackc.low %vm118_vm0, %vm116_vm3  ;;  %5177 = vst [vmem:[#allocation12_spill] sm:$0xff] %v3964_v26 }
  0x9f   :  { %vm2808_vm7 = vmpackc.low %vm119_vm1, %vm117_vm6 }
  0xa0   :  { %vm2812_vm8 = vmpackc.low %vm123_vm4, %vm121_vm2  ;;  %2809 = vmatprep.mubr.msk.bf16.mxu0 %vm2808_vm7, %v5063_v29  ;;  %2841 = vmatprep.mubr.msk.bf16.mxu1 %vm2808_vm7, %v5063_v29  ;;  %v85_v34 = vpop.permute.xlu1 %84  ;;  %v82_v35 = vpop.permute.xlu0 %81 }
  0xa1   :  { %2811 = vmatmul.mubr.msk.bf16.vlgmr.msra.gmra.mxu0 %vm2810_vm5, %v5063_v29  ;;  %2843 = vmatmul.mubr.msk.bf16.vlgmr.msra.gmra.mxu1 %vm2810_vm5, %v5063_v29  ;;  %vm127_vm11 = vcmp.eq.s32.totalorder %v85_v34, %v3778_v24  ;;  %vm125_vm12 = vcmp.eq.s32.totalorder %v82_v35, %v3778_v24  ;;  %vm2814_vm13 = vmpackc.low %vm122_vm10, %vm120_vm9  ;;  %vm126_vm15 = vcmp.eq.s32.totalorder %v85_v34, %v3775_v21  ;;  %v3966_v34 = vld [vmem:[#allocation4 + $0x164] ss:$16 sps:$4 sm:$0xff]  }
  0xa2   :  { %1246 = vmatpush1.bf16.msra.mxu0 %v3786_v27  ;;  %1289 = vmatpush1.bf16.msra.mxu1 %v3788_v28  ;;  %vm2816_vm14 = vmpackc.low %vm127_vm11, %vm125_vm12  ;;  %vm124_vm0 = vcmp.eq.s32.totalorder %v82_v35, %v3775_v21  ;;  %5178 = vst [vmem:[#allocation13_spill] sm:$0xff] %v3966_v34  ;;  %v3970_v35 = vld [vmem:[#allocation4 + $0x16c] ss:$16 sps:$4 sm:$0xff]  }
  0xa3   :  { %2813 = vmatprep.mubr.msk.bf16.mxu0 %vm2812_vm8, %v5063_v29  ;;  %2845 = vmatprep.mubr.msk.bf16.mxu1 %vm2812_vm8, %v5063_v29  ;;  %vm2818_vm3 = vmpackc.low %vm126_vm15, %vm124_vm0  ;;  %5179 = vst [vmem:[#allocation14_spill] sm:$0xff] %v3970_v35 }
  0xa4   :  { %1247 = vmatprep.subr.bf16.mxu0 %v3792_v30  ;;  %1290 = vmatprep.subr.bf16.mxu1 %v3794_v31  ;;  %v91_v43 = vpop.permute.xlu1 %90  ;;  %v88_v44 = vpop.permute.xlu0 %87 }
  0xa5   :  { %vm131_vm1 = vcmp.eq.s32.totalorder %v91_v43, %v3778_v24  ;;  %vm129_vm2 = vcmp.eq.s32.totalorder %v88_v44, %v3778_v24  ;;  %vm130_vm5 = vcmp.eq.s32.totalorder %v91_v43, %v3775_v21  ;;  %vm128_vm6 = vcmp.eq.s32.totalorder %v88_v44, %v3775_v21  ;;  %v3977_v43 = vld [vmem:[#allocation4 + $0x160] ss:$16 sps:$4 sm:$0xff]   ;;  %v3981_v44 = vld [vmem:[#allocation4 + $0x168] ss:$16 sps:$4 sm:$0xff]  }
  0xa6   :  { %1248 = vmatpush1.bf16.msra.mxu0 %v3800_v32  ;;  %1291 = vmatpush1.bf16.msra.mxu1 %v3802_v33  ;;  %vm2820_vm4 = vmpackc.low %vm131_vm1, %vm129_vm2  ;;  %5180 = vst [vmem:[#allocation15_spill] sm:$0xff] %v3977_v43 }
  0xa7   :  { %1249 = vmatprep.subr.bf16.mxu0 %v3806_v36  ;;  %1292 = vmatprep.subr.bf16.mxu1 %v3808_v37  ;;  %vm2822_vm9 = vmpackc.low %vm130_vm5, %vm128_vm6  ;;  %5181 = vst [vmem:[#allocation16_spill] sm:$0xff] %v3981_v44 }
  0xa8   :  { %v97_v53 = vpop.permute.xlu1 %96  ;;  %v94_v54 = vpop.permute.xlu0 %93 }
  0xa9   :  { %2815 = vmatmul.mubr.msk.bf16.gmra.mxu0 %vm2814_vm13, %v5063_v29  ;;  %2847 = vmatmul.mubr.msk.bf16.gmra.mxu1 %vm2814_vm13, %v5063_v29  ;;  %vm135_vm7 = vcmp.eq.s32.totalorder %v97_v53, %v3778_v24  ;;  %vm133_vm8 = vcmp.eq.s32.totalorder %v94_v54, %v3778_v24  ;;  %vm134_vm11 = vcmp.eq.s32.totalorder %v97_v53, %v3775_v21  ;;  %v3984_v53 = vld [vmem:[#allocation4 + $0x144] ss:$16 sps:$4 sm:$0xff]  }
  0xaa   :  { %1250 = vmatpush1.bf16.msra.mxu0 %v3818_v38  ;;  %2817 = vmatprep.mubr.msk.bf16.mxu0 %vm2816_vm14, %v5063_v29  ;;  %vm2824_vm10 = vmpackc.low %vm135_vm7, %vm133_vm8  ;;  %vm132_vm12 = vcmp.eq.s32.totalorder %v94_v54, %v3775_v21  ;;  %5182 = vst [vmem:[#allocation17_spill] sm:$0xff] %v3984_v53  ;;  %v3986_v54 = vld [vmem:[#allocation4 + $0x14c] ss:$16 sps:$4 sm:$0xff]  }
  0xab   :  { %2849 = vmatprep.mubr.msk.bf16.mxu1 %vm2816_vm14, %v5063_v29  ;;  %1293 = vmatpush1.bf16.msra.mxu1 %v3822_v39  ;;  %vm2826_vm15 = vmpackc.low %vm134_vm11, %vm132_vm12  ;;  %5183 = vst [vmem:[#allocation18_spill] sm:$0xff] %v3986_v54 }
  0xac   :  { %1251 = vmatprep.subr.bf16.mxu0 %v3824_v40  ;;  %1294 = vmatprep.subr.bf16.mxu1 %v3826_v41  ;;  %v103_v63 = vpop.permute.xlu1 %102  ;;  %v100_v1 = vpop.permute.xlu0 %99 }
  0xad   :  { %vm139_vm13 = vcmp.eq.s32.totalorder %v103_v63, %v3778_v24  ;;  %vm137_vm14 = vcmp.eq.s32.totalorder %v100_v1, %v3778_v24  ;;  %vm138_vm1 = vcmp.eq.s32.totalorder %v103_v63, %v3775_v21  ;;  %vm136_vm2 = vcmp.eq.s32.totalorder %v100_v1, %v3775_v21  ;;  %v3996_v63 = vld [vmem:[#allocation4 + $0x148] ss:$16 sps:$4 sm:$0xff]   ;;  %v3998_v1 = vld [vmem:[#allocation4 + $0x124] ss:$16 sps:$4 sm:$0xff]  }
  0xae   :  { %1252 = vmatpush1.bf16.msra.mxu0 %v3832_v42  ;;  %vm2828_vm0 = vmpackc.low %vm139_vm13, %vm137_vm14  ;;  %5185 = vst [vmem:[#allocation20_spill] sm:$0xff] %v3996_v63 }
  0xaf   :  { %1295 = vmatpush1.bf16.msra.mxu1 %v3836_v45  ;;  %1253 = vmatprep.subr.bf16.mxu0 %v3838_v46  ;;  %vm2830_vm5 = vmpackc.low %vm138_vm1, %vm136_vm2  ;;  %5186 = vst [vmem:[#allocation21_spill] sm:$0xff] %v3998_v1 }
  0xb0   :  { %1296 = vmatprep.subr.bf16.mxu1 %v3842_v47  ;;  %v109_v10 = vpop.permute.xlu1 %108  ;;  %v106_v11 = vpop.permute.xlu0 %105 }
  0xb1   :  { %2819 = vmatmul.mubr.msk.bf16.gmra.mxu0 %vm2818_vm3, %v5063_v29  ;;  %2851 = vmatmul.mubr.msk.bf16.gmra.mxu1 %vm2818_vm3, %v5063_v29  ;;  %vm143_vm3 = vcmp.eq.s32.totalorder %v109_v10, %v3778_v24  ;;  %vm142_vm7 = vcmp.eq.s32.totalorder %v109_v10, %v3775_v21  ;;  %vm140_vm8 = vcmp.eq.s32.totalorder %v106_v11, %v3775_v21  ;;  %v4002_v10 = vld [vmem:[#allocation4 + $0x12c] ss:$16 sps:$4 sm:$0xff]  }
  0xb2   :  { %1254 = vmatpush1.bf16.msra.mxu0 %v3849_v48  ;;  %2821 = vmatprep.mubr.msk.bf16.mxu0 %vm2820_vm4, %v5063_v29  ;;  %vm2834_vm11 = vmpackc.low %vm142_vm7, %vm140_vm8  ;;  %5187 = vst [vmem:[#allocation22_spill] sm:$0xff] %v4002_v10 }
  0xb3   :  { %2853 = vmatprep.mubr.msk.bf16.mxu1 %vm2820_vm4, %v5063_v29  ;;  %1297 = vmatpush1.bf16.msra.mxu1 %v3853_v49  ;;  %vm141_vm4 = vcmp.eq.s32.totalorder %v106_v11, %v3778_v24  ;;  %v4007_v11 = vld [vmem:[#allocation4 + $0x120] ss:$16 sps:$4 sm:$0xff]  }
  0xb4   :  { %1255 = vmatprep.subr.bf16.mxu0 %v3856_v50  ;;  %1298 = vmatprep.subr.bf16.mxu1 %v3858_v51  ;;  %vm2832_vm6 = vmpackc.low %vm143_vm3, %vm141_vm4  ;;  %v115_v23 = vpop.permute.xlu1 %114  ;;  %v112_v25 = vpop.permute.xlu0 %111  ;;  %5188 = vst [vmem:[#allocation23_spill] sm:$0xff] %v4007_v11 }
  0xb5   :  { %vm146_vm13 = vcmp.eq.s32.totalorder %v115_v23, %v3775_v21  ;;  %vm144_vm14 = vcmp.eq.s32.totalorder %v112_v25, %v3775_v21  ;;  %v4021_v21 = vld [vmem:[#allocation4 + $0x100] ss:$16 sps:$4 sm:$0xff]  }
  0xb6   :  { %1256 = vmatpush1.bf16.msra.mxu0 %v3864_v52  ;;  %5193 = vst [vmem:[#allocation27_spill] sm:$0xff] %v4021_v21 }
  0xb7   :  { %1299 = vmatpush1.bf16.msra.mxu1 %v3868_v55  ;;  %1257 = vmatprep.subr.bf16.mxu0 %v3870_v56 }
  0xb8   :  { %1300 = vmatprep.subr.bf16.mxu1 %v3874_v57 }
  0xb9   :  { %2823 = vmatmul.mubr.msk.bf16.gmra.mxu0 %vm2822_vm9, %v5063_v29  ;;  %2855 = vmatmul.mubr.msk.bf16.gmra.mxu1 %vm2822_vm9, %v5063_v29  ;;  %vm147_vm9 = vcmp.eq.s32.totalorder %v115_v23, %v3778_v24  ;;  %v5192_v23 = vmov 1.0|1.0  }
  0xba   :  { %1258 = vmatpush1.bf16.msra.mxu0 %v3881_v58  ;;  %2825 = vmatprep.mubr.msk.bf16.mxu0 %vm2824_vm10, %v5063_v29 }
  0xbb   :  { %2857 = vmatprep.mubr.msk.bf16.mxu1 %vm2824_vm10, %v5063_v29  ;;  %1301 = vmatpush1.bf16.msra.mxu1 %v3885_v59  ;;  %vm145_vm10 = vcmp.eq.s32.totalorder %v112_v25, %v3778_v24  ;;  %v3992_v24 = vld [vmem:[#allocation4 + $0x140] ss:$16 sps:$4 sm:$0xff]   ;;  %v5194_v25 = vmov 0  }
  0xbc   :  { %1259 = vmatprep.subr.bf16.mxu0 %v3888_v60  ;;  %1302 = vmatprep.subr.bf16.mxu1 %v3890_v61  ;;  %vm2836_vm12 = vmpackc.low %vm147_vm9, %vm145_vm10  ;;  %5184 = vst [vmem:[#allocation19_spill] sm:$0xff] %v3992_v24 }
  0xbe   :  { %1260 = vmatpush1.bf16.msra.mxu0 %v3896_v62 }
  0xbf   :  { %1303 = vmatpush1.bf16.msra.mxu1 %v3900_v2  ;;  %1261 = vmatprep.subr.bf16.mxu0 %v3902_v3 }
  0xc0   :  { %1304 = vmatprep.subr.bf16.mxu1 %v3906_v4 }
  0xc1   :  { %2827 = vmatmul.mubr.msk.bf16.gmra.mxu0 %vm2826_vm15, %v5063_v29  ;;  %2859 = vmatmul.mubr.msk.bf16.gmra.mxu1 %vm2826_vm15, %v5063_v29  ;;  %vm2838_vm15 = vmpackc.low %vm146_vm13, %vm144_vm14 }
  0xc2   :  { %1262 = vmatpush2.bf16.msra.mxu0 %v3913_v5  ;;  %2829 = vmatprep.mubr.msk.bf16.mxu0 %vm2828_vm0, %v5063_v29 }
  0xc3   :  { %2861 = vmatprep.mubr.msk.bf16.mxu1 %vm2828_vm0, %v5063_v29  ;;  %1305 = vmatpush2.bf16.msra.mxu1 %v3917_v6 }
  0xc4   :  { %1263 = vmatprep.subr.bf16.mxu0 %v3920_v7  ;;  %1306 = vmatprep.subr.bf16.mxu1 %v3922_v8 }
  0xc6   :  { %1264 = vmatpush2.bf16.msra.mxu0 %v3928_v9 }
  0xc7   :  { %1307 = vmatpush2.bf16.msra.mxu1 %v3932_v12  ;;  %1265 = vmatprep.subr.bf16.mxu0 %v3934_v13 }
  0xc8   :  { %1308 = vmatprep.subr.bf16.mxu1 %v3938_v14 }
  0xc9   :  { %2831 = vmatmul.mubr.msk.bf16.gmra.mxu0 %vm2830_vm5, %v5063_v29  ;;  %2863 = vmatmul.mubr.msk.bf16.gmra.mxu1 %vm2830_vm5, %v5063_v29 }
  0xca   :  { %1266 = vmatpush2.bf16.msra.mxu0 %v3945_v15  ;;  %2833 = vmatprep.mubr.msk.bf16.mxu0 %vm2832_vm6, %v5063_v29 }
  0xcb   :  { %2865 = vmatprep.mubr.msk.bf16.mxu1 %vm2832_vm6, %v5063_v29  ;;  %1309 = vmatpush2.bf16.msra.mxu1 %v3949_v16 }
  0xcc   :  { %1267 = vmatprep.subr.bf16.mxu0 %v3952_v17  ;;  %1310 = vmatprep.subr.bf16.mxu1 %v3954_v20 }
  0xce   :  { %1268 = vmatpush2.bf16.msra.mxu0 %v3960_v22 }
  0xcf   :  { %1311 = vmatpush2.bf16.msra.mxu1 %v3964_v26  ;;  %1269 = vmatprep.subr.bf16.mxu0 %v3966_v34 }
  0xd0   :  { %1312 = vmatprep.subr.bf16.mxu1 %v3970_v35 }
  0xd1   :  { %2835 = vmatmul.mubr.msk.bf16.gmra.mxu0 %vm2834_vm11, %v5063_v29  ;;  %2867 = vmatmul.mubr.msk.bf16.gmra.mxu1 %vm2834_vm11, %v5063_v29 }
  0xd2   :  { %1270 = vmatpush2.bf16.msra.mxu0 %v3977_v43  ;;  %2837 = vmatprep.mubr.msk.bf16.mxu0 %vm2836_vm12, %v5063_v29 }
  0xd3   :  { %2869 = vmatprep.mubr.msk.bf16.mxu1 %vm2836_vm12, %v5063_v29  ;;  %1313 = vmatpush2.bf16.msra.mxu1 %v3981_v44  ;;  %v4013_v29 = vld [vmem:[#allocation4 + $0x104] ss:$16 sps:$4 sm:$0xff]  }
  0xd4   :  { %1271 = vmatprep.subr.bf16.mxu0 %v3984_v53  ;;  %1314 = vmatprep.subr.bf16.mxu1 %v3986_v54  ;;  %5190 = vst [vmem:[#allocation25_spill] sm:$0xff] %v4013_v29  ;;  %v4016_v54 = vld [vmem:[#allocation4 + $0x10c] ss:$16 sps:$4 sm:$0xff]  }
  0xd5   :  { %5191 = vst [vmem:[#allocation26_spill] sm:$0xff] %v4016_v54 }
  0xd6   :  { %1272 = vmatpush2.bf16.msra.mxu0 %v3992_v24 }
  0xd7   :  { %1315 = vmatpush2.bf16.msra.mxu1 %v3996_v63  ;;  %1273 = vmatprep.subr.bf16.mxu0 %v3998_v1  ;;  %v4026_v1 = vld [vmem:[#allocation4 + $0x108] ss:$16 sps:$4 sm:$0xff]  }
  0xd8   :  { %1316 = vmatprep.subr.bf16.mxu1 %v4002_v10  ;;  %5195 = vst [vmem:[#allocation28_spill] sm:$0xff] %v4026_v1 }
  0xd9   :  { %2839 = vmatmul.mubr.msk.bf16.gmra.mxu0 %vm2838_vm15, %v5192_v23  ;;  %2871 = vmatmul.mubr.msk.bf16.gmra.mxu1 %vm2838_vm15, %v5192_v23  ;;  %v5196_v23 = vld [vmem:[#allocation18_spill] sm:$0xff] }
  0xda   :  { %1274 = vmatpush2.bf16.msra.mxu0 %v4007_v11  ;;  %1277 = vmatprep.mubr.bf16.mxu0 %v5194_v25 }
  0xdb   :  { %1317 = vmatpush2.bf16.msra.mxu1 %v4011_v0  ;;  %1275 = vmatprep.subr.bf16.mxu0 %v4013_v29 }
  0xdc   :  { %1318 = vmatprep.subr.bf16.mxu1 %v4016_v54  ;;  %1320 = vmatprep.mubr.bf16.mxu1 %v5194_v25 }
  0xde   :  { %1276 = vmatpush2.bf16.msra.mxu0 %v4021_v21 }
  0xdf   :  { %1319 = vmatpush2.bf16.msra.mxu1 %v4026_v1  ;;  %1393 = vmatprep.subr.bf16.mxu0 %v3769_v18 }
  0xe0   :  { %1436 = vmatprep.subr.bf16.mxu1 %v3771_v19 }
  0xe1   :  { %1278 = vmatmul.mubr.bf16.vlgmr.msra.gmra.mxu0 %v5194_v25 }
  0xe2   :  { %1321 = vmatmul.mubr.bf16.vlgmr.msra.gmra.mxu1 %v5194_v25  ;;  %1394 = vmatpush1.bf16.msra.mxu0 %v3786_v27  ;;  %v5197_v25 = vld [vmem:[#allocation21_spill] sm:$0xff] }
  0xe3   :  { %1437 = vmatpush1.bf16.msra.mxu1 %v3788_v28  ;;  %1395 = vmatprep.subr.bf16.mxu0 %v3792_v30 }
  0xe4   :  { %1438 = vmatprep.subr.bf16.mxu1 %v3794_v31 }
  0xe6   :  { %1396 = vmatpush1.bf16.msra.mxu0 %v3800_v32 }
  0xe7   :  { %1439 = vmatpush1.bf16.msra.mxu1 %v3802_v33  ;;  %1397 = vmatprep.subr.bf16.mxu0 %v3806_v36 }
  0xe8   :  { %1440 = vmatprep.subr.bf16.mxu1 %v3808_v37 }
  0xea   :  { %1398 = vmatpush1.bf16.msra.mxu0 %v3818_v38 }
  0xeb   :  { %1441 = vmatpush1.bf16.msra.mxu1 %v3822_v39  ;;  %1399 = vmatprep.subr.bf16.mxu0 %v3824_v40 }
  0xec   :  { %1442 = vmatprep.subr.bf16.mxu1 %v3826_v41 }
  0xee   :  { %1400 = vmatpush1.bf16.msra.mxu0 %v3832_v42 }
  0xef   :  { %1443 = vmatpush1.bf16.msra.mxu1 %v3836_v45  ;;  %1401 = vmatprep.subr.bf16.mxu0 %v3838_v46 }
  0xf0   :  { %1444 = vmatprep.subr.bf16.mxu1 %v3842_v47 }
  0xf2   :  { %1402 = vmatpush1.bf16.msra.mxu0 %v3849_v48 }
  0xf3   :  { %1445 = vmatpush1.bf16.msra.mxu1 %v3853_v49  ;;  %1403 = vmatprep.subr.bf16.mxu0 %v3856_v50 }
  0xf4   :  { %1446 = vmatprep.subr.bf16.mxu1 %v3858_v51 }
  0xf6   :  { %1404 = vmatpush1.bf16.msra.mxu0 %v3864_v52 }
  0xf7   :  { %1447 = vmatpush1.bf16.msra.mxu1 %v3868_v55  ;;  %1405 = vmatprep.subr.bf16.mxu0 %v3870_v56 }
  0xf8   :  { %1448 = vmatprep.subr.bf16.mxu1 %v3874_v57 }
  0xfa   :  { %1406 = vmatpush1.bf16.msra.mxu0 %v3881_v58 }
  0xfb   :  { %1449 = vmatpush1.bf16.msra.mxu1 %v3885_v59  ;;  %1407 = vmatprep.subr.bf16.mxu0 %v3888_v60 }
  0xfc   :  { %1450 = vmatprep.subr.bf16.mxu1 %v3890_v61 }
  0xfe   :  { %1408 = vmatpush1.bf16.msra.mxu0 %v3896_v62 }
  0xff   :  { %1451 = vmatpush1.bf16.msra.mxu1 %v3900_v2  ;;  %1409 = vmatprep.subr.bf16.mxu0 %v3902_v3 }
 0x100   :  { %1452 = vmatprep.subr.bf16.mxu1 %v3906_v4 }
 0x102   :  { %1410 = vmatpush2.bf16.msra.mxu0 %v3913_v5 }
 0x103   :  { %1453 = vmatpush2.bf16.msra.mxu1 %v3917_v6  ;;  %1411 = vmatprep.subr.bf16.mxu0 %v3920_v7 }
 0x104   :  { %1454 = vmatprep.subr.bf16.mxu1 %v3922_v8 }
 0x106   :  { %1412 = vmatpush2.bf16.msra.mxu0 %v3928_v9 }
 0x107   :  { %1455 = vmatpush2.bf16.msra.mxu1 %v3932_v12  ;;  %1413 = vmatprep.subr.bf16.mxu0 %v3934_v13 }
 0x108   :  { %1456 = vmatprep.subr.bf16.mxu1 %v3938_v14 }
 0x10a   :  { %1414 = vmatpush2.bf16.msra.mxu0 %v3945_v15 }
 0x10b   :  { %1457 = vmatpush2.bf16.msra.mxu1 %v3949_v16  ;;  %1415 = vmatprep.subr.bf16.mxu0 %v3952_v17 }
 0x10c   :  { %1458 = vmatprep.subr.bf16.mxu1 %v3954_v20 }
 0x10e   :  { %1416 = vmatpush2.bf16.msra.mxu0 %v3960_v22 }
 0x10f   :  { %1459 = vmatpush2.bf16.msra.mxu1 %v3964_v26  ;;  %1417 = vmatprep.subr.bf16.mxu0 %v3966_v34 }
 0x110   :  { %1460 = vmatprep.subr.bf16.mxu1 %v3970_v35 }
 0x112   :  { %1418 = vmatpush2.bf16.msra.mxu0 %v3977_v43 }
 0x113   :  { %1461 = vmatpush2.bf16.msra.mxu1 %v3981_v44  ;;  %1419 = vmatprep.subr.bf16.mxu0 %v3984_v53 }
 0x114   :  { %1462 = vmatprep.subr.bf16.mxu1 %v5196_v23 }
 0x116   :  { %1420 = vmatpush2.bf16.msra.mxu0 %v3992_v24 }
 0x117   :  { %1463 = vmatpush2.bf16.msra.mxu1 %v3996_v63  ;;  %1421 = vmatprep.subr.bf16.mxu0 %v5197_v25 }
 0x118   :  { %1464 = vmatprep.subr.bf16.mxu1 %v4002_v10 }
 0x11a   :  { %1422 = vmatpush2.bf16.msra.mxu0 %v4007_v11 }
 0x11b   :  { %1465 = vmatpush2.bf16.msra.mxu1 %v4011_v0  ;;  %1423 = vmatprep.subr.bf16.mxu0 %v4013_v29 }
 0x11c   :  { %1466 = vmatprep.subr.bf16.mxu1 %v4016_v54 }
 0x11e   :  { %1424 = vmatpush2.bf16.msra.mxu0 %v4021_v21 }
 0x11f   :  { %1467 = vmatpush2.bf16.msra.mxu1 %v4026_v1  ;;  %1541 = vmatprep.subr.bf16.mxu0 %v3769_v18 }
 0x120   :  { %1584 = vmatprep.subr.bf16.mxu1 %v3771_v19 }
 0x161   :  { %v4100_v63 = vpop.f32.mrf.mxu0  ;;  %v4102_v25 = vpop.f32.mrf.mxu1 }
 0x163   :  { %v4104_v10 = vpop.f32.mrf.mxu0  ;;  %v4106_v11 = vpop.f32.mrf.mxu1 }
 0x165   :  { %v4108_v0 = vpop.f32.mrf.mxu0  ;;  %v4110_v29 = vpop.f32.mrf.mxu1 }
 0x167   :  { %v4112_v54 = vpop.f32.mrf.mxu0  ;;  %v4114_v21 = vpop.f32.mrf.mxu1 }
 0x169   :  { %v4116_v1 = vpop.f32.mrf.mxu0  ;;  %v4118_v18 = vpop.f32.mrf.mxu1 }
 0x16a   :  { %5198 = vst [vmem:[#allocation29_spill] sm:$0xff] %v4116_v1  ;;  %5199 = vst [vmem:[#allocation30_spill] sm:$0xff] %v4118_v18 }
 0x16b   :  { %v4120_v19 = vpop.f32.mrf.mxu0  ;;  %v4122_v24 = vpop.f32.mrf.mxu1 }
 0x16c   :  { %5200 = vst [vmem:[#allocation31_spill] sm:$0xff] %v4120_v19  ;;  %5201 = vst [vmem:[#allocation32_spill] sm:$0xff] %v4122_v24 }
 0x16d   :  { %v4124_v23 = vpop.f32.mrf.mxu0  ;;  %v4126_v53 = vpop.f32.mrf.mxu1 }
 0x16e   :  { %5202 = vst [vmem:[#allocation33_spill] sm:$0xff] %v4124_v23  ;;  %5203 = vst [vmem:[#allocation34_spill] sm:$0xff] %v4126_v53 }
 0x16f   :  { %v4128_v44 = vpop.f32.mrf.mxu0  ;;  %v4130_v43 = vpop.f32.mrf.mxu1 }
 0x170   :  { %5204 = vst [vmem:[#allocation35_spill] sm:$0xff] %v4128_v44  ;;  %5205 = vst [vmem:[#allocation36_spill] sm:$0xff] %v4130_v43 }
 0x171   :  { %v4132_v35 = vpop.f32.mrf.mxu0  ;;  %v4134_v34 = vpop.f32.mrf.mxu1 }
 0x172   :  { %5206 = vst [vmem:[#allocation37_spill] sm:$0xff] %v4132_v35  ;;  %5207 = vst [vmem:[#allocation38_spill] sm:$0xff] %v4134_v34 }
 0x173   :  { %v4136_v26 = vpop.f32.mrf.mxu0  ;;  %v4138_v1 = vpop.f32.mrf.mxu1 }
 0x174   :  { %5208 = vst [vmem:[#allocation39_spill] sm:$0xff] %v4136_v26  ;;  %5209 = vst [vmem:[#allocation40_spill] sm:$0xff] %v4138_v1 }
 0x175   :  { %v4140_v18 = vpop.f32.mrf.mxu0  ;;  %v4142_v19 = vpop.f32.mrf.mxu1 }
 0x176   :  { %5210 = vst [vmem:[#allocation41_spill] sm:$0xff] %v4140_v18  ;;  %5211 = vst [vmem:[#allocation42_spill] sm:$0xff] %v4142_v19 }
 0x177   :  { %v4144_v24 = vpop.f32.mrf.mxu0  ;;  %v4146_v23 = vpop.f32.mrf.mxu1 }
 0x178   :  { %5212 = vst [vmem:[#allocation43_spill] sm:$0xff] %v4144_v24  ;;  %5213 = vst [vmem:[#allocation44_spill] sm:$0xff] %v4146_v23 }
 0x179   :  { %v4148_v53 = vpop.f32.mrf.mxu0  ;;  %v4150_v44 = vpop.f32.mrf.mxu1 }
 0x17a   :  { %5214 = vst [vmem:[#allocation45_spill] sm:$0xff] %v4148_v53  ;;  %5215 = vst [vmem:[#allocation46_spill] sm:$0xff] %v4150_v44 }
 0x17b   :  { %v4152_v43 = vpop.f32.mrf.mxu0  ;;  %v4154_v35 = vpop.f32.mrf.mxu1 }
 0x17c   :  { %5216 = vst [vmem:[#allocation47_spill] sm:$0xff] %v4152_v43  ;;  %5217 = vst [vmem:[#allocation48_spill] sm:$0xff] %v4154_v35 }
 0x17d   :  { %v4156_v34 = vpop.f32.mrf.mxu0  ;;  %v4158_v26 = vpop.f32.mrf.mxu1 }
 0x17e   :  { %5218 = vst [vmem:[#allocation49_spill] sm:$0xff] %v4156_v34  ;;  %5219 = vst [vmem:[#allocation50_spill] sm:$0xff] %v4158_v26 }
 0x17f   :  { %v4160_v1 = vpop.f32.mrf.mxu0  ;;  %v4162_v18 = vpop.f32.mrf.mxu1 }
 0x180   :  { %5220 = vst [vmem:[#allocation51_spill] sm:$0xff] %v4160_v1  ;;  %5221 = vst [vmem:[#allocation52_spill] sm:$0xff] %v4162_v18 }
 0x181   :  { %v4164_v19 = vpop.f32.mrf.mxu0  ;;  %v4166_v24 = vpop.f32.mrf.mxu1 }
 0x182   :  { %5222 = vst [vmem:[#allocation53_spill] sm:$0xff] %v4164_v19  ;;  %5223 = vst [vmem:[#allocation54_spill] sm:$0xff] %v4166_v24 }
 0x183   :  { %v4168_v23 = vpop.f32.mrf.mxu0  ;;  %v4170_v53 = vpop.f32.mrf.mxu1 }
 0x184   :  { %5224 = vst [vmem:[#allocation55_spill] sm:$0xff] %v4168_v23  ;;  %5225 = vst [vmem:[#allocation56_spill] sm:$0xff] %v4170_v53 }
 0x185   :  { %v4172_v44 = vpop.f32.mrf.mxu0  ;;  %v4174_v43 = vpop.f32.mrf.mxu1 }
 0x186   :  { %5226 = vst [vmem:[#allocation57_spill] sm:$0xff] %v4172_v44  ;;  %5227 = vst [vmem:[#allocation58_spill] sm:$0xff] %v4174_v43 }
 0x187   :  { %v4176_v35 = vpop.f32.mrf.mxu0  ;;  %v4178_v34 = vpop.f32.mrf.mxu1 }
 0x188   :  { %5228 = vst [vmem:[#allocation59_spill] sm:$0xff] %v4176_v35  ;;  %5229 = vst [vmem:[#allocation60_spill] sm:$0xff] %v4178_v34 }
 0x189   :  { %v4180_v26 = vpop.f32.mrf.mxu0  ;;  %v4182_v1 = vpop.f32.mrf.mxu1 }
 0x18a   :  { %5230 = vst [vmem:[#allocation61_spill] sm:$0xff] %v4180_v26  ;;  %5231 = vst [vmem:[#allocation62_spill] sm:$0xff] %v4182_v1 }
 0x18b   :  { %v4184_v18 = vpop.f32.mrf.mxu0  ;;  %v4186_v19 = vpop.f32.mrf.mxu1 }
 0x18c   :  { %5232 = vst [vmem:[#allocation63_spill] sm:$0xff] %v4184_v18  ;;  %5233 = vst [vmem:[#allocation64_spill] sm:$0xff] %v4186_v19 }
 0x18d   :  { %v4188_v24 = vpop.f32.mrf.mxu0  ;;  %v4190_v23 = vpop.f32.mrf.mxu1 }
 0x18e   :  { %5234 = vst [vmem:[#allocation65_spill] sm:$0xff] %v4188_v24  ;;  %5235 = vst [vmem:[#allocation66_spill] sm:$0xff] %v4190_v23 }
 0x18f   :  { %v4192_v53 = vpop.f32.mrf.mxu0  ;;  %v4194_v44 = vpop.f32.mrf.mxu1 }
 0x190   :  { %5236 = vst [vmem:[#allocation67_spill] sm:$0xff] %v4192_v53  ;;  %5237 = vst [vmem:[#allocation68_spill] sm:$0xff] %v4194_v44 }
 0x191   :  { %v4196_v43 = vpop.f32.mrf.mxu0  ;;  %v4198_v35 = vpop.f32.mrf.mxu1 }
 0x192   :  { %5238 = vst [vmem:[#allocation69_spill] sm:$0xff] %v4196_v43  ;;  %5239 = vst [vmem:[#allocation70_spill] sm:$0xff] %v4198_v35 }
 0x193   :  { %v4200_v34 = vpop.f32.mrf.mxu0  ;;  %v4202_v26 = vpop.f32.mrf.mxu1 }
 0x194   :  { %5240 = vst [vmem:[#allocation71_spill] sm:$0xff] %v4200_v34  ;;  %5241 = vst [vmem:[#allocation72_spill] sm:$0xff] %v4202_v26 }
 0x195   :  { %v4204_v1 = vpop.f32.mrf.mxu0  ;;  %v4206_v18 = vpop.f32.mrf.mxu1 }
 0x196   :  { %5242 = vst [vmem:[#allocation73_spill] sm:$0xff] %v4204_v1  ;;  %5243 = vst [vmem:[#allocation74_spill] sm:$0xff] %v4206_v18 }
 0x197   :  { %v4208_v19 = vpop.f32.mrf.mxu0  ;;  %v4210_v24 = vpop.f32.mrf.mxu1 }
 0x198   :  { %5244 = vst [vmem:[#allocation75_spill] sm:$0xff] %v4208_v19  ;;  %5245 = vst [vmem:[#allocation76_spill] sm:$0xff] %v4210_v24 }
 0x199   :  { %v4212_v23 = vpop.f32.mrf.mxu0  ;;  %v4214_v53 = vpop.f32.mrf.mxu1 }
 0x19a   :  { %5246 = vst [vmem:[#allocation77_spill] sm:$0xff] %v4212_v23  ;;  %5247 = vst [vmem:[#allocation78_spill] sm:$0xff] %v4214_v53 }
 0x19b   :  { %v4216_v44 = vpop.f32.mrf.mxu0  ;;  %v4218_v43 = vpop.f32.mrf.mxu1 }
 0x19c   :  { %5248 = vst [vmem:[#allocation79_spill] sm:$0xff] %v4216_v44  ;;  %5249 = vst [vmem:[#allocation80_spill] sm:$0xff] %v4218_v43 }
 0x19d   :  { %v4220_v35 = vpop.f32.mrf.mxu0  ;;  %v4222_v34 = vpop.f32.mrf.mxu1 }
 0x19e   :  { %5250 = vst [vmem:[#allocation81_spill] sm:$0xff] %v4220_v35  ;;  %5251 = vst [vmem:[#allocation82_spill] sm:$0xff] %v4222_v34 }
 0x19f   :  { %v4224_v26 = vpop.f32.mrf.mxu0  ;;  %v4226_v1 = vpop.f32.mrf.mxu1 }
 0x1a0   :  { %5252 = vst [vmem:[#allocation83_spill] sm:$0xff] %v4224_v26  ;;  %5253 = vst [vmem:[#allocation84_spill] sm:$0xff] %v4226_v1 }
 0x1a1   :  { %v1279_v18 = vpop.f32.mrf.mxu0 }
 0x1a2   :  { %v1331_v19 = vadd.f32 %v1279_v18, %v4100_v63  ;;  %v1322_v24 = vpop.f32.mrf.mxu1 }
 0x1a3   :  { %v1281_v22 = vpop.f32.mrf.mxu0 }
 0x1a4   :  { %v2936_v23 = vmul.f32 -1.442695, %v1331_v19  ;;  %v1332_v53 = vadd.f32 %v1281_v22, %v4104_v10  ;;  %v1324_v43 = vpop.f32.mrf.mxu1  ;;  %v1333_v22 = vadd.f32 %v1322_v24, %v4102_v25 }
 0x1a5   :  { %v1283_v20 = vpop.f32.mrf.mxu0  ;;  %v1334_v63 = vadd.f32 %v1324_v43, %v4106_v11 }
 0x1a6   :  { %3273 = vpow2.f32 %v2936_v23  ;;  %v2938_v44 = vmul.f32 -1.442695, %v1332_v53  ;;  %v1335_v35 = vadd.f32 %v1283_v20, %v4108_v0  ;;  %v1326_v1 = vpop.f32.mrf.mxu1 }
 0x1a7   :  { %v1285_v17 = vpop.f32.mrf.mxu0  ;;  %v2940_v10 = vmul.f32 -1.442695, %v1334_v63  ;;  %v1337_v0 = vadd.f32 %v1326_v1, %v4110_v29 }
 0x1a8   :  { %3275 = vpow2.f32 %v2938_v44  ;;  %v2937_v34 = vmul.f32 -1.442695, %v1335_v35  ;;  %v1336_v26 = vadd.f32 %v1285_v17, %v4112_v54  ;;  %v1328_v18 = vpop.f32.mrf.mxu1 }
 0x1a9   :  { %v1338_v53 = vadd.f32 %v1328_v18, %v4114_v21 }
 0x1aa   :  { %3277 = vpow2.f32 %v2937_v34  ;;  %v2939_v16 = vmul.f32 -1.442695, %v1336_v26 }
 0x1ab   :  { %v2941_v17 = vmul.f32 -1.442695, %v1338_v53 }
 0x1ac   :  { %3279 = vpow2.f32 %v2939_v16 }
 0x1ad   :  { %3281 = vtanh.f32 %v1333_v22 }
 0x1ae   :  { %3283 = vpow2.f32 %v2940_v10 }
 0x1b3   :  { %v3274_v23 = vpop.eup %3273 }
 0x1b4   :  { %v1345_v20 = vadd.f32 1.0, %v3274_v23 }
 0x1b5   :  { %v3276_v35 = vpop.eup %3275 }
 0x1b6   :  { %3285 = vrcp.f32 %v1345_v20  ;;  %v1357_v34 = vadd.f32 1.0, %v3276_v35 }
 0x1b7   :  { %v3278_v26 = vpop.eup %3277  ;;  %3287 = vtanh.f32 %v1337_v0 }
 0x1b8   :  { %3289 = vrcp.f32 %v1357_v34  ;;  %v1346_v16 = vadd.f32 1.0, %v3278_v26 }
 0x1b9   :  { %v3280_v43 = vpop.eup %3279  ;;  %3291 = vpow2.f32 %v2941_v17 }
 0x1ba   :  { %3293 = vrcp.f32 %v1346_v16  ;;  %v1358_v44 = vadd.f32 1.0, %v3280_v43  ;;  %v3282_v54 = vpop.eup %3281 }
 0x1bb   :  { %v3284_v24 = vpop.eup %3283 }
 0x1bc   :  { %3295 = vrcp.f32 %v1358_v44  ;;  %v1371_v25 = vadd.f32 1.0, %v3284_v24 }
 0x1be   :  { %3297 = vrcp.f32 %v1371_v25 }
 0x1c3   :  { %v3286_v11 = vpop.eup %3285 }
 0x1c4   :  { %v3288_v29 = vpop.eup %3287  ;;  %v1379_v1 = vmul.f32 %v3286_v11, %v3282_v54 }
 0x1c5   :  { %v3290_v21 = vpop.eup %3289 }
 0x1c6   :  { %v3292_v19 = vpop.eup %3291  ;;  %v1377_v63 = vmul.f32 0.0, %v3290_v21  ;;  %v4321_v21 = vld [vmem:[#allocation4 + $0xec] ss:$16 sps:$4 sm:$0xff]  }
 0x1c7   :  { %v3294_v18 = vpop.eup %3293  ;;  %v1372_v23 = vadd.f32 1.0, %v3292_v19  ;;  %v5281_v19 = vld [vmem:[#allocation29_spill] sm:$0xff] }
 0x1c8   :  { %v4236_v22 = vadd.f32 %v1379_v1, %v1377_v63  ;;  %v1380_v10 = vmul.f32 %v3294_v18, %v3288_v29  ;;  %v5278_v29 = vld [vmem:[#allocation28_spill] sm:$0xff] }
 0x1c9   :  { %v3296_v53 = vpop.eup %3295  ;;  %v4318_v1 = vld [vmem:[#allocation4 + $0xe4] ss:$16 sps:$4 sm:$0xff]  }
 0x1ca   :  { %3299 = vtanh.f32 %v4236_v22  ;;  %v1378_v0 = vmul.f32 0.0, %v3296_v53 }
 0x1cb   :  { %3301 = vrcp.f32 %v1372_v23  ;;  %v3298_v35 = vpop.eup %3297  ;;  %v5282_v23 = vld [vmem:[#allocation31_spill] sm:$0xff] }
 0x1cc   :  { %v4239_v20 = vadd.f32 %v1380_v10, %v1378_v0 }
 0x1ce   :  { %3303 = vtanh.f32 %v4239_v20 }
 0x1d7   :  { %v3300_v17 = vpop.eup %3299 }
 0x1d8   :  { %v4242_v34 = vmul.f32 %v3300_v17, %v3298_v35  ;;  %v3302_v26 = vpop.eup %3301 }
 0x1da   :  { %5254 = vst [vmem:[#allocation85_spill] sm:$0xff] %v4242_v34  ;;  %v4247_v44 = vmul.f32 0.0, %v4242_v34 }
 0x1db   :  { %v3304_v16 = vpop.eup %3303 }
 0x1dc   :  { %v4244_v43 = vmul.f32 %v3304_v16, %v3302_v26  ;;  %5256 = vst [vmem:[#allocation87_spill] sm:$0xff] %v4247_v44  ;;  %v5283_v16 = vld [vmem:[#allocation33_spill] sm:$0xff] }
 0x1de   :  { %5255 = vst [vmem:[#allocation86_spill] sm:$0xff] %v4244_v43  ;;  %v1392_v54 = vpack.c.bf16 %v4244_v43, %v4247_v44  ;;  %v4252_v24 = vmul.f32 0.0, %v4244_v43  ;;  %v5284_v44 = vld [vmem:[#allocation35_spill] sm:$0xff] }
 0x1e0   :  { %5257 = vst [vmem:[#allocation88_spill] sm:$0xff] %v4252_v24  ;;  %1425 = vmatprep.mubr.bf16.mxu0 %v1392_v54  ;;  %1468 = vmatprep.mubr.bf16.mxu1 %v1392_v54  ;;  %v1391_v11 = vpack.c.bf16 %v4252_v24, %v4242_v34 }
 0x1e2   :  { %1426 = vmatmul.mubr.bf16.vlgmr.msra.gmra.mxu0 %v1391_v11  ;;  %1469 = vmatmul.mubr.bf16.vlgmr.msra.gmra.mxu1 %v1391_v11 }
 0x1e3   :  { %1542 = vmatpush1.bf16.msra.mxu0 %v3786_v27  ;;  %1585 = vmatpush1.bf16.msra.mxu1 %v3788_v28  ;;  %v5258_v27 = vld [vmem:[#allocation8_spill] sm:$0xff]  ;;  %v5259_v28 = vld [vmem:[#allocation9_spill] sm:$0xff] }
 0x1e4   :  { %1543 = vmatprep.subr.bf16.mxu0 %v3792_v30  ;;  %1586 = vmatprep.subr.bf16.mxu1 %v3794_v31  ;;  %v5260_v30 = vld [vmem:[#allocation10_spill] sm:$0xff]  ;;  %v5261_v31 = vld [vmem:[#allocation11_spill] sm:$0xff]  ;;  %5279 = vst [vmem:[#allocation8_spill] sm:$0xff] %v4318_v1  ;;  %5280 = vst [vmem:[#allocation9_spill] sm:$0xff] %v4321_v21 }
 0x1e7   :  { %1544 = vmatpush1.bf16.msra.mxu0 %v3800_v32  ;;  %1587 = vmatpush1.bf16.msra.mxu1 %v3802_v33  ;;  %v5262_v32 = vld [vmem:[#allocation12_spill] sm:$0xff]  ;;  %v5263_v33 = vld [vmem:[#allocation13_spill] sm:$0xff] }
 0x1e8   :  { %1545 = vmatprep.subr.bf16.mxu0 %v3806_v36  ;;  %1588 = vmatprep.subr.bf16.mxu1 %v3808_v37  ;;  %v5264_v36 = vld [vmem:[#allocation14_spill] sm:$0xff]  ;;  %v5265_v37 = vld [vmem:[#allocation15_spill] sm:$0xff] }
 0x1eb   :  { %1546 = vmatpush1.bf16.msra.mxu0 %v3818_v38  ;;  %1589 = vmatpush1.bf16.msra.mxu1 %v3822_v39  ;;  %v5266_v38 = vld [vmem:[#allocation16_spill] sm:$0xff]  ;;  %v5267_v39 = vld [vmem:[#allocation17_spill] sm:$0xff] }
 0x1ec   :  { %1547 = vmatprep.subr.bf16.mxu0 %v3824_v40  ;;  %1590 = vmatprep.subr.bf16.mxu1 %v3826_v41  ;;  %v5268_v40 = vld [vmem:[#allocation18_spill] sm:$0xff]  ;;  %v5269_v41 = vld [vmem:[#allocation19_spill] sm:$0xff] }
 0x1ef   :  { %1548 = vmatpush1.bf16.msra.mxu0 %v3832_v42  ;;  %1591 = vmatpush1.bf16.msra.mxu1 %v3836_v45  ;;  %v5270_v42 = vld [vmem:[#allocation20_spill] sm:$0xff]  ;;  %v5271_v45 = vld [vmem:[#allocation21_spill] sm:$0xff] }
 0x1f0   :  { %1549 = vmatprep.subr.bf16.mxu0 %v3838_v46  ;;  %1592 = vmatprep.subr.bf16.mxu1 %v3842_v47  ;;  %v5272_v46 = vld [vmem:[#allocation22_spill] sm:$0xff]  ;;  %v5273_v47 = vld [vmem:[#allocation23_spill] sm:$0xff] }
 0x1f3   :  { %1550 = vmatpush1.bf16.msra.mxu0 %v3849_v48  ;;  %1593 = vmatpush1.bf16.msra.mxu1 %v3853_v49  ;;  %v5274_v48 = vld [vmem:[#allocation24_spill] sm:$0xff]  ;;  %v5275_v49 = vld [vmem:[#allocation25_spill] sm:$0xff] }
 0x1f4   :  { %1551 = vmatprep.subr.bf16.mxu0 %v3856_v50  ;;  %1594 = vmatprep.subr.bf16.mxu1 %v3858_v51  ;;  %v5276_v50 = vld [vmem:[#allocation26_spill] sm:$0xff]  ;;  %v5277_v51 = vld [vmem:[#allocation27_spill] sm:$0xff] }
 0x1f7   :  { %1552 = vmatpush1.bf16.msra.mxu0 %v3864_v52  ;;  %1595 = vmatpush1.bf16.msra.mxu1 %v3868_v55 }
 0x1f8   :  { %1553 = vmatprep.subr.bf16.mxu0 %v3870_v56  ;;  %1596 = vmatprep.subr.bf16.mxu1 %v3874_v57 }
 0x1fb   :  { %1554 = vmatpush1.bf16.msra.mxu0 %v3881_v58  ;;  %1597 = vmatpush1.bf16.msra.mxu1 %v3885_v59 }
 0x1fc   :  { %1555 = vmatprep.subr.bf16.mxu0 %v3888_v60  ;;  %1598 = vmatprep.subr.bf16.mxu1 %v3890_v61 }
 0x1ff   :  { %1556 = vmatpush1.bf16.msra.mxu0 %v3896_v62  ;;  %1599 = vmatpush1.bf16.msra.mxu1 %v3900_v2 }
 0x200   :  { %1557 = vmatprep.subr.bf16.mxu0 %v3902_v3  ;;  %1600 = vmatprep.subr.bf16.mxu1 %v3906_v4 }
 0x203   :  { %1558 = vmatpush2.bf16.msra.mxu0 %v3913_v5  ;;  %1601 = vmatpush2.bf16.msra.mxu1 %v3917_v6 }
 0x204   :  { %1559 = vmatprep.subr.bf16.mxu0 %v3920_v7  ;;  %1602 = vmatprep.subr.bf16.mxu1 %v3922_v8 }
 0x207   :  { %1560 = vmatpush2.bf16.msra.mxu0 %v3928_v9  ;;  %1603 = vmatpush2.bf16.msra.mxu1 %v3932_v12 }
 0x208   :  { %1561 = vmatprep.subr.bf16.mxu0 %v3934_v13  ;;  %1604 = vmatprep.subr.bf16.mxu1 %v3938_v14 }
 0x20b   :  { %1562 = vmatpush2.bf16.msra.mxu0 %v3945_v15  ;;  %1605 = vmatpush2.bf16.msra.mxu1 %v5258_v27 }
 0x20c   :  { %1563 = vmatprep.subr.bf16.mxu0 %v5259_v28  ;;  %1606 = vmatprep.subr.bf16.mxu1 %v5260_v30 }
 0x20f   :  { %1564 = vmatpush2.bf16.msra.mxu0 %v5261_v31  ;;  %1607 = vmatpush2.bf16.msra.mxu1 %v5262_v32 }
 0x210   :  { %1565 = vmatprep.subr.bf16.mxu0 %v5263_v33  ;;  %1608 = vmatprep.subr.bf16.mxu1 %v5264_v36 }
 0x213   :  { %1566 = vmatpush2.bf16.msra.mxu0 %v5265_v37  ;;  %1609 = vmatpush2.bf16.msra.mxu1 %v5266_v38 }
 0x214   :  { %1567 = vmatprep.subr.bf16.mxu0 %v5267_v39  ;;  %1610 = vmatprep.subr.bf16.mxu1 %v5268_v40 }
 0x217   :  { %1568 = vmatpush2.bf16.msra.mxu0 %v5269_v41  ;;  %1611 = vmatpush2.bf16.msra.mxu1 %v5270_v42 }
 0x218   :  { %1569 = vmatprep.subr.bf16.mxu0 %v5271_v45  ;;  %1612 = vmatprep.subr.bf16.mxu1 %v5272_v46 }
 0x21b   :  { %1570 = vmatpush2.bf16.msra.mxu0 %v5273_v47  ;;  %1613 = vmatpush2.bf16.msra.mxu1 %v5274_v48 }
 0x21c   :  { %1571 = vmatprep.subr.bf16.mxu0 %v5275_v49  ;;  %1614 = vmatprep.subr.bf16.mxu1 %v5276_v50 }
 0x21f   :  { %1572 = vmatpush2.bf16.msra.mxu0 %v5277_v51  ;;  %1615 = vmatpush2.bf16.msra.mxu1 %v5278_v29 }
 0x220   :  { %1689 = vmatprep.subr.bf16.mxu0 %v4318_v1  ;;  %1732 = vmatprep.subr.bf16.mxu1 %v4321_v21 }
 0x2a2   :  { %v1427_v25 = vpop.f32.mrf.mxu0  ;;  %v1470_v18 = vpop.f32.mrf.mxu1 }
 0x2a3   :  { %v1479_v63 = vadd.f32 %v1427_v25, %v5281_v19  ;;  %v5285_v25 = vld [vmem:[#allocation32_spill] sm:$0xff] }
 0x2a4   :  { %v1429_v10 = vpop.f32.mrf.mxu0  ;;  %v1472_v26 = vpop.f32.mrf.mxu1 }
 0x2a5   :  { %v2942_v53 = vmul.f32 -1.442695, %v1479_v63  ;;  %v1480_v0 = vadd.f32 %v1429_v10, %v5282_v23  ;;  %v1482_v19 = vadd.f32 %v1472_v26, %v5285_v25  ;;  %v5286_v10 = vld [vmem:[#allocation36_spill] sm:$0xff] }
 0x2a6   :  { %v1431_v35 = vpop.f32.mrf.mxu0  ;;  %v1474_v24 = vpop.f32.mrf.mxu1 }
 0x2a7   :  { %3305 = vpow2.f32 %v2942_v53  ;;  %v2944_v17 = vmul.f32 -1.442695, %v1480_v0  ;;  %v1483_v54 = vadd.f32 %v1431_v35, %v5283_v16  ;;  %v2946_v1 = vmul.f32 -1.442695, %v1482_v19  ;;  %v5287_v0 = vld [vmem:[#allocation30_spill] sm:$0xff] }
 0x2a8   :  { %v1433_v11 = vpop.f32.mrf.mxu0  ;;  %v1476_v63 = vpop.f32.mrf.mxu1  ;;  %v1481_v29 = vadd.f32 %v1470_v18, %v5287_v0 }
 0x2a9   :  { %3307 = vpow2.f32 %v2944_v17  ;;  %v2943_v34 = vmul.f32 -1.442695, %v1483_v54  ;;  %v1484_v43 = vadd.f32 %v1433_v11, %v5284_v44  ;;  %v1486_v23 = vadd.f32 %v1476_v63, %v5286_v10 }
 0x2ab   :  { %3309 = vpow2.f32 %v2943_v34  ;;  %v2945_v21 = vmul.f32 -1.442695, %v1484_v43  ;;  %v2947_v17 = vmul.f32 -1.442695, %v1486_v23  ;;  %v5288_v34 = vld [vmem:[#allocation34_spill] sm:$0xff] }
 0x2ac   :  { %v1485_v43 = vadd.f32 %v1474_v24, %v5288_v34 }
 0x2ad   :  { %3311 = vpow2.f32 %v2945_v21 }
 0x2ae   :  { %3313 = vpow2.f32 %v2946_v1 }
 0x2b4   :  { %v3306_v53 = vpop.eup %3305 }
 0x2b5   :  { %v1493_v51 = vadd.f32 1.0, %v3306_v53 }
 0x2b6   :  { %v3308_v35 = vpop.eup %3307 }
 0x2b7   :  { %3315 = vrcp.f32 %v1493_v51  ;;  %v1505_v16 = vadd.f32 1.0, %v3308_v35 }
 0x2b8   :  { %v3310_v44 = vpop.eup %3309  ;;  %3317 = vtanh.f32 %v1481_v29 }
 0x2b9   :  { %3319 = vrcp.f32 %v1505_v16  ;;  %v1494_v21 = vadd.f32 1.0, %v3310_v44 }
 0x2ba   :  { %v3312_v26 = vpop.eup %3311  ;;  %3321 = vpow2.f32 %v2947_v17 }
 0x2bb   :  { %3323 = vrcp.f32 %v1494_v21  ;;  %v1506_v54 = vadd.f32 1.0, %v3312_v26  ;;  %v3314_v11 = vpop.eup %3313 }
 0x2bc   :  { %3325 = vtanh.f32 %v1485_v43  ;;  %v1519_v1 = vadd.f32 1.0, %v3314_v11 }
 0x2bd   :  { %3327 = vrcp.f32 %v1506_v54 }
 0x2be   :  { %3329 = vrcp.f32 %v1519_v1  ;;  %v4360_v1 = vld [vmem:[#allocation4 + $0xc4] ss:$16 sps:$4 sm:$0xff]  }
 0x2c4   :  { %v3316_v18 = vpop.eup %3315 }
 0x2c5   :  { %v3318_v25 = vpop.eup %3317 }
 0x2c6   :  { %v3320_v19 = vpop.eup %3319  ;;  %v1527_v51 = vmul.f32 %v3318_v25, %v3316_v18  ;;  %v4354_v25 = vld [vmem:[#allocation4 + $0xe0] ss:$16 sps:$4 sm:$0xff]  }
 0x2c7   :  { %v3322_v63 = vpop.eup %3321  ;;  %v1525_v10 = vmul.f32 %v3320_v19, %v4236_v22  ;;  %v4357_v19 = vld [vmem:[#allocation4 + $0xe8] ss:$16 sps:$4 sm:$0xff]  }
 0x2c8   :  { %v3324_v29 = vpop.eup %3323  ;;  %v1520_v0 = vadd.f32 1.0, %v3322_v63  ;;  %v4363_v63 = vld [vmem:[#allocation4 + $0xcc] ss:$16 sps:$4 sm:$0xff]  }
 0x2c9   :  { %v3326_v23 = vpop.eup %3325  ;;  %v4333_v24 = vadd.f32 %v1527_v51, %v1525_v10  ;;  %v4366_v51 = vld [vmem:[#allocation4 + $0xc0] ss:$16 sps:$4 sm:$0xff]   ;;  %v4369_v10 = vld [vmem:[#allocation4 + $0xc8] ss:$16 sps:$4 sm:$0xff]  }
 0x2ca   :  { %v3328_v53 = vpop.eup %3327  ;;  %v1528_v35 = vmul.f32 %v3326_v23, %v3324_v29  ;;  %v4372_v29 = vld [vmem:[#allocation4 + $0xa4] ss:$16 sps:$4 sm:$0xff]   ;;  %v4375_v23 = vld [vmem:[#allocation4 + $0xac] ss:$16 sps:$4 sm:$0xff]  }
 0x2cb   :  { %3331 = vtanh.f32 %v4333_v24  ;;  %v1526_v17 = vmul.f32 %v3328_v53, %v4239_v20  ;;  %v3330_v44 = vpop.eup %3329  ;;  %v4378_v53 = vld [vmem:[#allocation4 + $0xa0] ss:$16 sps:$4 sm:$0xff]  }
 0x2cc   :  { %3333 = vrcp.f32 %v1520_v0  ;;  %v4381_v0 = vld [vmem:[#allocation4 + $0xa8] ss:$16 sps:$4 sm:$0xff]  }
 0x2cd   :  { %v4337_v16 = vadd.f32 %v1528_v35, %v1526_v17  ;;  %v4384_v35 = vld [vmem:[#allocation4 + $0x84] ss:$16 sps:$4 sm:$0xff]   ;;  %v4387_v17 = vld [vmem:[#allocation4 + $0x8c] ss:$16 sps:$4 sm:$0xff]  }
 0x2cf   :  { %3335 = vtanh.f32 %v4337_v16 }
 0x2d8   :  { %v3332_v34 = vpop.eup %3331 }
 0x2d9   :  { %v4340_v22 = vmul.f32 %v3332_v34, %v3330_v44  ;;  %v3334_v43 = vpop.eup %3333  ;;  %v4390_v44 = vld [vmem:[#allocation4 + $0x80] ss:$16 sps:$4 sm:$0xff]   ;;  %v4393_v34 = vld [vmem:[#allocation4 + $0x88] ss:$16 sps:$4 sm:$0xff]  }
 0x2db   :  { %5289 = vst [vmem:[#allocation10_spill] sm:$0xff] %v4340_v22  ;;  %v4345_v54 = vmul.f32 0.0, %v4340_v22 }
 0x2dc   :  { %v3336_v21 = vpop.eup %3335 }
 0x2dd   :  { %v4342_v26 = vmul.f32 %v3336_v21, %v3334_v43  ;;  %5291 = vst [vmem:[#allocation12_spill] sm:$0xff] %v4345_v54  ;;  %v4396_v43 = vld [vmem:[#allocation4 + $0x64] ss:$16 sps:$4 sm:$0xff]   ;;  %v4399_v21 = vld [vmem:[#allocation4 + $0x6c] ss:$16 sps:$4 sm:$0xff]  }
 0x2df   :  { %5290 = vst [vmem:[#allocation11_spill] sm:$0xff] %v4342_v26  ;;  %v1540_v11 = vpack.c.bf16 %v4342_v26, %v4345_v54  ;;  %v4350_v20 = vmul.f32 0.0, %v4342_v26  ;;  %v4411_v54 = vld [vmem:[#allocation4 + $0x4c] ss:$16 sps:$4 sm:$0xff]  }
 0x2e0   :  { %v4613_v26 = vld [vmem:[#allocation4 + $0x12c] ss:$16 sps:$4 sm:$0xff]  }
 0x2e1   :  { %5292 = vst [vmem:[#allocation13_spill] sm:$0xff] %v4350_v20  ;;  %1573 = vmatprep.mubr.bf16.mxu0 %v1540_v11  ;;  %1616 = vmatprep.mubr.bf16.mxu1 %v1540_v11  ;;  %v1539_v18 = vpack.c.bf16 %v4350_v20, %v4340_v22  ;;  %v4402_v11 = vld [vmem:[#allocation4 + $0x60] ss:$16 sps:$4 sm:$0xff]   ;;  %v4408_v22 = vld [vmem:[#allocation4 + $0x44] ss:$16 sps:$4 sm:$0xff]   ;;  %5324 = vst [vmem:[#allocation30_spill] sm:$0xff] %v4613_v26 }
 0x2e2   :  { %v4610_v20 = vld [vmem:[#allocation4 + $0x124] ss:$16 sps:$4 sm:$0xff]  }
 0x2e3   :  { %1574 = vmatmul.mubr.bf16.vlgmr.msra.gmra.mxu0 %v1539_v18  ;;  %1617 = vmatmul.mubr.bf16.vlgmr.msra.gmra.mxu1 %v1539_v18  ;;  %v4405_v18 = vld [vmem:[#allocation4 + $0x68] ss:$16 sps:$4 sm:$0xff]   ;;  %5323 = vst [vmem:[#allocation36_spill] sm:$0xff] %v4610_v20 }
 0x2e4   :  { %1690 = vmatpush1.bf16.msra.mxu0 %v4354_v25  ;;  %1733 = vmatpush1.bf16.msra.mxu1 %v4357_v19 }
 0x2e5   :  { %1691 = vmatprep.subr.bf16.mxu0 %v4360_v1  ;;  %1734 = vmatprep.subr.bf16.mxu1 %v4363_v63 }
 0x2e8   :  { %1692 = vmatpush1.bf16.msra.mxu0 %v4366_v51  ;;  %1735 = vmatpush1.bf16.msra.mxu1 %v4369_v10 }
 0x2e9   :  { %1693 = vmatprep.subr.bf16.mxu0 %v4372_v29  ;;  %1736 = vmatprep.subr.bf16.mxu1 %v4375_v23 }
 0x2ec   :  { %1694 = vmatpush1.bf16.msra.mxu0 %v4378_v53  ;;  %1737 = vmatpush1.bf16.msra.mxu1 %v4381_v0 }
 0x2ed   :  { %1695 = vmatprep.subr.bf16.mxu0 %v4384_v35  ;;  %1738 = vmatprep.subr.bf16.mxu1 %v4387_v17 }
 0x2f0   :  { %1696 = vmatpush1.bf16.msra.mxu0 %v4390_v44  ;;  %1739 = vmatpush1.bf16.msra.mxu1 %v4393_v34 }
 0x2f1   :  { %1697 = vmatprep.subr.bf16.mxu0 %v4396_v43  ;;  %1740 = vmatprep.subr.bf16.mxu1 %v4399_v21 }
 0x2f4   :  { %1698 = vmatpush1.bf16.msra.mxu0 %v4402_v11  ;;  %1741 = vmatpush1.bf16.msra.mxu1 %v4405_v18 }
 0x2f5   :  { %1699 = vmatprep.subr.bf16.mxu0 %v4408_v22  ;;  %1742 = vmatprep.subr.bf16.mxu1 %v4411_v54 }
 0x2f8   :  { %1700 = vmatpush1.bf16.msra.mxu0 %v3864_v52  ;;  %1743 = vmatpush1.bf16.msra.mxu1 %v3868_v55  ;;  %v5293_v52 = vld [vmem:[#allocation27_spill] sm:$0xff]  ;;  %v5294_v55 = vld [vmem:[#allocation28_spill] sm:$0xff] }
 0x2f9   :  { %1701 = vmatprep.subr.bf16.mxu0 %v3870_v56  ;;  %1744 = vmatprep.subr.bf16.mxu1 %v3874_v57  ;;  %v5295_v56 = vld [vmem:[#allocation8_spill] sm:$0xff]  ;;  %v5296_v57 = vld [vmem:[#allocation9_spill] sm:$0xff] }
 0x2fc   :  { %1702 = vmatpush1.bf16.msra.mxu0 %v3881_v58  ;;  %1745 = vmatpush1.bf16.msra.mxu1 %v3885_v59  ;;  %v5297_v59 = vld [vmem:[#allocation37_spill] sm:$0xff] }
 0x2fd   :  { %1703 = vmatprep.subr.bf16.mxu0 %v3888_v60  ;;  %1746 = vmatprep.subr.bf16.mxu1 %v3890_v61 }
 0x300   :  { %1704 = vmatpush1.bf16.msra.mxu0 %v3896_v62  ;;  %1747 = vmatpush1.bf16.msra.mxu1 %v3900_v2 }
 0x301   :  { %1705 = vmatprep.subr.bf16.mxu0 %v3902_v3  ;;  %1748 = vmatprep.subr.bf16.mxu1 %v3906_v4  ;;  %v5298_v3 = vld [vmem:[#allocation39_spill] sm:$0xff] }
 0x304   :  { %1706 = vmatpush2.bf16.msra.mxu0 %v3913_v5  ;;  %1749 = vmatpush2.bf16.msra.mxu1 %v3917_v6 }
 0x305   :  { %1707 = vmatprep.subr.bf16.mxu0 %v3920_v7  ;;  %1750 = vmatprep.subr.bf16.mxu1 %v3922_v8  ;;  %v5299_v8 = vld [vmem:[#allocation41_spill] sm:$0xff] }
 0x308   :  { %1708 = vmatpush2.bf16.msra.mxu0 %v3928_v9  ;;  %1751 = vmatpush2.bf16.msra.mxu1 %v3932_v12 }
 0x309   :  { %1709 = vmatprep.subr.bf16.mxu0 %v3934_v13  ;;  %1752 = vmatprep.subr.bf16.mxu1 %v3938_v14  ;;  %v5300_v14 = vld [vmem:[#allocation43_spill] sm:$0xff] }
 0x30c   :  { %1710 = vmatpush2.bf16.msra.mxu0 %v3945_v15  ;;  %1753 = vmatpush2.bf16.msra.mxu1 %v5258_v27 }
 0x30d   :  { %1711 = vmatprep.subr.bf16.mxu0 %v5259_v28  ;;  %1754 = vmatprep.subr.bf16.mxu1 %v5260_v30  ;;  %v5301_v30 = vld [vmem:[#allocation40_spill] sm:$0xff] }
 0x310   :  { %1712 = vmatpush2.bf16.msra.mxu0 %v5261_v31  ;;  %1755 = vmatpush2.bf16.msra.mxu1 %v5262_v32 }
 0x311   :  { %1713 = vmatprep.subr.bf16.mxu0 %v5263_v33  ;;  %1756 = vmatprep.subr.bf16.mxu1 %v5264_v36  ;;  %v5302_v36 = vld [vmem:[#allocation44_spill] sm:$0xff] }
 0x314   :  { %1714 = vmatpush2.bf16.msra.mxu0 %v5265_v37  ;;  %1757 = vmatpush2.bf16.msra.mxu1 %v5266_v38 }
 0x315   :  { %1715 = vmatprep.subr.bf16.mxu0 %v5267_v39  ;;  %1758 = vmatprep.subr.bf16.mxu1 %v5268_v40  ;;  %v5303_v39 = vld [vmem:[#allocation38_spill] sm:$0xff] }
 0x318   :  { %1716 = vmatpush2.bf16.msra.mxu0 %v5269_v41  ;;  %1759 = vmatpush2.bf16.msra.mxu1 %v5270_v42 }
 0x319   :  { %1717 = vmatprep.subr.bf16.mxu0 %v5271_v45  ;;  %1760 = vmatprep.subr.bf16.mxu1 %v5272_v46 }
 0x31c   :  { %1718 = vmatpush2.bf16.msra.mxu0 %v5273_v47  ;;  %1761 = vmatpush2.bf16.msra.mxu1 %v5274_v48  ;;  %v5304_v48 = vld [vmem:[#allocation42_spill] sm:$0xff] }
 0x31d   :  { %1719 = vmatprep.subr.bf16.mxu0 %v5275_v49  ;;  %1762 = vmatprep.subr.bf16.mxu1 %v5276_v50 }
 0x320   :  { %1720 = vmatpush2.bf16.msra.mxu0 %v5293_v52  ;;  %1763 = vmatpush2.bf16.msra.mxu1 %v5294_v55 }
 0x321   :  { %1837 = vmatprep.subr.bf16.mxu0 %v5295_v56  ;;  %1880 = vmatprep.subr.bf16.mxu1 %v5296_v57 }
 0x3a3   :  { %v1575_v58 = vpop.f32.mrf.mxu0  ;;  %v1618_v61 = vpop.f32.mrf.mxu1 }
 0x3a4   :  { %v1627_v60 = vadd.f32 %v1575_v58, %v5297_v59  ;;  %v1629_v40 = vadd.f32 %v1618_v61, %v5303_v39  ;;  %v4514_v39 = vld [vmem:[#allocation4 + $0x24] ss:$16 sps:$4 sm:$0xff]  }
 0x3a5   :  { %v1577_v62 = vpop.f32.mrf.mxu0  ;;  %v1620_v7 = vpop.f32.mrf.mxu1 }
 0x3a6   :  { %v2948_v2 = vmul.f32 -1.442695, %v1627_v60  ;;  %v1628_v4 = vadd.f32 %v1577_v62, %v5298_v3  ;;  %v1630_v31 = vadd.f32 %v1620_v7, %v5301_v30 }
 0x3a7   :  { %v1579_v5 = vpop.f32.mrf.mxu0  ;;  %v1622_v27 = vpop.f32.mrf.mxu1 }
 0x3a8   :  { %3337 = vpow2.f32 %v2948_v2  ;;  %v2950_v6 = vmul.f32 -1.442695, %v1628_v4  ;;  %v1631_v9 = vadd.f32 %v1579_v5, %v5299_v8  ;;  %v2952_v33 = vmul.f32 -1.442695, %v1630_v31 }
 0x3a9   :  { %v1581_v12 = vpop.f32.mrf.mxu0  ;;  %v1624_v32 = vpop.f32.mrf.mxu1  ;;  %v1633_v49 = vadd.f32 %v1622_v27, %v5304_v48  ;;  %v4535_v48 = vld [vmem:[#allocation4 + $0x8] ss:$16 sps:$4 sm:$0xff]  }
 0x3aa   :  { %3339 = vpow2.f32 %v2950_v6  ;;  %v2949_v13 = vmul.f32 -1.442695, %v1631_v9  ;;  %v1632_v15 = vadd.f32 %v1581_v12, %v5300_v14  ;;  %v1634_v37 = vadd.f32 %v1624_v32, %v5302_v36 }
 0x3ac   :  { %3341 = vpow2.f32 %v2949_v13  ;;  %v2951_v28 = vmul.f32 -1.442695, %v1632_v15  ;;  %v2953_v45 = vmul.f32 -1.442695, %v1634_v37  ;;  %v4508_v37 = vld [vmem:[#allocation4 + $0x40] ss:$16 sps:$4 sm:$0xff]  }
 0x3ae   :  { %3343 = vpow2.f32 %v2951_v28 }
 0x3af   :  { %3345 = vpow2.f32 %v2952_v33 }
 0x3b5   :  { %v3338_v38 = vpop.eup %3337 }
 0x3b6   :  { %v1641_v41 = vadd.f32 1.0, %v3338_v38  ;;  %v4511_v38 = vld [vmem:[#allocation4 + $0x48] ss:$16 sps:$4 sm:$0xff]  }
 0x3b7   :  { %v3340_v42 = vpop.eup %3339 }
 0x3b8   :  { %3347 = vrcp.f32 %v1641_v41  ;;  %v1653_v46 = vadd.f32 1.0, %v3340_v42  ;;  %v4520_v41 = vld [vmem:[#allocation4 + $0x20] ss:$16 sps:$4 sm:$0xff]   ;;  %v4523_v42 = vld [vmem:[#allocation4 + $0x28] ss:$16 sps:$4 sm:$0xff]  }
 0x3b9   :  { %v3342_v47 = vpop.eup %3341  ;;  %3349 = vtanh.f32 %v1629_v40  ;;  %v4517_v40 = vld [vmem:[#allocation4 + $0x2c] ss:$16 sps:$4 sm:$0xff]  }
 0x3ba   :  { %3351 = vrcp.f32 %v1653_v46  ;;  %v1642_v50 = vadd.f32 1.0, %v3342_v47  ;;  %v4529_v46 = vld [vmem:[#allocation4 + $0xc] ss:$16 sps:$4 sm:$0xff]   ;;  %v4532_v47 = vld [vmem:[#allocation4] ss:$16 sps:$4 sm:$0xff]  }
 0x3bb   :  { %v3344_v52 = vpop.eup %3343  ;;  %3353 = vpow2.f32 %v2953_v45  ;;  %v4526_v45 = vld [vmem:[#allocation4 + $0x4] ss:$16 sps:$4 sm:$0xff]  }
 0x3bc   :  { %3355 = vrcp.f32 %v1642_v50  ;;  %v1654_v55 = vadd.f32 1.0, %v3344_v52  ;;  %v3346_v58 = vpop.eup %3345  ;;  %v4541_v50 = vld [vmem:[#allocation4 + $0x1ec] ss:$16 sps:$4 sm:$0xff]   ;;  %v4544_v52 = vld [vmem:[#allocation4 + $0x1e0] ss:$16 sps:$4 sm:$0xff]  }
 0x3bd   :  { %3357 = vtanh.f32 %v1633_v49  ;;  %v1667_v62 = vadd.f32 1.0, %v3346_v58  ;;  %v4538_v49 = vld [vmem:[#allocation4 + $0x1e4] ss:$16 sps:$4 sm:$0xff]  }
 0x3be   :  { %3359 = vrcp.f32 %v1654_v55  ;;  %v4547_v55 = vld [vmem:[#allocation4 + $0x1e8] ss:$16 sps:$4 sm:$0xff]   ;;  %v4550_v58 = vld [vmem:[#allocation4 + $0x1c4] ss:$16 sps:$4 sm:$0xff]  }
 0x3bf   :  { %3361 = vrcp.f32 %v1667_v62  ;;  %v4562_v62 = vld [vmem:[#allocation4 + $0x1a4] ss:$16 sps:$4 sm:$0xff]  }
 0x3c5   :  { %v3348_v59 = vpop.eup %3347 }
 0x3c6   :  { %v3350_v60 = vpop.eup %3349 }
 0x3c7   :  { %v3352_v61 = vpop.eup %3351  ;;  %v1675_v3 = vmul.f32 %v3350_v60, %v3348_v59  ;;  %v4553_v59 = vld [vmem:[#allocation4 + $0x1cc] ss:$16 sps:$4 sm:$0xff]   ;;  %v4556_v60 = vld [vmem:[#allocation4 + $0x1c0] ss:$16 sps:$4 sm:$0xff]  }
 0x3c8   :  { %v3354_v2 = vpop.eup %3353  ;;  %v1673_v4 = vmul.f32 %v3352_v61, %v4333_v24  ;;  %v4559_v61 = vld [vmem:[#allocation4 + $0x1c8] ss:$16 sps:$4 sm:$0xff]  }
 0x3c9   :  { %v3356_v5 = vpop.eup %3355  ;;  %v1668_v9 = vadd.f32 1.0, %v3354_v2  ;;  %v4565_v2 = vld [vmem:[#allocation4 + $0x1ac] ss:$16 sps:$4 sm:$0xff]  }
 0x3ca   :  { %v3358_v6 = vpop.eup %3357  ;;  %v4467_v7 = vadd.f32 %v1675_v3, %v1673_v4  ;;  %v4568_v3 = vld [vmem:[#allocation4 + $0x1a0] ss:$16 sps:$4 sm:$0xff]   ;;  %v4571_v4 = vld [vmem:[#allocation4 + $0x1a8] ss:$16 sps:$4 sm:$0xff]  }
 0x3cb   :  { %v3360_v8 = vpop.eup %3359  ;;  %v1676_v12 = vmul.f32 %v3358_v6, %v3356_v5  ;;  %5309 = vst [vmem:[#allocation18_spill] sm:$0xff] %v4568_v3  ;;  %5310 = vst [vmem:[#allocation19_spill] sm:$0xff] %v4571_v4  ;;  %v4574_v5 = vld [vmem:[#allocation4 + $0x184] ss:$16 sps:$4 sm:$0xff]   ;;  %v4577_v6 = vld [vmem:[#allocation4 + $0x18c] ss:$16 sps:$4 sm:$0xff]  }
 0x3cc   :  { %3363 = vtanh.f32 %v4467_v7  ;;  %v1674_v13 = vmul.f32 %v3360_v8, %v4337_v16  ;;  %v3362_v15 = vpop.eup %3361  ;;  %5311 = vst [vmem:[#allocation20_spill] sm:$0xff] %v4574_v5  ;;  %5312 = vst [vmem:[#allocation21_spill] sm:$0xff] %v4577_v6  ;;  %v4580_v8 = vld [vmem:[#allocation4 + $0x180] ss:$16 sps:$4 sm:$0xff]  }
 0x3cd   :  { %3365 = vrcp.f32 %v1668_v9  ;;  %5313 = vst [vmem:[#allocation22_spill] sm:$0xff] %v4580_v8  ;;  %v4583_v9 = vld [vmem:[#allocation4 + $0x188] ss:$16 sps:$4 sm:$0xff]  }
 0x3ce   :  { %v4471_v14 = vadd.f32 %v1676_v12, %v1674_v13  ;;  %5314 = vst [vmem:[#allocation23_spill] sm:$0xff] %v4583_v9  ;;  %v4586_v12 = vld [vmem:[#allocation4 + $0x164] ss:$16 sps:$4 sm:$0xff]   ;;  %v4589_v13 = vld [vmem:[#allocation4 + $0x16c] ss:$16 sps:$4 sm:$0xff]  }
 0x3cf   :  { %5315 = vst [vmem:[#allocation24_spill] sm:$0xff] %v4586_v12  ;;  %5316 = vst [vmem:[#allocation25_spill] sm:$0xff] %v4589_v13 }
 0x3d0   :  { %3367 = vtanh.f32 %v4471_v14 }
 0x3d9   :  { %v3364_v27 = vpop.eup %3363 }
 0x3da   :  { %v4474_v24 = vmul.f32 %v3364_v27, %v3362_v15  ;;  %v3366_v28 = vpop.eup %3365  ;;  %v4592_v15 = vld [vmem:[#allocation4 + $0x160] ss:$16 sps:$4 sm:$0xff]   ;;  %v4595_v27 = vld [vmem:[#allocation4 + $0x168] ss:$16 sps:$4 sm:$0xff]  }
 0x3db   :  { %5317 = vst [vmem:[#allocation26_spill] sm:$0xff] %v4592_v15  ;;  %5318 = vst [vmem:[#allocation29_spill] sm:$0xff] %v4595_v27 }
 0x3dc   :  { %5305 = vst [vmem:[#allocation14_spill] sm:$0xff] %v4474_v24  ;;  %v4479_v32 = vmul.f32 0.0, %v4474_v24 }
 0x3dd   :  { %v3368_v30 = vpop.eup %3367 }
 0x3de   :  { %v4476_v31 = vmul.f32 %v3368_v30, %v3366_v28  ;;  %5307 = vst [vmem:[#allocation16_spill] sm:$0xff] %v4479_v32  ;;  %v4598_v28 = vld [vmem:[#allocation4 + $0x144] ss:$16 sps:$4 sm:$0xff]   ;;  %v4601_v30 = vld [vmem:[#allocation4 + $0x14c] ss:$16 sps:$4 sm:$0xff]  }
 0x3df   :  { %5319 = vst [vmem:[#allocation31_spill] sm:$0xff] %v4598_v28  ;;  %5320 = vst [vmem:[#allocation33_spill] sm:$0xff] %v4601_v30 }
 0x3e0   :  { %5306 = vst [vmem:[#allocation15_spill] sm:$0xff] %v4476_v31  ;;  %v1688_v33 = vpack.c.bf16 %v4476_v31, %v4479_v32  ;;  %v4484_v16 = vmul.f32 0.0, %v4476_v31  ;;  %v4619_v32 = vld [vmem:[#allocation4 + $0x128] ss:$16 sps:$4 sm:$0xff]   ;;  %v4622_v31 = vld [vmem:[#allocation4 + $0x104] ss:$16 sps:$4 sm:$0xff]  }
 0x3e1   :  { %5326 = vst [vmem:[#allocation27_spill] sm:$0xff] %v4619_v32  ;;  %5327 = vst [vmem:[#allocation28_spill] sm:$0xff] %v4622_v31 }
 0x3e2   :  { %5308 = vst [vmem:[#allocation17_spill] sm:$0xff] %v4484_v16  ;;  %1721 = vmatprep.mubr.bf16.mxu0 %v1688_v33  ;;  %1764 = vmatprep.mubr.bf16.mxu1 %v1688_v33  ;;  %v1687_v36 = vpack.c.bf16 %v4484_v16, %v4474_v24  ;;  %v4604_v33 = vld [vmem:[#allocation4 + $0x140] ss:$16 sps:$4 sm:$0xff]   ;;  %v4625_v16 = vld [vmem:[#allocation4 + $0x10c] ss:$16 sps:$4 sm:$0xff]  }
 0x3e3   :  { %5321 = vst [vmem:[#allocation35_spill] sm:$0xff] %v4604_v33  ;;  %v4616_v24 = vld [vmem:[#allocation4 + $0x120] ss:$16 sps:$4 sm:$0xff]   ;;  %5328 = vst [vmem:[#allocation37_spill] sm:$0xff] %v4625_v16 }
 0x3e4   :  { %1722 = vmatmul.mubr.bf16.vlgmr.msra.gmra.mxu0 %v1687_v36  ;;  %1765 = vmatmul.mubr.bf16.vlgmr.msra.gmra.mxu1 %v1687_v36  ;;  %v4607_v36 = vld [vmem:[#allocation4 + $0x148] ss:$16 sps:$4 sm:$0xff]   ;;  %5325 = vst [vmem:[#allocation34_spill] sm:$0xff] %v4616_v24 }
 0x3e5   :  { %1838 = vmatpush1.bf16.msra.mxu0 %v4354_v25  ;;  %1881 = vmatpush1.bf16.msra.mxu1 %v4357_v19  ;;  %5322 = vst [vmem:[#allocation32_spill] sm:$0xff] %v4607_v36 }
 0x3e6   :  { %1839 = vmatprep.subr.bf16.mxu0 %v4360_v1  ;;  %1882 = vmatprep.subr.bf16.mxu1 %v4363_v63 }
 0x3e9   :  { %1840 = vmatpush1.bf16.msra.mxu0 %v4366_v51  ;;  %1883 = vmatpush1.bf16.msra.mxu1 %v4369_v10 }
 0x3ea   :  { %1841 = vmatprep.subr.bf16.mxu0 %v4372_v29  ;;  %1884 = vmatprep.subr.bf16.mxu1 %v4375_v23 }
 0x3ed   :  { %1842 = vmatpush1.bf16.msra.mxu0 %v4378_v53  ;;  %1885 = vmatpush1.bf16.msra.mxu1 %v4381_v0 }
 0x3ee   :  { %1843 = vmatprep.subr.bf16.mxu0 %v4384_v35  ;;  %1886 = vmatprep.subr.bf16.mxu1 %v4387_v17 }
 0x3f1   :  { %1844 = vmatpush1.bf16.msra.mxu0 %v4390_v44  ;;  %1887 = vmatpush1.bf16.msra.mxu1 %v4393_v34 }
 0x3f2   :  { %1845 = vmatprep.subr.bf16.mxu0 %v4396_v43  ;;  %1888 = vmatprep.subr.bf16.mxu1 %v4399_v21 }
 0x3f5   :  { %1846 = vmatpush1.bf16.msra.mxu0 %v4402_v11  ;;  %1889 = vmatpush1.bf16.msra.mxu1 %v4405_v18 }
 0x3f6   :  { %1847 = vmatprep.subr.bf16.mxu0 %v4408_v22  ;;  %1890 = vmatprep.subr.bf16.mxu1 %v4411_v54 }
 0x3f9   :  { %1848 = vmatpush1.bf16.msra.mxu0 %v4508_v37  ;;  %1891 = vmatpush1.bf16.msra.mxu1 %v4511_v38 }
 0x3fa   :  { %1849 = vmatprep.subr.bf16.mxu0 %v4514_v39  ;;  %1892 = vmatprep.subr.bf16.mxu1 %v4517_v40 }
 0x3fd   :  { %1850 = vmatpush1.bf16.msra.mxu0 %v4520_v41  ;;  %1893 = vmatpush1.bf16.msra.mxu1 %v4523_v42 }
 0x3fe   :  { %1851 = vmatprep.subr.bf16.mxu0 %v4526_v45  ;;  %1894 = vmatprep.subr.bf16.mxu1 %v4529_v46 }
 0x401   :  { %1852 = vmatpush1.bf16.msra.mxu0 %v4532_v47  ;;  %1895 = vmatpush1.bf16.msra.mxu1 %v4535_v48 }
 0x402   :  { %1853 = vmatprep.subr.bf16.mxu0 %v4538_v49  ;;  %1896 = vmatprep.subr.bf16.mxu1 %v4541_v50 }
 0x405   :  { %1854 = vmatpush2.bf16.msra.mxu0 %v4544_v52  ;;  %1897 = vmatpush2.bf16.msra.mxu1 %v4547_v55 }
 0x406   :  { %1855 = vmatprep.subr.bf16.mxu0 %v4550_v58  ;;  %1898 = vmatprep.subr.bf16.mxu1 %v4553_v59 }
 0x409   :  { %1856 = vmatpush2.bf16.msra.mxu0 %v4556_v60  ;;  %1899 = vmatpush2.bf16.msra.mxu1 %v4559_v61 }
 0x40a   :  { %1857 = vmatprep.subr.bf16.mxu0 %v4562_v62  ;;  %1900 = vmatprep.subr.bf16.mxu1 %v4565_v2 }
 0x40d   :  { %1858 = vmatpush2.bf16.msra.mxu0 %v4568_v3  ;;  %1901 = vmatpush2.bf16.msra.mxu1 %v4571_v4 }
 0x40e   :  { %1859 = vmatprep.subr.bf16.mxu0 %v4574_v5  ;;  %1902 = vmatprep.subr.bf16.mxu1 %v4577_v6 }
 0x411   :  { %1860 = vmatpush2.bf16.msra.mxu0 %v4580_v8  ;;  %1903 = vmatpush2.bf16.msra.mxu1 %v4583_v9 }
 0x412   :  { %1861 = vmatprep.subr.bf16.mxu0 %v4586_v12  ;;  %1904 = vmatprep.subr.bf16.mxu1 %v4589_v13  ;;  %v5333_v13 = vld [vmem:[#allocation49_spill] sm:$0xff] }
 0x415   :  { %1862 = vmatpush2.bf16.msra.mxu0 %v4592_v15  ;;  %1905 = vmatpush2.bf16.msra.mxu1 %v4595_v27 }
 0x416   :  { %1863 = vmatprep.subr.bf16.mxu0 %v4598_v28  ;;  %1906 = vmatprep.subr.bf16.mxu1 %v4601_v30  ;;  %v5332_v28 = vld [vmem:[#allocation47_spill] sm:$0xff] }
 0x419   :  { %1864 = vmatpush2.bf16.msra.mxu0 %v4604_v33  ;;  %1907 = vmatpush2.bf16.msra.mxu1 %v4607_v36 }
 0x41a   :  { %1865 = vmatprep.subr.bf16.mxu0 %v4610_v20  ;;  %1908 = vmatprep.subr.bf16.mxu1 %v4613_v26  ;;  %v4628_v20 = vld [vmem:[#allocation4 + $0x100] ss:$16 sps:$4 sm:$0xff]   ;;  %v4631_v26 = vld [vmem:[#allocation4 + $0x108] ss:$16 sps:$4 sm:$0xff]  }
 0x41b   :  { %5329 = vst [vmem:[#allocation39_spill] sm:$0xff] %v4628_v20  ;;  %5330 = vst [vmem:[#allocation41_spill] sm:$0xff] %v4631_v26 }
 0x41d   :  { %1866 = vmatpush2.bf16.msra.mxu0 %v4616_v24  ;;  %1909 = vmatpush2.bf16.msra.mxu1 %v4619_v32  ;;  %v5331_v24 = vld [vmem:[#allocation45_spill] sm:$0xff] }
 0x41e   :  { %1867 = vmatprep.subr.bf16.mxu0 %v4622_v31  ;;  %1910 = vmatprep.subr.bf16.mxu1 %v4625_v16 }
 0x421   :  { %1868 = vmatpush2.bf16.msra.mxu0 %v4628_v20  ;;  %1911 = vmatpush2.bf16.msra.mxu1 %v4631_v26 }
 0x422   :  { %1985 = vmatprep.subr.bf16.mxu0 %v5295_v56  ;;  %2028 = vmatprep.subr.bf16.mxu1 %v5296_v57  ;;  %v5334_v56 = vld [vmem:[#allocation51_spill] sm:$0xff] }
 0x4a4   :  { %v1723_v32 = vpop.f32.mrf.mxu0  ;;  %v1766_v31 = vpop.f32.mrf.mxu1 }
 0x4a5   :  { %v1775_v36 = vadd.f32 %v1723_v32, %v5331_v24  ;;  %v5335_v24 = vld [vmem:[#allocation48_spill] sm:$0xff] }
 0x4a6   :  { %v1725_v33 = vpop.f32.mrf.mxu0  ;;  %v1768_v20 = vpop.f32.mrf.mxu1 }
 0x4a7   :  { %v2954_v30 = vmul.f32 -1.442695, %v1775_v36  ;;  %v1776_v16 = vadd.f32 %v1725_v33, %v5332_v28  ;;  %v1778_v32 = vadd.f32 %v1768_v20, %v5335_v24  ;;  %v5336_v28 = vld [vmem:[#allocation52_spill] sm:$0xff] }
 0x4a8   :  { %v1727_v27 = vpop.f32.mrf.mxu0  ;;  %v1770_v57 = vpop.f32.mrf.mxu1 }
 0x4a9   :  { %3369 = vpow2.f32 %v2954_v30  ;;  %v2956_v15 = vmul.f32 -1.442695, %v1776_v16  ;;  %v1779_v12 = vadd.f32 %v1727_v27, %v5333_v13  ;;  %v2958_v5 = vmul.f32 -1.442695, %v1778_v32  ;;  %v5337_v16 = vld [vmem:[#allocation46_spill] sm:$0xff] }
 0x4aa   :  { %v1729_v9 = vpop.f32.mrf.mxu0  ;;  %v1772_v36 = vpop.f32.mrf.mxu1  ;;  %v1777_v4 = vadd.f32 %v1766_v31, %v5337_v16 }
 0x4ab   :  { %3371 = vpow2.f32 %v2956_v15  ;;  %v2955_v26 = vmul.f32 -1.442695, %v1779_v12  ;;  %v1780_v8 = vadd.f32 %v1729_v9, %v5334_v56  ;;  %v1782_v33 = vadd.f32 %v1772_v36, %v5336_v28 }
 0x4ad   :  { %3373 = vpow2.f32 %v2955_v26  ;;  %v2957_v6 = vmul.f32 -1.442695, %v1780_v8  ;;  %v2959_v15 = vmul.f32 -1.442695, %v1782_v33  ;;  %v5338_v26 = vld [vmem:[#allocation50_spill] sm:$0xff] }
 0x4ae   :  { %v1781_v8 = vadd.f32 %v1770_v57, %v5338_v26 }
 0x4af   :  { %3375 = vpow2.f32 %v2957_v6 }
 0x4b0   :  { %3377 = vpow2.f32 %v2958_v5 }
 0x4b6   :  { %v3370_v30 = vpop.eup %3369 }
 0x4b7   :  { %v1789_v3 = vadd.f32 1.0, %v3370_v30 }
 0x4b8   :  { %v3372_v13 = vpop.eup %3371 }
 0x4b9   :  { %3379 = vrcp.f32 %v1789_v3  ;;  %v1801_v12 = vadd.f32 1.0, %v3372_v13 }
 0x4ba   :  { %v3374_v56 = vpop.eup %3373  ;;  %3381 = vtanh.f32 %v1777_v4 }
 0x4bb   :  { %3383 = vrcp.f32 %v1801_v12  ;;  %v1790_v6 = vadd.f32 1.0, %v3374_v56 }
 0x4bc   :  { %v3376_v20 = vpop.eup %3375  ;;  %3385 = vpow2.f32 %v2959_v15 }
 0x4bd   :  { %3387 = vrcp.f32 %v1790_v6  ;;  %v1802_v9 = vadd.f32 1.0, %v3376_v20  ;;  %v3378_v27 = vpop.eup %3377 }
 0x4be   :  { %3389 = vtanh.f32 %v1781_v8  ;;  %v1815_v5 = vadd.f32 1.0, %v3378_v27 }
 0x4bf   :  { %3391 = vrcp.f32 %v1802_v9 }
 0x4c0   :  { %3393 = vrcp.f32 %v1815_v5  ;;  %v5345_v5 = vld [vmem:[#allocation20_spill] sm:$0xff] }
 0x4c6   :  { %v3380_v31 = vpop.eup %3379 }
 0x4c7   :  { %v3382_v24 = vpop.eup %3381 }
 0x4c8   :  { %v3384_v32 = vpop.eup %3383  ;;  %v1823_v3 = vmul.f32 %v3382_v24, %v3380_v31  ;;  %v5343_v24 = vld [vmem:[#allocation18_spill] sm:$0xff] }
 0x4c9   :  { %v3386_v36 = vpop.eup %3385  ;;  %v1821_v28 = vmul.f32 %v3384_v32, %v4467_v7  ;;  %v5344_v32 = vld [vmem:[#allocation19_spill] sm:$0xff] }
 0x4ca   :  { %v3388_v4 = vpop.eup %3387  ;;  %v1816_v16 = vadd.f32 1.0, %v3386_v36  ;;  %v5346_v36 = vld [vmem:[#allocation21_spill] sm:$0xff] }
 0x4cb   :  { %v3390_v33 = vpop.eup %3389  ;;  %v4645_v57 = vadd.f32 %v1823_v3, %v1821_v28  ;;  %v5347_v3 = vld [vmem:[#allocation22_spill] sm:$0xff]  ;;  %v5348_v28 = vld [vmem:[#allocation23_spill] sm:$0xff] }
 0x4cc   :  { %v3392_v30 = vpop.eup %3391  ;;  %v1824_v13 = vmul.f32 %v3390_v33, %v3388_v4  ;;  %v5349_v4 = vld [vmem:[#allocation24_spill] sm:$0xff]  ;;  %v5350_v33 = vld [vmem:[#allocation25_spill] sm:$0xff] }
 0x4cd   :  { %3395 = vtanh.f32 %v4645_v57  ;;  %v1822_v15 = vmul.f32 %v3392_v30, %v4471_v14  ;;  %v3394_v56 = vpop.eup %3393  ;;  %v5351_v30 = vld [vmem:[#allocation26_spill] sm:$0xff] }
 0x4ce   :  { %3397 = vrcp.f32 %v1816_v16  ;;  %v5352_v16 = vld [vmem:[#allocation29_spill] sm:$0xff] }
 0x4cf   :  { %v4649_v12 = vadd.f32 %v1824_v13, %v1822_v15  ;;  %v5353_v13 = vld [vmem:[#allocation31_spill] sm:$0xff]  ;;  %v5354_v15 = vld [vmem:[#allocation33_spill] sm:$0xff] }
 0x4d1   :  { %3399 = vtanh.f32 %v4649_v12 }
 0x4da   :  { %v3396_v26 = vpop.eup %3395 }
 0x4db   :  { %v4652_v7 = vmul.f32 %v3396_v26, %v3394_v56  ;;  %v3398_v8 = vpop.eup %3397  ;;  %v5355_v56 = vld [vmem:[#allocation35_spill] sm:$0xff]  ;;  %v5356_v26 = vld [vmem:[#allocation32_spill] sm:$0xff] }
 0x4dd   :  { %5339 = vst [vmem:[#allocation43_spill] sm:$0xff] %v4652_v7  ;;  %v4657_v9 = vmul.f32 0.0, %v4652_v7 }
 0x4de   :  { %v3400_v6 = vpop.eup %3399 }
 0x4df   :  { %v4654_v20 = vmul.f32 %v3400_v6, %v3398_v8  ;;  %5341 = vst [vmem:[#allocation44_spill] sm:$0xff] %v4657_v9  ;;  %v5357_v8 = vld [vmem:[#allocation36_spill] sm:$0xff]  ;;  %v5358_v6 = vld [vmem:[#allocation30_spill] sm:$0xff] }
 0x4e1   :  { %5340 = vst [vmem:[#allocation40_spill] sm:$0xff] %v4654_v20  ;;  %v1836_v27 = vpack.c.bf16 %v4654_v20, %v4657_v9  ;;  %v4662_v14 = vmul.f32 0.0, %v4654_v20  ;;  %v5362_v9 = vld [vmem:[#allocation37_spill] sm:$0xff]  ;;  %v5363_v20 = vld [vmem:[#allocation39_spill] sm:$0xff] }
 0x4e3   :  { %5342 = vst [vmem:[#allocation38_spill] sm:$0xff] %v4662_v14  ;;  %1869 = vmatprep.mubr.bf16.mxu0 %v1836_v27  ;;  %1912 = vmatprep.mubr.bf16.mxu1 %v1836_v27  ;;  %v1835_v31 = vpack.c.bf16 %v4662_v14, %v4652_v7  ;;  %v5359_v27 = vld [vmem:[#allocation34_spill] sm:$0xff]  ;;  %v5361_v7 = vld [vmem:[#allocation28_spill] sm:$0xff]  ;;  %v5364_v14 = vld [vmem:[#allocation41_spill] sm:$0xff] }
 0x4e5   :  { %1870 = vmatmul.mubr.bf16.vlgmr.msra.gmra.mxu0 %v1835_v31  ;;  %1913 = vmatmul.mubr.bf16.vlgmr.msra.gmra.mxu1 %v1835_v31  ;;  %v5360_v31 = vld [vmem:[#allocation27_spill] sm:$0xff] }
 0x4e6   :  { %1986 = vmatpush1.bf16.msra.mxu0 %v4354_v25  ;;  %2029 = vmatpush1.bf16.msra.mxu1 %v4357_v19 }
 0x4e7   :  { %1987 = vmatprep.subr.bf16.mxu0 %v4360_v1  ;;  %2030 = vmatprep.subr.bf16.mxu1 %v4363_v63 }
 0x4ea   :  { %1988 = vmatpush1.bf16.msra.mxu0 %v4366_v51  ;;  %2031 = vmatpush1.bf16.msra.mxu1 %v4369_v10 }
 0x4eb   :  { %1989 = vmatprep.subr.bf16.mxu0 %v4372_v29  ;;  %2032 = vmatprep.subr.bf16.mxu1 %v4375_v23 }
 0x4ee   :  { %1990 = vmatpush1.bf16.msra.mxu0 %v4378_v53  ;;  %2033 = vmatpush1.bf16.msra.mxu1 %v4381_v0 }
 0x4ef   :  { %1991 = vmatprep.subr.bf16.mxu0 %v4384_v35  ;;  %2034 = vmatprep.subr.bf16.mxu1 %v4387_v17 }
 0x4f2   :  { %1992 = vmatpush1.bf16.msra.mxu0 %v4390_v44  ;;  %2035 = vmatpush1.bf16.msra.mxu1 %v4393_v34 }
 0x4f3   :  { %1993 = vmatprep.subr.bf16.mxu0 %v4396_v43  ;;  %2036 = vmatprep.subr.bf16.mxu1 %v4399_v21 }
 0x4f6   :  { %1994 = vmatpush1.bf16.msra.mxu0 %v4402_v11  ;;  %2037 = vmatpush1.bf16.msra.mxu1 %v4405_v18 }
 0x4f7   :  { %1995 = vmatprep.subr.bf16.mxu0 %v4408_v22  ;;  %2038 = vmatprep.subr.bf16.mxu1 %v4411_v54 }
 0x4fa   :  { %1996 = vmatpush1.bf16.msra.mxu0 %v4508_v37  ;;  %2039 = vmatpush1.bf16.msra.mxu1 %v4511_v38 }
 0x4fb   :  { %1997 = vmatprep.subr.bf16.mxu0 %v4514_v39  ;;  %2040 = vmatprep.subr.bf16.mxu1 %v4517_v40 }
 0x4fe   :  { %1998 = vmatpush1.bf16.msra.mxu0 %v4520_v41  ;;  %2041 = vmatpush1.bf16.msra.mxu1 %v4523_v42 }
 0x4ff   :  { %1999 = vmatprep.subr.bf16.mxu0 %v4526_v45  ;;  %2042 = vmatprep.subr.bf16.mxu1 %v4529_v46 }
 0x502   :  { %2000 = vmatpush1.bf16.msra.mxu0 %v4532_v47  ;;  %2043 = vmatpush1.bf16.msra.mxu1 %v4535_v48 }
 0x503   :  { %2001 = vmatprep.subr.bf16.mxu0 %v4538_v49  ;;  %2044 = vmatprep.subr.bf16.mxu1 %v4541_v50 }
 0x506   :  { %2002 = vmatpush2.bf16.msra.mxu0 %v4544_v52  ;;  %2045 = vmatpush2.bf16.msra.mxu1 %v4547_v55 }
 0x507   :  { %2003 = vmatprep.subr.bf16.mxu0 %v4550_v58  ;;  %2046 = vmatprep.subr.bf16.mxu1 %v4553_v59 }
 0x50a   :  { %2004 = vmatpush2.bf16.msra.mxu0 %v4556_v60  ;;  %2047 = vmatpush2.bf16.msra.mxu1 %v4559_v61 }
 0x50b   :  { %2005 = vmatprep.subr.bf16.mxu0 %v4562_v62  ;;  %2048 = vmatprep.subr.bf16.mxu1 %v4565_v2 }
 0x50e   :  { %2006 = vmatpush2.bf16.msra.mxu0 %v5343_v24  ;;  %2049 = vmatpush2.bf16.msra.mxu1 %v5344_v32 }
 0x50f   :  { %2007 = vmatprep.subr.bf16.mxu0 %v5345_v5  ;;  %2050 = vmatprep.subr.bf16.mxu1 %v5346_v36 }
 0x512   :  { %2008 = vmatpush2.bf16.msra.mxu0 %v5347_v3  ;;  %2051 = vmatpush2.bf16.msra.mxu1 %v5348_v28 }
 0x513   :  { %2009 = vmatprep.subr.bf16.mxu0 %v5349_v4  ;;  %2052 = vmatprep.subr.bf16.mxu1 %v5350_v33  ;;  %v5369_v4 = vld [vmem:[#allocation57_spill] sm:$0xff] }
 0x516   :  { %2010 = vmatpush2.bf16.msra.mxu0 %v5351_v30  ;;  %2053 = vmatpush2.bf16.msra.mxu1 %v5352_v16  ;;  %v5368_v30 = vld [vmem:[#allocation55_spill] sm:$0xff] }
 0x517   :  { %2011 = vmatprep.subr.bf16.mxu0 %v5353_v13  ;;  %2054 = vmatprep.subr.bf16.mxu1 %v5354_v15  ;;  %v5365_v15 = vld [vmem:[#allocation8_spill] sm:$0xff] }
 0x51a   :  { %2012 = vmatpush2.bf16.msra.mxu0 %v5355_v56  ;;  %2055 = vmatpush2.bf16.msra.mxu1 %v5356_v26  ;;  %v5366_v56 = vld [vmem:[#allocation9_spill] sm:$0xff] }
 0x51b   :  { %2013 = vmatprep.subr.bf16.mxu0 %v5357_v8  ;;  %2056 = vmatprep.subr.bf16.mxu1 %v5358_v6  ;;  %v5367_v8 = vld [vmem:[#allocation53_spill] sm:$0xff] }
 0x51e   :  { %2014 = vmatpush2.bf16.msra.mxu0 %v5359_v27  ;;  %2057 = vmatpush2.bf16.msra.mxu1 %v5360_v31 }
 0x51f   :  { %2015 = vmatprep.subr.bf16.mxu0 %v5361_v7  ;;  %2058 = vmatprep.subr.bf16.mxu1 %v5362_v9 }
 0x522   :  { %2016 = vmatpush2.bf16.msra.mxu0 %v5363_v20  ;;  %2059 = vmatpush2.bf16.msra.mxu1 %v5364_v14 }
 0x523   :  { %2133 = vmatprep.subr.bf16.mxu0 %v5365_v15  ;;  %2176 = vmatprep.subr.bf16.mxu1 %v5366_v56  ;;  %v5370_v15 = vld [vmem:[#allocation59_spill] sm:$0xff] }
 0x5a5   :  { %v1871_v26 = vpop.f32.mrf.mxu0  ;;  %v1914_v6 = vpop.f32.mrf.mxu1 }
 0x5a6   :  { %v1923_v13 = vadd.f32 %v1871_v26, %v5367_v8  ;;  %v5371_v26 = vld [vmem:[#allocation56_spill] sm:$0xff] }
 0x5a7   :  { %v1873_v16 = vpop.f32.mrf.mxu0  ;;  %v1916_v9 = vpop.f32.mrf.mxu1 }
 0x5a8   :  { %v2960_v27 = vmul.f32 -1.442695, %v1923_v13  ;;  %v1924_v31 = vadd.f32 %v1873_v16, %v5368_v30  ;;  %v1926_v8 = vadd.f32 %v1916_v9, %v5371_v26  ;;  %v5372_v30 = vld [vmem:[#allocation60_spill] sm:$0xff] }
 0x5a9   :  { %v1875_v33 = vpop.f32.mrf.mxu0  ;;  %v1918_v56 = vpop.f32.mrf.mxu1 }
 0x5aa   :  { %3401 = vpow2.f32 %v2960_v27  ;;  %v2962_v7 = vmul.f32 -1.442695, %v1924_v31  ;;  %v1927_v20 = vadd.f32 %v1875_v33, %v5369_v4  ;;  %v2964_v5 = vmul.f32 -1.442695, %v1926_v8  ;;  %v5373_v31 = vld [vmem:[#allocation54_spill] sm:$0xff] }
 0x5ab   :  { %v1877_v28 = vpop.f32.mrf.mxu0  ;;  %v1920_v13 = vpop.f32.mrf.mxu1  ;;  %v1925_v32 = vadd.f32 %v1914_v6, %v5373_v31 }
 0x5ac   :  { %3403 = vpow2.f32 %v2962_v7  ;;  %v2961_v14 = vmul.f32 -1.442695, %v1927_v20  ;;  %v1928_v3 = vadd.f32 %v1877_v28, %v5370_v15  ;;  %v1930_v16 = vadd.f32 %v1920_v13, %v5372_v30 }
 0x5ae   :  { %3405 = vpow2.f32 %v2961_v14  ;;  %v2963_v36 = vmul.f32 -1.442695, %v1928_v3  ;;  %v2965_v7 = vmul.f32 -1.442695, %v1930_v16  ;;  %v5374_v14 = vld [vmem:[#allocation58_spill] sm:$0xff] }
 0x5af   :  { %v1929_v3 = vadd.f32 %v1918_v56, %v5374_v14 }
 0x5b0   :  { %3407 = vpow2.f32 %v2963_v36 }
 0x5b1   :  { %3409 = vpow2.f32 %v2964_v5 }
 0x5b7   :  { %v3402_v27 = vpop.eup %3401 }
 0x5b8   :  { %v1937_v24 = vadd.f32 1.0, %v3402_v27 }
 0x5b9   :  { %v3404_v4 = vpop.eup %3403 }
 0x5ba   :  { %3411 = vrcp.f32 %v1937_v24  ;;  %v1949_v20 = vadd.f32 1.0, %v3404_v4 }
 0x5bb   :  { %v3406_v28 = vpop.eup %3405  ;;  %3413 = vtanh.f32 %v1925_v32 }
 0x5bc   :  { %3415 = vrcp.f32 %v1949_v20  ;;  %v1938_v36 = vadd.f32 1.0, %v3406_v28 }
 0x5bd   :  { %v3408_v9 = vpop.eup %3407  ;;  %3417 = vpow2.f32 %v2965_v7 }
 0x5be   :  { %3419 = vrcp.f32 %v1938_v36  ;;  %v1950_v33 = vadd.f32 1.0, %v3408_v9  ;;  %v3410_v15 = vpop.eup %3409 }
 0x5bf   :  { %3421 = vtanh.f32 %v1929_v3  ;;  %v1963_v5 = vadd.f32 1.0, %v3410_v15 }
 0x5c0   :  { %3423 = vrcp.f32 %v1950_v33 }
 0x5c1   :  { %3425 = vrcp.f32 %v1963_v5  ;;  %v3611_v5 = vld [vmem:[#allocation4 + $0xec] ss:$16 sps:$4 sm:$0xff]  }
 0x5c7   :  { %v3412_v6 = vpop.eup %3411 }
 0x5c8   :  { %v3414_v26 = vpop.eup %3413 }
 0x5c9   :  { %v3416_v8 = vpop.eup %3415  ;;  %v1971_v24 = vmul.f32 %v3414_v26, %v3412_v6  ;;  %v5395_v26 = vld [vmem:[#allocation39_spill] sm:$0xff] }
 0x5ca   :  { %v3418_v13 = vpop.eup %3417  ;;  %v1969_v30 = vmul.f32 %v3416_v8, %v4645_v57  ;;  %v5396_v8 = vld [vmem:[#allocation41_spill] sm:$0xff] }
 0x5cb   :  { %v3420_v32 = vpop.eup %3419  ;;  %v1964_v31 = vadd.f32 1.0, %v3418_v13  ;;  %v3612_v13 = vld [vmem:[#allocation4 + $0xe4] ss:$16 sps:$4 sm:$0xff]  }
 0x5cc   :  { %v3422_v16 = vpop.eup %3421  ;;  %v4739_v56 = vadd.f32 %v1971_v24, %v1969_v30  ;;  %v5397_v30 = vld [vmem:[#allocation61_spill] sm:$0xff] }
 0x5cd   :  { %v3424_v27 = vpop.eup %3423  ;;  %v1972_v4 = vmul.f32 %v3422_v16, %v3420_v32 }
 0x5ce   :  { %3427 = vtanh.f32 %v4739_v56  ;;  %v1970_v7 = vmul.f32 %v3424_v27, %v4649_v12  ;;  %v3426_v28 = vpop.eup %3425 }
 0x5cf   :  { %3429 = vrcp.f32 %v1964_v31 }
 0x5d0   :  { %v4743_v20 = vadd.f32 %v1972_v4, %v1970_v7  ;;  %v5398_v4 = vld [vmem:[#allocation63_spill] sm:$0xff] }
 0x5d2   :  { %3431 = vtanh.f32 %v4743_v20 }
 0x5db   :  { %v3428_v14 = vpop.eup %3427 }
 0x5dc   :  { %v4746_v57 = vmul.f32 %v3428_v14, %v3426_v28  ;;  %v3430_v3 = vpop.eup %3429 }
 0x5de   :  { %v4751_v33 = vmul.f32 0.0, %v4746_v57 }
 0x5df   :  { %v3432_v36 = vpop.eup %3431 }
 0x5e0   :  { %v4748_v9 = vmul.f32 %v3432_v36, %v3430_v3  ;;  %v5399_v36 = vld [vmem:[#allocation65_spill] sm:$0xff] }
 0x5e2   :  { %v1984_v15 = vpack.c.bf16 %v4748_v9, %v4751_v33  ;;  %v4756_v12 = vmul.f32 0.0, %v4748_v9 }
 0x5e4   :  { %2017 = vmatprep.mubr.bf16.mxu0 %v1984_v15  ;;  %2060 = vmatprep.mubr.bf16.mxu1 %v1984_v15  ;;  %v1983_v6 = vpack.c.bf16 %v4756_v12, %v4746_v57 }
 0x5e6   :  { %2018 = vmatmul.mubr.bf16.vlgmr.msra.gmra.mxu0 %v1983_v6  ;;  %2061 = vmatmul.mubr.bf16.vlgmr.msra.gmra.mxu1 %v1983_v6 }
 0x5e7   :  { %2134 = vmatpush1.bf16.msra.mxu0 %v4354_v25  ;;  %2177 = vmatpush1.bf16.msra.mxu1 %v4357_v19  ;;  %v5377_v25 = vld [vmem:[#allocation20_spill] sm:$0xff]  ;;  %v5378_v19 = vld [vmem:[#allocation21_spill] sm:$0xff] }
 0x5e8   :  { %2135 = vmatprep.subr.bf16.mxu0 %v4360_v1  ;;  %2178 = vmatprep.subr.bf16.mxu1 %v4363_v63  ;;  %v5379_v1 = vld [vmem:[#allocation22_spill] sm:$0xff]  ;;  %v5380_v63 = vld [vmem:[#allocation23_spill] sm:$0xff] }
 0x5eb   :  { %2136 = vmatpush1.bf16.msra.mxu0 %v4366_v51  ;;  %2179 = vmatpush1.bf16.msra.mxu1 %v4369_v10  ;;  %v5381_v51 = vld [vmem:[#allocation24_spill] sm:$0xff]  ;;  %v5382_v10 = vld [vmem:[#allocation25_spill] sm:$0xff] }
 0x5ec   :  { %2137 = vmatprep.subr.bf16.mxu0 %v4372_v29  ;;  %2180 = vmatprep.subr.bf16.mxu1 %v4375_v23  ;;  %v5383_v29 = vld [vmem:[#allocation26_spill] sm:$0xff]  ;;  %v5384_v23 = vld [vmem:[#allocation29_spill] sm:$0xff] }
 0x5ef   :  { %2138 = vmatpush1.bf16.msra.mxu0 %v4378_v53  ;;  %2181 = vmatpush1.bf16.msra.mxu1 %v4381_v0  ;;  %v5385_v53 = vld [vmem:[#allocation31_spill] sm:$0xff]  ;;  %v5386_v0 = vld [vmem:[#allocation33_spill] sm:$0xff] }
 0x5f0   :  { %2139 = vmatprep.subr.bf16.mxu0 %v4384_v35  ;;  %2182 = vmatprep.subr.bf16.mxu1 %v4387_v17  ;;  %v5387_v35 = vld [vmem:[#allocation35_spill] sm:$0xff]  ;;  %v5388_v17 = vld [vmem:[#allocation32_spill] sm:$0xff] }
 0x5f3   :  { %2140 = vmatpush1.bf16.msra.mxu0 %v4390_v44  ;;  %2183 = vmatpush1.bf16.msra.mxu1 %v4393_v34  ;;  %v5389_v44 = vld [vmem:[#allocation36_spill] sm:$0xff]  ;;  %v5390_v34 = vld [vmem:[#allocation30_spill] sm:$0xff] }
 0x5f4   :  { %2141 = vmatprep.subr.bf16.mxu0 %v4396_v43  ;;  %2184 = vmatprep.subr.bf16.mxu1 %v4399_v21  ;;  %v5391_v43 = vld [vmem:[#allocation34_spill] sm:$0xff]  ;;  %v5392_v21 = vld [vmem:[#allocation27_spill] sm:$0xff] }
 0x5f7   :  { %2142 = vmatpush1.bf16.msra.mxu0 %v4402_v11  ;;  %2185 = vmatpush1.bf16.msra.mxu1 %v4405_v18  ;;  %v5393_v11 = vld [vmem:[#allocation28_spill] sm:$0xff]  ;;  %v5394_v18 = vld [vmem:[#allocation37_spill] sm:$0xff] }
 0x5f8   :  { %2143 = vmatprep.subr.bf16.mxu0 %v4408_v22  ;;  %2186 = vmatprep.subr.bf16.mxu1 %v4411_v54  ;;  %v5375_v22 = vld [vmem:[#allocation18_spill] sm:$0xff]  ;;  %v5376_v54 = vld [vmem:[#allocation19_spill] sm:$0xff] }
 0x5fb   :  { %2144 = vmatpush1.bf16.msra.mxu0 %v4508_v37  ;;  %2187 = vmatpush1.bf16.msra.mxu1 %v4511_v38 }
 0x5fc   :  { %2145 = vmatprep.subr.bf16.mxu0 %v4514_v39  ;;  %2188 = vmatprep.subr.bf16.mxu1 %v4517_v40 }
 0x5ff   :  { %2146 = vmatpush1.bf16.msra.mxu0 %v4520_v41  ;;  %2189 = vmatpush1.bf16.msra.mxu1 %v4523_v42 }
 0x600   :  { %2147 = vmatprep.subr.bf16.mxu0 %v4526_v45  ;;  %2190 = vmatprep.subr.bf16.mxu1 %v4529_v46 }
 0x603   :  { %2148 = vmatpush1.bf16.msra.mxu0 %v4532_v47  ;;  %2191 = vmatpush1.bf16.msra.mxu1 %v4535_v48 }
 0x604   :  { %2149 = vmatprep.subr.bf16.mxu0 %v4538_v49  ;;  %2192 = vmatprep.subr.bf16.mxu1 %v4541_v50 }
 0x607   :  { %2150 = vmatpush2.bf16.msra.mxu0 %v4544_v52  ;;  %2193 = vmatpush2.bf16.msra.mxu1 %v4547_v55 }
 0x608   :  { %2151 = vmatprep.subr.bf16.mxu0 %v4550_v58  ;;  %2194 = vmatprep.subr.bf16.mxu1 %v4553_v59 }
 0x60b   :  { %2152 = vmatpush2.bf16.msra.mxu0 %v4556_v60  ;;  %2195 = vmatpush2.bf16.msra.mxu1 %v4559_v61 }
 0x60c   :  { %2153 = vmatprep.subr.bf16.mxu0 %v4562_v62  ;;  %2196 = vmatprep.subr.bf16.mxu1 %v4565_v2 }
 0x60f   :  { %2154 = vmatpush2.bf16.msra.mxu0 %v5375_v22  ;;  %2197 = vmatpush2.bf16.msra.mxu1 %v5376_v54 }
 0x610   :  { %2155 = vmatprep.subr.bf16.mxu0 %v5377_v25  ;;  %2198 = vmatprep.subr.bf16.mxu1 %v5378_v19 }
 0x613   :  { %2156 = vmatpush2.bf16.msra.mxu0 %v5379_v1  ;;  %2199 = vmatpush2.bf16.msra.mxu1 %v5380_v63 }
 0x614   :  { %2157 = vmatprep.subr.bf16.mxu0 %v5381_v51  ;;  %2200 = vmatprep.subr.bf16.mxu1 %v5382_v10 }
 0x617   :  { %2158 = vmatpush2.bf16.msra.mxu0 %v5383_v29  ;;  %2201 = vmatpush2.bf16.msra.mxu1 %v5384_v23 }
 0x618   :  { %2159 = vmatprep.subr.bf16.mxu0 %v5385_v53  ;;  %2202 = vmatprep.subr.bf16.mxu1 %v5386_v0 }
 0x61b   :  { %2160 = vmatpush2.bf16.msra.mxu0 %v5387_v35  ;;  %2203 = vmatpush2.bf16.msra.mxu1 %v5388_v17 }
 0x61c   :  { %2161 = vmatprep.subr.bf16.mxu0 %v5389_v44  ;;  %2204 = vmatprep.subr.bf16.mxu1 %v5390_v34 }
 0x61f   :  { %2162 = vmatpush2.bf16.msra.mxu0 %v5391_v43  ;;  %2205 = vmatpush2.bf16.msra.mxu1 %v5392_v21 }
 0x620   :  { %2163 = vmatprep.subr.bf16.mxu0 %v5393_v11  ;;  %2206 = vmatprep.subr.bf16.mxu1 %v5394_v18 }
 0x623   :  { %2164 = vmatpush2.bf16.msra.mxu0 %v5395_v26  ;;  %2207 = vmatpush2.bf16.msra.mxu1 %v5396_v8 }
 0x624   :  { %2324 = vmatprep.subr.bf16.mxu1 %v3611_v5  ;;  %2281 = vmatprep.subr.bf16.mxu0 %v3612_v13  ;;  %v5400_v5 = vld [vmem:[#allocation67_spill] sm:$0xff] }
 0x6a6   :  { %v2019_v24 = vpop.f32.mrf.mxu0  ;;  %v2062_v16 = vpop.f32.mrf.mxu1 }
 0x6a7   :  { %v2071_v32 = vadd.f32 %v2019_v24, %v5397_v30  ;;  %v5401_v24 = vld [vmem:[#allocation64_spill] sm:$0xff] }
 0x6a8   :  { %v2021_v27 = vpop.f32.mrf.mxu0  ;;  %v2064_v3 = vpop.f32.mrf.mxu1 }
 0x6a9   :  { %v2966_v31 = vmul.f32 -1.442695, %v2071_v32  ;;  %v2072_v7 = vadd.f32 %v2021_v27, %v5398_v4  ;;  %v2074_v30 = vadd.f32 %v2064_v3, %v5401_v24  ;;  %v5402_v27 = vld [vmem:[#allocation68_spill] sm:$0xff] }
 0x6aa   :  { %v2023_v28 = vpop.f32.mrf.mxu0  ;;  %v2066_v13 = vpop.f32.mrf.mxu1 }
 0x6ab   :  { %3433 = vpow2.f32 %v2966_v31  ;;  %v2968_v14 = vmul.f32 -1.442695, %v2072_v7  ;;  %v2075_v15 = vadd.f32 %v2023_v28, %v5399_v36  ;;  %v2970_v18 = vmul.f32 -1.442695, %v2074_v30  ;;  %v5403_v7 = vld [vmem:[#allocation62_spill] sm:$0xff] }
 0x6ac   :  { %v2025_v6 = vpop.f32.mrf.mxu0  ;;  %v2068_v32 = vpop.f32.mrf.mxu1  ;;  %v2073_v43 = vadd.f32 %v2062_v16, %v5403_v7 }
 0x6ad   :  { %3435 = vpow2.f32 %v2968_v14  ;;  %v2967_v26 = vmul.f32 -1.442695, %v2075_v15  ;;  %v2076_v8 = vadd.f32 %v2025_v6, %v5400_v5  ;;  %v2078_v4 = vadd.f32 %v2068_v32, %v5402_v27 }
 0x6af   :  { %3437 = vpow2.f32 %v2967_v26  ;;  %v2969_v11 = vmul.f32 -1.442695, %v2076_v8  ;;  %v2971_v14 = vmul.f32 -1.442695, %v2078_v4  ;;  %v5404_v26 = vld [vmem:[#allocation66_spill] sm:$0xff] }
 0x6b0   :  { %v2077_v8 = vadd.f32 %v2066_v13, %v5404_v26 }
 0x6b1   :  { %3439 = vpow2.f32 %v2969_v11 }
 0x6b2   :  { %3441 = vpow2.f32 %v2970_v18 }
 0x6b8   :  { %v3434_v31 = vpop.eup %3433 }
 0x6b9   :  { %v2085_v21 = vadd.f32 1.0, %v3434_v31 }
 0x6ba   :  { %v3436_v28 = vpop.eup %3435 }
 0x6bb   :  { %3443 = vrcp.f32 %v2085_v21  ;;  %v2097_v36 = vadd.f32 1.0, %v3436_v28 }
 0x6bc   :  { %v3438_v15 = vpop.eup %3437  ;;  %3445 = vtanh.f32 %v2073_v43 }
 0x6bd   :  { %3447 = vrcp.f32 %v2097_v36  ;;  %v2086_v11 = vadd.f32 1.0, %v3438_v15 }
 0x6be   :  { %v3440_v3 = vpop.eup %3439  ;;  %3449 = vpow2.f32 %v2971_v14 }
 0x6bf   :  { %3451 = vrcp.f32 %v2086_v11  ;;  %v2098_v6 = vadd.f32 1.0, %v3440_v3  ;;  %v3442_v5 = vpop.eup %3441  ;;  %v5405_v3 = vld [vmem:[#allocation38_spill] sm:$0xff] }
 0x6c0   :  { %3453 = vtanh.f32 %v2077_v8  ;;  %v2111_v18 = vadd.f32 1.0, %v3442_v5  ;;  %v5406_v5 = vld [vmem:[#allocation17_spill] sm:$0xff] }
 0x6c1   :  { %3455 = vrcp.f32 %v2098_v6  ;;  %v4840_v6 = vadd.f32 %v4746_v57, %v5405_v3 }
 0x6c2   :  { %3457 = vrcp.f32 %v2111_v18 }
 0x6c8   :  { %v3444_v16 = vpop.eup %3443 }
 0x6c9   :  { %v3446_v24 = vpop.eup %3445 }
 0x6ca   :  { %v3448_v30 = vpop.eup %3447  ;;  %v2119_v21 = vmul.f32 %v3446_v24, %v3444_v16 }
 0x6cb   :  { %v3450_v32 = vpop.eup %3449  ;;  %v2117_v27 = vmul.f32 %v3448_v30, %v4739_v56 }
 0x6cc   :  { %v3452_v43 = vpop.eup %3451  ;;  %v2112_v7 = vadd.f32 1.0, %v3450_v32  ;;  %v5408_v32 = vld [vmem:[#allocation15_spill] sm:$0xff] }
 0x6cd   :  { %v3454_v4 = vpop.eup %3453  ;;  %v4831_v13 = vadd.f32 %v2119_v21, %v2117_v27 }
 0x6ce   :  { %v3456_v31 = vpop.eup %3455  ;;  %v2120_v28 = vmul.f32 %v3454_v4, %v3452_v43  ;;  %v5409_v43 = vld [vmem:[#allocation44_spill] sm:$0xff] }
 0x6cf   :  { %3459 = vtanh.f32 %v4831_v13  ;;  %v2118_v14 = vmul.f32 %v3456_v31, %v4743_v20  ;;  %v3458_v15 = vpop.eup %3457  ;;  %v5407_v20 = vld [vmem:[#allocation40_spill] sm:$0xff]  ;;  %v4856_v4 = vadd.f32 %v4748_v9, %v5409_v43  ;;  %v5412_v9 = vld [vmem:[#allocation14_spill] sm:$0xff] }
 0x6d0   :  { %3461 = vrcp.f32 %v2112_v7  ;;  %v4847_v18 = vadd.f32 %v4751_v33, %v5407_v20  ;;  %v5411_v33 = vld [vmem:[#allocation43_spill] sm:$0xff]  ;;  %v3618_v20 = vld [vmem:[#allocation4 + $0xc0] ss:$16 sps:$4 sm:$0xff]   ;;  %v3620_v43 = vld [vmem:[#allocation4 + $0xa4] ss:$16 sps:$4 sm:$0xff]  }
 0x6d1   :  { %v4835_v36 = vadd.f32 %v2120_v28, %v2118_v14  ;;  %v5410_v28 = vld [vmem:[#allocation16_spill] sm:$0xff] }
 0x6d3   :  { %3463 = vtanh.f32 %v4835_v36 }
 0x6dc   :  { %v3460_v26 = vpop.eup %3459 }
 0x6dd   :  { %v2125_v56 = vmul.f32 %v3460_v26, %v3458_v15  ;;  %v3462_v8 = vpop.eup %3461  ;;  %v4865_v15 = vadd.f32 %v4756_v12, %v5411_v33  ;;  %v3615_v12 = vld [vmem:[#allocation4 + $0xcc] ss:$16 sps:$4 sm:$0xff]   ;;  %v3624_v33 = vld [vmem:[#allocation4 + $0x84] ss:$16 sps:$4 sm:$0xff]  }
 0x6df   :  { %v2128_v11 = vmul.f32 0.0, %v2125_v56  ;;  %v4843_v16 = vadd.f32 %v2125_v56, %v5406_v5  ;;  %v3613_v5 = vld [vmem:[#allocation4 + $0xe8] ss:$16 sps:$4 sm:$0xff]  }
 0x6e0   :  { %v3464_v24 = vpop.eup %3463 }
 0x6e1   :  { %v2126_v30 = vmul.f32 %v3464_v24, %v3462_v8  ;;  %v4850_v21 = vadd.f32 %v2128_v11, %v5408_v32  ;;  %v2447_v27 = vpack.c.bf16 %v4843_v16, %v4840_v6  ;;  %v3614_v24 = vld [vmem:[#allocation4 + $0xe0] ss:$16 sps:$4 sm:$0xff]   ;;  %v3619_v32 = vld [vmem:[#allocation4 + $0xac] ss:$16 sps:$4 sm:$0xff]  }
 0x6e3   :  { %v2132_v57 = vpack.c.bf16 %v2126_v30, %v2128_v11  ;;  %v2129_v31 = vmul.f32 0.0, %v2126_v30  ;;  %v2448_v7 = vpack.c.bf16 %v4850_v21, %v4847_v18  ;;  %v4861_v14 = vadd.f32 %v2126_v30, %v5410_v28  ;;  %v3616_v30 = vld [vmem:[#allocation4 + $0xc4] ss:$16 sps:$4 sm:$0xff]   ;;  %v3623_v28 = vld [vmem:[#allocation4 + $0x8c] ss:$16 sps:$4 sm:$0xff]  }
 0x6e4   :  { %v3263_v18 = vld [vmem:[%s5058_s3 + $0x60] sm:$0xff]  }
 0x6e5   :  { %2165 = vmatprep.mubr.bf16.mxu0 %v2132_v57  ;;  %2208 = vmatprep.mubr.bf16.mxu1 %v2132_v57  ;;  %v2131_v26 = vpack.c.bf16 %v2129_v31, %v2125_v56  ;;  %v2446_v8 = vpack.c.bf16 %v4856_v4, %v4861_v14  ;;  %v4870_v3 = vadd.f32 %v2129_v31, %v5412_v9  ;;  %v3617_v56 = vld [vmem:[#allocation4 + $0xc8] ss:$16 sps:$4 sm:$0xff]   ;;  %v3622_v31 = vld [vmem:[#allocation4 + $0xa0] ss:$16 sps:$4 sm:$0xff]  }
 0x6e6   :  { %v3621_v57 = vld [vmem:[#allocation4 + $0xa8] ss:$16 sps:$4 sm:$0xff]   ;;  %v3626_v9 = vld [vmem:[#allocation4 + $0x80] ss:$16 sps:$4 sm:$0xff]  }
 0x6e7   :  { %2166 = vmatmul.mubr.bf16.vlgmr.msra.gmra.mxu0 %v2131_v26  ;;  %2209 = vmatmul.mubr.bf16.vlgmr.msra.gmra.mxu1 %v2131_v26  ;;  %v2445_v11 = vpack.c.bf16 %v4865_v15, %v4870_v3  ;;  %v3625_v26 = vld [vmem:[#allocation4 + $0x88] ss:$16 sps:$4 sm:$0xff]   ;;  %v3264_v21 = vld [vmem:[%s5058_s3 + $0x20] sm:$0xff]  }
 0x6e8   :  { %2325 = vmatpush1.bf16.msra.mxu1 %v3613_v5  ;;  %2282 = vmatpush1.bf16.msra.mxu0 %v3614_v24  ;;  %v3627_v5 = vld [vmem:[#allocation4 + $0x6c] ss:$16 sps:$4 sm:$0xff]   ;;  %v3628_v24 = vld [vmem:[#allocation4 + $0x64] ss:$16 sps:$4 sm:$0xff]   ;;  %v2984_v15 = vld [vmem:[%s5059_s4] ss:$0 sm:$0xff] }
 0x6e9   :  { %2326 = vmatprep.subr.bf16.mxu1 %v3615_v12  ;;  %2283 = vmatprep.subr.bf16.mxu0 %v3616_v30  ;;  %v3629_v12 = vld [vmem:[#allocation4 + $0x68] ss:$16 sps:$4 sm:$0xff]   ;;  %v3630_v30 = vld [vmem:[#allocation4 + $0x60] ss:$16 sps:$4 sm:$0xff]  }
 0x6ec   :  { %2327 = vmatpush1.bf16.msra.mxu1 %v3617_v56  ;;  %2284 = vmatpush1.bf16.msra.mxu0 %v3618_v20  ;;  %v3631_v56 = vld [vmem:[#allocation4 + $0x4c] ss:$16 sps:$4 sm:$0xff]   ;;  %v3632_v20 = vld [vmem:[#allocation4 + $0x44] ss:$16 sps:$4 sm:$0xff]  }
 0x6ed   :  { %2328 = vmatprep.subr.bf16.mxu1 %v3619_v32  ;;  %2285 = vmatprep.subr.bf16.mxu0 %v3620_v43 }
 0x6f0   :  { %2329 = vmatpush1.bf16.msra.mxu1 %v3621_v57  ;;  %2286 = vmatpush1.bf16.msra.mxu0 %v3622_v31 }
 0x6f1   :  { %2330 = vmatprep.subr.bf16.mxu1 %v3623_v28  ;;  %2287 = vmatprep.subr.bf16.mxu0 %v3624_v33  ;;  %v5426_v28 = vld [vmem:[#allocation74_spill] sm:$0xff] }
 0x6f4   :  { %2331 = vmatpush1.bf16.msra.mxu1 %v3625_v26  ;;  %2288 = vmatpush1.bf16.msra.mxu0 %v3626_v9 }
 0x6f5   :  { %2332 = vmatprep.subr.bf16.mxu1 %v3627_v5  ;;  %2289 = vmatprep.subr.bf16.mxu0 %v3628_v24 }
 0x6f8   :  { %2333 = vmatpush1.bf16.msra.mxu1 %v3629_v12  ;;  %2290 = vmatpush1.bf16.msra.mxu0 %v3630_v30 }
 0x6f9   :  { %2334 = vmatprep.subr.bf16.mxu1 %v3631_v56  ;;  %2291 = vmatprep.subr.bf16.mxu0 %v3632_v20 }
 0x6fc   :  { %2335 = vmatpush1.bf16.msra.mxu1 %v4511_v38  ;;  %2292 = vmatpush1.bf16.msra.mxu0 %v4508_v37  ;;  %v5413_v37 = vld [vmem:[#allocation27_spill] sm:$0xff]  ;;  %v5414_v38 = vld [vmem:[#allocation34_spill] sm:$0xff] }
 0x6fd   :  { %2336 = vmatprep.subr.bf16.mxu1 %v4517_v40  ;;  %2293 = vmatprep.subr.bf16.mxu0 %v4514_v39  ;;  %v5415_v39 = vld [vmem:[#allocation37_spill] sm:$0xff]  ;;  %v5416_v40 = vld [vmem:[#allocation28_spill] sm:$0xff] }
 0x700   :  { %2337 = vmatpush1.bf16.msra.mxu1 %v4523_v42  ;;  %2294 = vmatpush1.bf16.msra.mxu0 %v4520_v41  ;;  %v5417_v41 = vld [vmem:[#allocation41_spill] sm:$0xff]  ;;  %v5418_v42 = vld [vmem:[#allocation39_spill] sm:$0xff] }
 0x701   :  { %2338 = vmatprep.subr.bf16.mxu1 %v4529_v46  ;;  %2295 = vmatprep.subr.bf16.mxu0 %v4526_v45  ;;  %v3257_v45 = vld [vmem:[%s5058_s3 + $0x78] sm:$0xff]  }
 0x704   :  { %2339 = vmatpush1.bf16.msra.mxu1 %v4535_v48  ;;  %2296 = vmatpush1.bf16.msra.mxu0 %v4532_v47  ;;  %v5419_v47 = vld [vmem:[#allocation69_spill] sm:$0xff] }
 0x705   :  { %2340 = vmatprep.subr.bf16.mxu1 %v4541_v50  ;;  %2297 = vmatprep.subr.bf16.mxu0 %v4538_v49 }
 0x708   :  { %2341 = vmatpush2.bf16.msra.mxu1 %v4547_v55  ;;  %2298 = vmatpush2.bf16.msra.mxu0 %v4544_v52  ;;  %v5420_v55 = vld [vmem:[#allocation71_spill] sm:$0xff] }
 0x709   :  { %2342 = vmatprep.subr.bf16.mxu1 %v4553_v59  ;;  %2299 = vmatprep.subr.bf16.mxu0 %v4550_v58 }
 0x70c   :  { %2343 = vmatpush2.bf16.msra.mxu1 %v4559_v61  ;;  %2300 = vmatpush2.bf16.msra.mxu0 %v4556_v60 }
 0x70d   :  { %2344 = vmatprep.subr.bf16.mxu1 %v4565_v2  ;;  %2301 = vmatprep.subr.bf16.mxu0 %v4562_v62  ;;  %v5421_v62 = vld [vmem:[#allocation73_spill] sm:$0xff] }
 0x710   :  { %2345 = vmatpush2.bf16.msra.mxu1 %v5376_v54  ;;  %2302 = vmatpush2.bf16.msra.mxu0 %v5375_v22 }
 0x711   :  { %2346 = vmatprep.subr.bf16.mxu1 %v5378_v19  ;;  %2303 = vmatprep.subr.bf16.mxu0 %v5377_v25  ;;  %v5422_v25 = vld [vmem:[#allocation75_spill] sm:$0xff] }
 0x714   :  { %2347 = vmatpush2.bf16.msra.mxu1 %v5380_v63  ;;  %2304 = vmatpush2.bf16.msra.mxu0 %v5379_v1 }
 0x715   :  { %2348 = vmatprep.subr.bf16.mxu1 %v5382_v10  ;;  %2305 = vmatprep.subr.bf16.mxu0 %v5381_v51  ;;  %v5423_v51 = vld [vmem:[#allocation72_spill] sm:$0xff] }
 0x718   :  { %2349 = vmatpush2.bf16.msra.mxu1 %v5384_v23  ;;  %2306 = vmatpush2.bf16.msra.mxu0 %v5383_v29 }
 0x719   :  { %2350 = vmatprep.subr.bf16.mxu1 %v5386_v0  ;;  %2307 = vmatprep.subr.bf16.mxu0 %v5385_v53  ;;  %v5424_v53 = vld [vmem:[#allocation76_spill] sm:$0xff] }
 0x71c   :  { %2351 = vmatpush2.bf16.msra.mxu1 %v5388_v17  ;;  %2308 = vmatpush2.bf16.msra.mxu0 %v5387_v35  ;;  %v5425_v17 = vld [vmem:[#allocation70_spill] sm:$0xff] }
 0x71d   :  { %2352 = vmatprep.subr.bf16.mxu1 %v5390_v34  ;;  %2309 = vmatprep.subr.bf16.mxu0 %v5389_v44 }
 0x720   :  { %2353 = vmatpush2.bf16.msra.mxu1 %v5413_v37  ;;  %2310 = vmatpush2.bf16.msra.mxu0 %v5414_v38 }
 0x721   :  { %2354 = vmatprep.subr.bf16.mxu1 %v5415_v39  ;;  %2311 = vmatprep.subr.bf16.mxu0 %v5416_v40 }
 0x724   :  { %2355 = vmatpush2.bf16.msra.mxu1 %v5417_v41  ;;  %2312 = vmatpush2.bf16.msra.mxu0 %v5418_v42 }
 0x725   :  { %3041 = vmatprep.subr.bf16.mxu1 %v3257_v45  ;;  %3001 = vmatprep.subr.bf16.mxu0 %v3257_v45 }
 0x7a7   :  { %v2167_v46 = vpop.f32.mrf.mxu0  ;;  %v2210_v49 = vpop.f32.mrf.mxu1 }
 0x7a8   :  { %v2219_v48 = vadd.f32 %v2167_v46, %v5419_v47  ;;  %v2221_v44 = vadd.f32 %v2210_v49, %v5425_v17 }
 0x7a9   :  { %v2169_v50 = vpop.f32.mrf.mxu0  ;;  %v2212_v61 = vpop.f32.mrf.mxu1 }
 0x7aa   :  { %v2972_v52 = vmul.f32 -1.442695, %v2219_v48  ;;  %v2220_v58 = vadd.f32 %v2169_v50, %v5420_v55  ;;  %v2222_v10 = vadd.f32 %v2212_v61, %v5423_v51  ;;  %v3268_v51 = vld [vmem:[%s5058_s3 + $0x10] sm:$0xff]  }
 0x7ab   :  { %v2171_v59 = vpop.f32.mrf.mxu0  ;;  %v2214_v1 = vpop.f32.mrf.mxu1 }
 0x7ac   :  { %3465 = vpow2.f32 %v2972_v52  ;;  %v2974_v60 = vmul.f32 -1.442695, %v2220_v58  ;;  %v2223_v2 = vadd.f32 %v2171_v59, %v5421_v62  ;;  %v2976_v23 = vmul.f32 -1.442695, %v2222_v10  ;;  %v3258_v62 = vld [vmem:[%s5058_s3 + $0x38] sm:$0xff]   ;;  %v3269_v10 = vld [vmem:[%s5058_s3 + $0x48] sm:$0xff]  }
 0x7ad   :  { %v2173_v22 = vpop.f32.mrf.mxu0  ;;  %v2216_v29 = vpop.f32.mrf.mxu1  ;;  %v2225_v33 = vadd.f32 %v2214_v1, %v5426_v28  ;;  %v3266_v1 = vld [vmem:[%s5058_s3 + $0x18] sm:$0xff]  }
 0x7ae   :  { %3467 = vpow2.f32 %v2974_v60  ;;  %v2973_v54 = vmul.f32 -1.442695, %v2223_v2  ;;  %v2224_v19 = vadd.f32 %v2173_v22, %v5422_v25  ;;  %v2226_v0 = vadd.f32 %v2216_v29, %v5424_v53  ;;  %v3259_v22 = vld [vmem:[%s5058_s3 + $0x70] sm:$0xff]   ;;  %v3261_v25 = vld [vmem:[%s5058_s3 + $0x68] sm:$0xff]   ;;  %v3272_v53 = vld [vmem:[%s5058_s3] sm:$0xff]  }
 0x7af   :  { %v3270_v29 = vld [vmem:[%s5058_s3 + $0x8] sm:$0xff]  }
 0x7b0   :  { %3469 = vpow2.f32 %v2973_v54  ;;  %v2975_v63 = vmul.f32 -1.442695, %v2224_v19  ;;  %v2977_v43 = vmul.f32 -1.442695, %v2226_v0  ;;  %v3260_v54 = vld [vmem:[%s5058_s3 + $0x30] sm:$0xff]   ;;  %v3262_v19 = vld [vmem:[%s5058_s3 + $0x28] sm:$0xff]  }
 0x7b2   :  { %3471 = vpow2.f32 %v2975_v63  ;;  %v3267_v63 = vld [vmem:[%s5058_s3 + $0x50] sm:$0xff]  }
 0x7b3   :  { %3473 = vpow2.f32 %v2976_v23  ;;  %v3271_v23 = vld [vmem:[%s5058_s3 + $0x40] sm:$0xff]  }
 0x7b9   :  { %v3466_v35 = vpop.eup %3465 }
 0x7ba   :  { %v2233_v34 = vadd.f32 1.0, %v3466_v35  ;;  %v5427_v35 = vld [vmem:[#allocation77_spill] sm:$0xff] }
 0x7bb   :  { %v3468_v32 = vpop.eup %3467 }
 0x7bc   :  { %3475 = vrcp.f32 %v2233_v34  ;;  %v2245_v57 = vadd.f32 1.0, %v3468_v32 }
 0x7bd   :  { %v3470_v31 = vpop.eup %3469  ;;  %3477 = vtanh.f32 %v2221_v44 }
 0x7be   :  { %3479 = vrcp.f32 %v2245_v57  ;;  %v2234_v26 = vadd.f32 1.0, %v3470_v31 }
 0x7bf   :  { %v3472_v9 = vpop.eup %3471  ;;  %3481 = vpow2.f32 %v2977_v43  ;;  %v5428_v43 = vld [vmem:[#allocation79_spill] sm:$0xff] }
 0x7c0   :  { %3483 = vrcp.f32 %v2234_v26  ;;  %v2246_v5 = vadd.f32 1.0, %v3472_v9  ;;  %v3474_v24 = vpop.eup %3473  ;;  %v5429_v26 = vld [vmem:[#allocation81_spill] sm:$0xff] }
 0x7c1   :  { %3485 = vtanh.f32 %v2225_v33  ;;  %v2259_v20 = vadd.f32 1.0, %v3474_v24 }
 0x7c2   :  { %3487 = vrcp.f32 %v2246_v5 }
 0x7c3   :  { %3489 = vrcp.f32 %v2259_v20 }
 0x7c9   :  { %v3476_v12 = vpop.eup %3475 }
 0x7ca   :  { %v3478_v30 = vpop.eup %3477 }
 0x7cb   :  { %v3480_v56 = vpop.eup %3479  ;;  %v2267_v38 = vmul.f32 %v3478_v30, %v3476_v12  ;;  %v5430_v12 = vld [vmem:[#allocation83_spill] sm:$0xff]  ;;  %v5431_v30 = vld [vmem:[#allocation80_spill] sm:$0xff] }
 0x7cc   :  { %v3482_v37 = vpop.eup %3481  ;;  %v2265_v39 = vmul.f32 %v3480_v56, %v4831_v13 }
 0x7cd   :  { %v3484_v40 = vpop.eup %3483  ;;  %v2260_v46 = vadd.f32 1.0, %v3482_v37 }
 0x7ce   :  { %v3486_v41 = vpop.eup %3485  ;;  %v4928_v42 = vadd.f32 %v2267_v38, %v2265_v39  ;;  %v5432_v38 = vld [vmem:[#allocation84_spill] sm:$0xff] }
 0x7cf   :  { %v3488_v45 = vpop.eup %3487  ;;  %v2268_v47 = vmul.f32 %v3486_v41, %v3484_v40  ;;  %v5433_v41 = vld [vmem:[#allocation78_spill] sm:$0xff] }
 0x7d0   :  { %3491 = vtanh.f32 %v4928_v42  ;;  %v2266_v48 = vmul.f32 %v3488_v45, %v4835_v36  ;;  %v3490_v50 = vpop.eup %3489 }
 0x7d1   :  { %3493 = vrcp.f32 %v2260_v46 }
 0x7d2   :  { %v4932_v49 = vadd.f32 %v2268_v47, %v2266_v48 }
 0x7d4   :  { %3495 = vtanh.f32 %v4932_v49 }
 0x7dd   :  { %v3492_v52 = vpop.eup %3491 }
 0x7de   :  { %v4935_v13 = vmul.f32 %v3492_v52, %v3490_v50  ;;  %v3494_v55 = vpop.eup %3493 }
 0x7e0   :  { %v4940_v60 = vmul.f32 0.0, %v4935_v13 }
 0x7e1   :  { %v3496_v58 = vpop.eup %3495 }
 0x7e2   :  { %v4937_v59 = vmul.f32 %v3496_v58, %v3494_v55  ;;  %v5434_v55 = vld [vmem:[#allocation82_spill] sm:$0xff] }
 0x7e4   :  { %v2280_v61 = vpack.c.bf16 %v4937_v59, %v4940_v60  ;;  %v4945_v36 = vmul.f32 0.0, %v4937_v59 }
 0x7e6   :  { %2313 = vmatprep.mubr.bf16.mxu0 %v2280_v61  ;;  %2356 = vmatprep.mubr.bf16.mxu1 %v2280_v61  ;;  %v2279_v2 = vpack.c.bf16 %v4945_v36, %v4935_v13 }
 0x7e8   :  { %2314 = vmatmul.mubr.bf16.vlgmr.msra.gmra.mxu0 %v2279_v2  ;;  %2357 = vmatmul.mubr.bf16.vlgmr.msra.gmra.mxu1 %v2279_v2 }
 0x7e9   :  { %3049 = vmatpush3.bf16.msra.mxu1 %v3258_v62  ;;  %2634 = vmatprep.mubr.bf16.mxu1 %v2448_v7  ;;  %v3265_v7 = vld [vmem:[%s5058_s3 + $0x58] sm:$0xff]  }
 0x7ea   :  { %3042 = vmatprep.subr.bf16.mxu1 %v3259_v22  ;;  %3002 = vmatpush3.bf16.msra.mxu0 %v3258_v62 }
 0x7eb   :  { %3003 = vmatprep.subr.bf16.mxu0 %v3259_v22 }
 0x7ed   :  { %3050 = vmatpush3.bf16.msra.mxu1 %v3260_v54 }
 0x7ee   :  { %3043 = vmatprep.subr.bf16.mxu1 %v3261_v25  ;;  %3004 = vmatpush3.bf16.msra.mxu0 %v3260_v54 }
 0x7ef   :  { %3005 = vmatprep.subr.bf16.mxu0 %v3261_v25 }
 0x7f1   :  { %3051 = vmatpush3.bf16.msra.mxu1 %v3262_v19 }
 0x7f2   :  { %3044 = vmatprep.subr.bf16.mxu1 %v3263_v18  ;;  %3006 = vmatpush3.bf16.msra.mxu0 %v3262_v19 }
 0x7f3   :  { %3007 = vmatprep.subr.bf16.mxu0 %v3263_v18 }
 0x7f5   :  { %3052 = vmatpush3.bf16.msra.mxu1 %v3264_v21 }
 0x7f6   :  { %3045 = vmatprep.subr.bf16.mxu1 %v3265_v7  ;;  %3008 = vmatpush3.bf16.msra.mxu0 %v3264_v21 }
 0x7f7   :  { %3009 = vmatprep.subr.bf16.mxu0 %v3265_v7 }
 0x7f9   :  { %3053 = vmatpush3.bf16.msra.mxu1 %v3266_v1 }
 0x7fa   :  { %3046 = vmatprep.subr.bf16.mxu1 %v3267_v63  ;;  %3010 = vmatpush3.bf16.msra.mxu0 %v3266_v1 }
 0x7fb   :  { %3011 = vmatprep.subr.bf16.mxu0 %v3267_v63 }
 0x7fd   :  { %3054 = vmatpush3.bf16.msra.mxu1 %v3268_v51 }
 0x7fe   :  { %3047 = vmatprep.subr.bf16.mxu1 %v3269_v10  ;;  %3012 = vmatpush3.bf16.msra.mxu0 %v3268_v51 }
 0x7ff   :  { %3013 = vmatprep.subr.bf16.mxu0 %v3269_v10 }
 0x801   :  { %3055 = vmatpush3.bf16.msra.mxu1 %v3270_v29 }
 0x802   :  { %3048 = vmatprep.subr.bf16.mxu1 %v3271_v23  ;;  %3014 = vmatpush3.bf16.msra.mxu0 %v3270_v29 }
 0x803   :  { %3015 = vmatprep.subr.bf16.mxu0 %v3271_v23 }
 0x805   :  { %3056 = vmatpush3.bf16.msra.mxu1 %v3272_v53 }
 0x806   :  { %3016 = vmatpush3.bf16.msra.mxu0 %v3272_v53 }
 0x808   :  { %2635 = vmatmul.mubr.bf16.vlgmr.msra.gmra.mxu1 %v2447_v27 }
 0x8a8   :  { %v2315_v0 = vpop.f32.mrf.mxu0  ;;  %v2358_v44 = vpop.f32.mrf.mxu1 }
 0x8a9   :  { %v2367_v17 = vadd.f32 %v2315_v0, %v5427_v35  ;;  %v2369_v45 = vadd.f32 %v2358_v44, %v5433_v41 }
 0x8aa   :  { %v2317_v34 = vpop.f32.mrf.mxu0  ;;  %v2360_v33 = vpop.f32.mrf.mxu1 }
 0x8ab   :  { %v2978_v32 = vmul.f32 -1.442695, %v2367_v17  ;;  %v2368_v57 = vadd.f32 %v2317_v34, %v5428_v43  ;;  %v2370_v56 = vadd.f32 %v2360_v33, %v5431_v30  ;;  %v5440_v30 = vld [vmem:[#allocation12_spill] sm:$0xff] }
 0x8ac   :  { %v2319_v31 = vpop.f32.mrf.mxu0  ;;  %v2362_v16 = vpop.f32.mrf.mxu1 }
 0x8ad   :  { %3497 = vpow2.f32 %v2978_v32  ;;  %v2980_v28 = vmul.f32 -1.442695, %v2368_v57  ;;  %v2371_v9 = vadd.f32 %v2319_v31, %v5429_v26  ;;  %v2982_v37 = vmul.f32 -1.442695, %v2370_v56  ;;  %v5437_v26 = vld [vmem:[#allocation86_spill] sm:$0xff] }
 0x8ae   :  { %v2321_v5 = vpop.f32.mrf.mxu0  ;;  %v2364_v20 = vpop.f32.mrf.mxu1  ;;  %v2373_v58 = vadd.f32 %v2362_v16, %v5434_v55  ;;  %v5439_v16 = vld [vmem:[#allocation87_spill] sm:$0xff]  ;;  %v2430_v56 = vadd.f32 %v4937_v59, %v5440_v30 }
 0x8af   :  { %3499 = vpow2.f32 %v2980_v28  ;;  %v2979_v24 = vmul.f32 -1.442695, %v2371_v9  ;;  %v2372_v6 = vadd.f32 %v2321_v5, %v5430_v12  ;;  %v2374_v39 = vadd.f32 %v2364_v20, %v5432_v38  ;;  %v5436_v28 = vld [vmem:[#allocation11_spill] sm:$0xff]  ;;  %v5441_v38 = vld [vmem:[#allocation85_spill] sm:$0xff] }
 0x8b0   :  { %v2440_v33 = vadd.f32 %v4940_v60, %v5436_v28 }
 0x8b1   :  { %3501 = vpow2.f32 %v2979_v24  ;;  %v2981_v27 = vmul.f32 -1.442695, %v2372_v6  ;;  %v2983_v48 = vmul.f32 -1.442695, %v2374_v39  ;;  %v5438_v24 = vld [vmem:[#allocation13_spill] sm:$0xff] }
 0x8b3   :  { %3503 = vpow2.f32 %v2981_v27 }
 0x8b4   :  { %3505 = vpow2.f32 %v2982_v37 }
 0x8ba   :  { %v3498_v40 = vpop.eup %3497 }
 0x8bb   :  { %v2381_v46 = vadd.f32 1.0, %v3498_v40  ;;  %v5442_v40 = vld [vmem:[#allocation10_spill] sm:$0xff] }
 0x8bc   :  { %v3500_v47 = vpop.eup %3499  ;;  %v2429_v60 = vadd.f32 %v4945_v36, %v5442_v40 }
 0x8bd   :  { %3507 = vrcp.f32 %v2381_v46  ;;  %v2393_v50 = vadd.f32 1.0, %v3500_v47 }
 0x8be   :  { %v3502_v52 = vpop.eup %3501  ;;  %3509 = vtanh.f32 %v2369_v45 }
 0x8bf   :  { %3511 = vrcp.f32 %v2393_v50  ;;  %v2382_v61 = vadd.f32 1.0, %v3502_v52 }
 0x8c0   :  { %v3504_v62 = vpop.eup %3503  ;;  %3513 = vpow2.f32 %v2983_v48 }
 0x8c1   :  { %3515 = vrcp.f32 %v2382_v61  ;;  %v2394_v2 = vadd.f32 1.0, %v3504_v62  ;;  %v3506_v22 = vpop.eup %3505 }
 0x8c2   :  { %3517 = vtanh.f32 %v2373_v58  ;;  %v2407_v18 = vadd.f32 1.0, %v3506_v22 }
 0x8c3   :  { %3519 = vrcp.f32 %v2394_v2 }
 0x8c4   :  { %3521 = vrcp.f32 %v2407_v18 }
 0x8ca   :  { %v3508_v54 = vpop.eup %3507 }
 0x8cb   :  { %v3510_v25 = vpop.eup %3509 }
 0x8cc   :  { %v3512_v19 = vpop.eup %3511  ;;  %v2415_v7 = vmul.f32 %v3510_v25, %v3508_v54 }
 0x8cd   :  { %v3514_v21 = vpop.eup %3513  ;;  %v2413_v1 = vmul.f32 %v3512_v19, %v4928_v42  ;;  %v5435_v42 = vld [vmem:[#allocation88_spill] sm:$0xff] }
 0x8ce   :  { %v3516_v63 = vpop.eup %3515  ;;  %v2408_v23 = vadd.f32 1.0, %v3514_v21 }
 0x8cf   :  { %v3518_v51 = vpop.eup %3517  ;;  %v2417_v10 = vadd.f32 %v2415_v7, %v2413_v1 }
 0x8d0   :  { %v3520_v29 = vpop.eup %3519  ;;  %v2416_v53 = vmul.f32 %v3518_v51, %v3516_v63 }
 0x8d1   :  { %3523 = vtanh.f32 %v2417_v10  ;;  %v2414_v0 = vmul.f32 %v3520_v29, %v4932_v49  ;;  %v3522_v17 = vpop.eup %3521  ;;  %v2439_v49 = vadd.f32 %v4935_v13, %v5438_v24  ;;  %v3029_v13 = vpop.f32.mrf.mxu1 }
 0x8d2   :  { %3525 = vrcp.f32 %v2408_v23 }
 0x8d3   :  { %v2418_v35 = vadd.f32 %v2416_v53, %v2414_v0  ;;  %v3030_v59 = vpop.f32.mrf.mxu1 }
 0x8d4   :  { %v3031_v3 = vadd.f32 %v3030_v59, %v3029_v13 }
 0x8d5   :  { %3527 = vtanh.f32 %v2418_v35  ;;  %v3032_v45 = vpop.f32.mrf.mxu1 }
 0x8d6   :  { %v2637_v51 = vadd.f32 %v3031_v3, %v2984_v15 }
 0x8d7   :  { %v3033_v46 = vpop.f32.mrf.mxu1 }
 0x8d8   :  { %v3034_v14 = vadd.f32 %v3033_v46, %v3032_v45 }
 0x8da   :  { %v2640_v21 = vadd.f32 %v3034_v14, %v2984_v15 }
 0x8de   :  { %v3524_v44 = vpop.eup %3523 }
 0x8df   :  { %v2421_v34 = vmul.f32 %v3524_v44, %v3522_v17  ;;  %v3526_v32 = vpop.eup %3525 }
 0x8e1   :  { %v2424_v43 = vmul.f32 0.0, %v2421_v34  ;;  %v2441_v31 = vadd.f32 %v2421_v34, %v5435_v42 }
 0x8e2   :  { %v3528_v57 = vpop.eup %3527 }
 0x8e3   :  { %v2442_v9 = vadd.f32 %v2424_v43, %v5437_v26  ;;  %v2422_v5 = vmul.f32 %v3528_v57, %v3526_v32  ;;  %v2449_v20 = vpack.c.bf16 %v2441_v31, %v2439_v49 }
 0x8e5   :  { %v2450_v12 = vpack.c.bf16 %v2442_v9, %v2440_v33  ;;  %v2425_v6 = vmul.f32 0.0, %v2422_v5  ;;  %v2428_v27 = vadd.f32 %v2422_v5, %v5439_v16 }
 0x8e7   :  { %2642 = vmatprep.mubr.bf16.mxu1 %v2450_v12  ;;  %v2444_v37 = vpack.c.bf16 %v2430_v56, %v2428_v27  ;;  %v2427_v39 = vadd.f32 %v2425_v6, %v5441_v38 }
 0x8e8   :  { %2643 = vmatmul.mubr.bf16.gmra.mxu1 %v2449_v20 }
 0x8e9   :  { %2618 = vmatprep.mubr.bf16.mxu0 %v2444_v37  ;;  %v2443_v41 = vpack.c.bf16 %v2429_v60, %v2427_v39 }
 0x8eb   :  { %2619 = vmatmul.mubr.bf16.vlgmr.msra.gmra.mxu0 %v2443_v41 }
 0x8ec   :  { %2626 = vmatprep.mubr.bf16.mxu0 %v2446_v8 }
 0x8f3   :  { %2627 = vmatmul.mubr.bf16.gmra.mxu0 %v2445_v11 }
 0x9a8   :  { %v3035_v47 = vpop.f32.mrf.mxu1 }
 0x9aa   :  { %v3036_v50 = vpop.f32.mrf.mxu1 }
 0x9ab   :  { %v3017_v48 = vpop.f32.mrf.mxu0  ;;  %v3037_v54 = vadd.f32 %v3036_v50, %v3035_v47 }
 0x9ac   :  { %v3038_v55 = vpop.f32.mrf.mxu1 }
 0x9ad   :  { %v3018_v36 = vpop.f32.mrf.mxu0  ;;  %v2645_v10 = vadd.f32 %v3037_v54, %v2984_v15 }
 0x9ae   :  { %v3039_v2 = vpop.f32.mrf.mxu1  ;;  %v3019_v8 = vadd.f32 %v3018_v36, %v3017_v48 }
 0x9af   :  { %v3020_v52 = vpop.f32.mrf.mxu0  ;;  %v3040_v25 = vadd.f32 %v3039_v2, %v3038_v55 }
 0x9b0   :  { %v2621_v7 = vadd.f32 %v3019_v8, %v2984_v15 }
 0x9b1   :  { %v3021_v58 = vpop.f32.mrf.mxu0  ;;  %v2648_v29 = vadd.f32 %v3040_v25, %v2984_v15 }
 0x9b2   :  { %v3022_v62 = vadd.f32 %v3021_v58, %v3020_v52  ;;  %v2651_v0 = vmax.f32 %v2621_v7, %v2637_v51 }
 0x9b3   :  { %v3023_v61 = vpop.f32.mrf.mxu0 }
 0x9b4   :  { %v2624_v19 = vadd.f32 %v3022_v62, %v2984_v15 }
 0x9b5   :  { %v3024_v4 = vpop.f32.mrf.mxu0 }
 0x9b6   :  { %v3025_v22 = vadd.f32 %v3024_v4, %v3023_v61  ;;  %v2652_v23 = vmax.f32 %v2624_v19, %v2640_v21 }
 0x9b7   :  { %v3026_v11 = vpop.f32.mrf.mxu0 }
 0x9b8   :  { %v2629_v1 = vadd.f32 %v3025_v22, %v2984_v15  ;;  %v2655_v44 = vmax.f32 %v2651_v0, %v2652_v23 }
 0x9b9   :  { %v3027_v18 = vpop.f32.mrf.mxu0 }
 0x9ba   :  { %v3028_v63 = vadd.f32 %v3027_v18, %v3026_v11  ;;  %v2653_v35 = vmax.f32 %v2629_v1, %v2645_v10 }
 0x9bc   :  { %v2632_v53 = vadd.f32 %v3028_v63, %v2984_v15 }
 0x9be   :  { %v2654_v17 = vmax.f32 %v2632_v53, %v2648_v29 }
 0x9c0   :  { %v2656_v34 = vmax.f32 %v2653_v35, %v2654_v17 }
 0x9c2   :  { %v2657_v32 = vmax.f32 %v2655_v44, %v2656_v34 }
 0x9c4   :  { %v2658_v43 = vsub.f32 %v2621_v7, %v2657_v32  ;;  %v2659_v57 = vsub.f32 %v2624_v19, %v2657_v32  ;;  %v2660_v42 = vsub.f32 %v2629_v1, %v2657_v32  ;;  %v2661_v31 = vsub.f32 %v2632_v53, %v2657_v32 }
 0x9c5   :  { %v2662_v26 = vsub.f32 %v2637_v51, %v2657_v32  ;;  %v2663_v5 = vsub.f32 %v2640_v21, %v2657_v32  ;;  %v2664_v49 = vsub.f32 %v2645_v10, %v2657_v32  ;;  %v2665_v6 = vsub.f32 %v2648_v29, %v2657_v32 }
 0x9c6   :  { %v2666_v28 = vmul.f32 1.442695, %v2658_v43  ;;  %v2668_v33 = vmul.f32 1.442695, %v2659_v57  ;;  %v2670_v9 = vmul.f32 1.442695, %v2660_v42 }
 0x9c7   :  { %v2672_v24 = vmul.f32 1.442695, %v2661_v31  ;;  %v2674_v12 = vmul.f32 1.442695, %v2662_v26  ;;  %v2676_v16 = vmul.f32 1.442695, %v2663_v5 }
 0x9c8   :  { %3529 = vpow2.f32 %v2666_v28  ;;  %v2678_v27 = vmul.f32 1.442695, %v2664_v49  ;;  %v2680_v30 = vmul.f32 1.442695, %v2665_v6 }
 0x9c9   :  { %3531 = vpow2.f32 %v2668_v33 }
 0x9ca   :  { %3533 = vpow2.f32 %v2670_v9 }
 0x9cb   :  { %3535 = vpow2.f32 %v2672_v24 }
 0x9cc   :  { %3537 = vpow2.f32 %v2674_v12 }
 0x9cd   :  { %3539 = vpow2.f32 %v2676_v16 }
 0x9ce   :  { %3541 = vpow2.f32 %v2678_v27 }
 0x9cf   :  { %3543 = vpow2.f32 %v2680_v30 }
 0x9d5   :  { %v3530_v56 = vpop.eup %3529 }
 0x9d6   :  { %v3532_v20 = vpop.eup %3531 }
 0x9d7   :  { %v2682_v37 = vadd.f32 %v3532_v20, %v3530_v56  ;;  %v3534_v38 = vpop.eup %3533 }
 0x9d8   :  { %v3536_v40 = vpop.eup %3535 }
 0x9d9   :  { %v2683_v39 = vadd.f32 %v3534_v38, %v2682_v37  ;;  %v3538_v41 = vpop.eup %3537 }
 0x9da   :  { %v3540_v59 = vpop.eup %3539 }
 0x9db   :  { %v2684_v60 = vadd.f32 %v3536_v40, %v2683_v39  ;;  %v3542_v46 = vpop.eup %3541 }
 0x9dc   :  { %v3544_v48 = vpop.eup %3543 }
 0x9dd   :  { %v2685_v13 = vadd.f32 %v3538_v41, %v2684_v60 }
 0x9df   :  { %v2686_v45 = vadd.f32 %v3540_v59, %v2685_v13 }
 0x9e1   :  { %v2687_v47 = vadd.f32 %v3542_v46, %v2686_v45 }
 0x9e3   :  { %v2688_v50 = vadd.f32 %v3544_v48, %v2687_v47 }
 0x9e5   :  { %3545 = vrcp.f32 %v2688_v50 }
 0x9f2   :  { %v3546_v36 = vpop.eup %3545 }
 0x9f3   :  { %v2690_v52 = vmul.f32 %v3546_v36, %v3530_v56  ;;  %v2691_v55 = vmul.f32 %v3546_v36, %v3532_v20  ;;  %v2692_v58 = vmul.f32 %v3546_v36, %v3534_v38  ;;  %v2693_v61 = vmul.f32 %v3546_v36, %v3536_v40 }
 0x9f4   :  { %v2694_v62 = vmul.f32 %v3546_v36, %v3538_v41  ;;  %v2695_v2 = vmul.f32 %v3546_v36, %v3540_v59  ;;  %v2696_v4 = vmul.f32 %v3546_v36, %v3542_v46  ;;  %v2697_v14 = vmul.f32 %v3546_v36, %v3544_v48 }
 0x9f5   :  { %2698 = vst [vmem:[%s5060_s5] sm:$0xff] %v2690_v52  ;;  %2699 = vst [vmem:[%s5060_s5 + $0x8] sm:$0xff] %v2691_v55 }
 0x9f6   :  { %2700 = vst [vmem:[%s5060_s5 + $0x10] sm:$0xff] %v2692_v58  ;;  %2701 = vst [vmem:[%s5060_s5 + $0x18] sm:$0xff] %v2693_v61 }
 0x9f7   :  { %2702 = vst [vmem:[%s5060_s5 + $0x20] sm:$0xff] %v2694_v62  ;;  %2703 = vst [vmem:[%s5060_s5 + $0x28] sm:$0xff] %v2695_v2 }
 0x9f8   :  { %2704 = vst [vmem:[%s5060_s5 + $0x30] sm:$0xff] %v2696_v4  ;;  %2705 = vst [vmem:[%s5060_s5 + $0x38] sm:$0xff] %v2697_v14 }
 0x9f9   :  { %2710 = vsyncpa [#allocation3], 1 }
 0x9fa   :  { %2711 = vsyncpa [#allocation5], 1 }

</bundles_post_ra>
